<compile_context>
chip_gen: v7x
topology: tpu7x:2x2x1
jax: 0.10.0
libtpu: 0.0.40
codegen_flags: <defaults>
</compile_context>

<pallas_src>
import jax
import jax.numpy as jnp
from jax.experimental import pallas as pl
from jax.experimental.pallas import tpu as pltpu

_EPS = 1e-5

# Spatial layout constants: rows are stored at stride 16 so every shifted or
# strided access in the kernels stays sublane-tile friendly.
_ROWS1 = 14 * 16          # 224: layer1 pooled 14x14 map at row-stride 16
_ROWS2 = _ROWS1 // 2      # 112: layer2 pooled rows per image (incl. garbage)
_FLAT = _ROWS2 * 64       # 7168: per-image trunk output row fed to folded FC


# ---------------------------------------------------------------------------
# Batch-tile selection (>=2 grid steps whenever the batch allows it)
# ---------------------------------------------------------------------------
def _pick_trunk_tile(n):
    if n >= 64:
        return 16
    if n >= 16:
        return 8
    if n >= 2:
        return max(1, n // 2)
    return 1


def _fc_padding(m):
    """Return (padded batch, batch tile) for the FC head."""
    if m >= 256:
        m_pad = ((m + 255) // 256) * 256
        return m_pad, 128
    m_pad = max(16, ((m + 15) // 16) * 16)
    return m_pad, m_pad // 2


# ---------------------------------------------------------------------------
# Kernel 1: conv trunk (layer1 + layer2, fused, batch-tiled)
# ---------------------------------------------------------------------------
def conv_trunk(p1_blocks, fp, batch_tile):
    nb = p1_blocks.shape[0]
    B = batch_tile
    R = B * _ROWS1            # conv row space handled per grid step
    H = B * _ROWS2            # pooled rows written per grid step

    def kernel(p1_ref, w1_ref, b1_ref, w2_ref, b2_ref, o_ref, y1buf, c2buf):
        # ---- layer1: conv(1->32,k3,pad1)+BN+ReLU, 2x2 pool via phase-max ----
        x = p1_ref[0]                                                # [R,36] bf16
        y = jnp.dot(x, w1_ref[...],
                    preferred_element_type=jnp.float32) + b1_ref[...]  # [R,128]
        y = jnp.maximum(y, 0.0)
        y1 = jnp.maximum(jnp.maximum(y[:, 0:32], y[:, 32:64]),
                         jnp.maximum(y[:, 64:96], y[:, 96:128]))     # [R,32]
        y1buf[pl.ds(0, R), :] = y1
        y1buf[pl.ds(R, 40), :] = jnp.zeros((40, 32), jnp.float32)    # keep pads finite

        # ---- layer2: conv(32->64,k3) = 9 shifted-slice accumulating matmuls ----
        acc = None
        for k in range(9):
            kh, kw = k // 3, k % 3
            lhs = y1buf[pl.ds(kh * 16 + kw, R), :]                   # [R,32]
            d = jnp.dot(lhs, w2_ref[pl.ds(k * 32, 32), :],
                        preferred_element_type=jnp.float32)          # [R,64]
            acc = d if acc is None else acc + d
        act = jnp.maximum(acc + b2_ref[...], 0.0)                    # [R,64]
        c2buf[pl.ds(0, R), :] = act
        c2buf[pl.ds(R, 16), :] = jnp.zeros((16, 64), jnp.float32)    # keep pads finite

        # ---- 2x2 max pool: 4 global stride-2 sublane reads over all B images ----
        p00 = c2buf[pl.ds(0, H, stride=2), :]
        p01 = c2buf[pl.ds(1, H, stride=2), :]
        p10 = c2buf[pl.ds(16, H, stride=2), :]
        p11 = c2buf[pl.ds(17, H, stride=2), :]
        o_ref[0] = jnp.maximum(jnp.maximum(p00, p01),
                               jnp.maximum(p10, p11)).astype(o_ref.dtype)

    return pl.pallas_call(
        kernel,
        out_shape=jax.ShapeDtypeStruct((nb, H, 64), jnp.bfloat16),
        grid=(nb,),
        in_specs=[
            pl.BlockSpec((1, R, 36), lambda i: (i, 0, 0)),
            pl.BlockSpec((36, 128), lambda i: (0, 0)),
            pl.BlockSpec((1, 128), lambda i: (0, 0)),
            pl.BlockSpec((288, 64), lambda i: (0, 0)),
            pl.BlockSpec((1, 64), lambda i: (0, 0)),
        ],
        out_specs=pl.BlockSpec((1, H, 64), lambda i: (i, 0, 0)),
        scratch_shapes=[
            pltpu.VMEM((R + 40, 32), jnp.float32),   # layer1 pooled activations
            pltpu.VMEM((R + 16, 64), jnp.float32),   # layer2 pre-pool activations
        ],
        compiler_params=pltpu.CompilerParams(
            dimension_semantics=("parallel",),
            vmem_limit_bytes=48 * 1024 * 1024),
    )(p1_blocks, fp["w1big"], fp["b1big"], fp["w2s"], fp["b2f"])


# ---------------------------------------------------------------------------
# Kernel 2: folded FC head (fc1 -> drop(identity, eval) -> fc2 -> fc3)
# ---------------------------------------------------------------------------
def fc_head(flat, fp, tile_b):
    m = flat.shape[0]

    def kernel(x_ref, w_ref, b_ref, o_ref):
        o_ref[...] = jnp.dot(x_ref[...], w_ref[...],
                             preferred_element_type=jnp.float32) + b_ref[...]

    return pl.pallas_call(
        kernel,
        out_shape=jax.ShapeDtypeStruct((m, 128), jnp.float32),
        grid=(m // tile_b,),
        in_specs=[
            pl.BlockSpec((tile_b, _FLAT), lambda i: (i, 0)),
            pl.BlockSpec((_FLAT, 128), lambda i: (0, 0)),
            pl.BlockSpec((1, 128), lambda i: (0, 0)),
        ],
        out_specs=pl.BlockSpec((tile_b, 128), lambda i: (i, 0)),
        compiler_params=pltpu.CompilerParams(
            dimension_semantics=("parallel",),
            vmem_limit_bytes=32 * 1024 * 1024),
    )(flat, fp["wfc"], fp["bfc"])


# ---------------------------------------------------------------------------
# Parameters (deterministic synthetic init, PyTorch layouts) + one-time prep
# ---------------------------------------------------------------------------
def init_params(key):
    ks = jax.random.split(key, 10)

    def rn(k, shape, s=0.1):
        return jax.random.normal(k, shape, jnp.float32) * s

    p = {}
    # layer1: Conv2d(1, 32, 3, padding=1) + BatchNorm2d(32)
    p["w1"] = rn(ks[0], (32, 1, 3, 3))
    p["b1"] = rn(ks[1], (32,))
    p["g1"], p["beta1"] = jnp.ones((32,)), jnp.zeros((32,))
    p["m1"], p["v1"] = jnp.zeros((32,)), jnp.ones((32,))
    # layer2: Conv2d(32, 64, 3) + BatchNorm2d(64)
    p["w2"] = rn(ks[2], (64, 32, 3, 3))
    p["b2"] = rn(ks[3], (64,))
    p["g2"], p["beta2"] = jnp.ones((64,)), jnp.zeros((64,))
    p["m2"], p["v2"] = jnp.zeros((64,)), jnp.ones((64,))
    # fc1 / fc2 / fc3
    p["fcw1"] = rn(ks[4], (600, 64 * 6 * 6), 0.02)
    p["fcb1"] = rn(ks[5], (600,))
    p["fcw2"] = rn(ks[6], (120, 600), 0.02)
    p["fcb2"] = rn(ks[7], (120,))
    p["fcw3"] = rn(ks[8], (10, 120), 0.02)
    p["fcb3"] = rn(ks[9], (10,))
    return p


def prepare_params(p):
    """One-time: fold BN into weights/bias, fold fc1@fc2@fc3, cast to bf16."""
    f32, bf16 = jnp.float32, jnp.bfloat16
    s1 = p["g1"] / jnp.sqrt(p["v1"] + _EPS)
    b1f = s1 * (p["b1"] - p["m1"]) + p["beta1"]
    s2 = p["g2"] / jnp.sqrt(p["v2"] + _EPS)
    b2f = s2 * (p["b2"] - p["m2"]) + p["beta2"]

    # conv1: (32,1,3,3) -> [tap, co] = [9,32], BN scale folded into columns,
    # then placed block-diagonally for the 4 pool phases -> [36, 128].
    w1tap = jnp.transpose(p["w1"].reshape(32, 9), (1, 0)) * s1[None, :]
    w1big = jnp.zeros((36, 128), f32)
    for ph in range(4):
        w1big = w1big.at[ph * 9:(ph + 1) * 9, ph * 32:(ph + 1) * 32].set(w1tap)
    b1big = jnp.tile(b1f, (4,)).reshape(1, 128)

    # conv2: (64,32,3,3) -> [(kh,kw,ci), co] = [288,64], BN scale folded.
    # Kept f32 (the layer-2 matmul LHS comes from the f32 scratch buffer).
    w2s = jnp.transpose(p["w2"], (2, 3, 1, 0)).reshape(288, 64) * s2[None, :]

    # FC fold (eval mode: Dropout2d is identity, chain is purely linear).
    wf = p["fcw1"].T @ p["fcw2"].T @ p["fcw3"].T                       # [2304,10]
    bfc = (p["fcb1"] @ p["fcw2"].T @ p["fcw3"].T
           + p["fcb2"] @ p["fcw3"].T + p["fcb3"])                      # [10]
    # Scatter into the kernel's garbage-padded pooled layout:
    #   pooled row j = h2*8 + wo' (valid at h2 = 2*ho, wo' = wo), lane = channel.
    wf_hwcn = jnp.transpose(wf.reshape(64, 6, 6, 10), (1, 2, 0, 3))    # (ho,wo,c,n)
    wbig = jnp.zeros((14, 8, 64, 10), f32)
    wbig = wbig.at[0:12:2, 0:6].set(wf_hwcn)
    wbig = wbig.reshape(_FLAT, 10)
    wpad = jnp.zeros((_FLAT, 128), f32).at[:, :10].set(wbig)           # lane-pad
    bpad = jnp.zeros((1, 128), f32).at[0, :10].set(bfc)

    return {
        "w1big": w1big.astype(bf16), "b1big": b1big.astype(f32),
        "w2s": w2s.astype(f32), "b2f": b2f.reshape(1, 64).astype(f32),
        "wfc": wpad.astype(bf16), "bfc": bpad,
    }


# ---------------------------------------------------------------------------
# Forward pass
# ---------------------------------------------------------------------------
def fashion_cnn_forward(x, fp):
    """x: [N, 1, 28, 28] f32 (NCHW, PyTorch layout) -> logits [N, 10] f32."""
    n = x.shape[0]
    B = _pick_trunk_tile(n)
    n_blk = -(-n // B)
    n_pad = n_blk * B

    # Host-side im2col for conv1 only (K=9, <1% of FLOPs), grouped by the 4
    # positions of each 2x2 pool window, spatial rows at stride 16.
    xp = jnp.pad(x[:, 0], ((0, 0), (1, 1), (1, 1)))                    # [n,30,30]
    pat = jnp.stack([xp[:, kh:kh + 28, kw:kw + 28]
                     for kh in range(3) for kw in range(3)], axis=-1)  # [n,28,28,9]
    pat = pat.reshape(n, 14, 2, 14, 2, 9)                   # (n,ho,ph,wo,pw,t)
    pat = jnp.transpose(pat, (0, 1, 3, 2, 4, 5)).reshape(n, 14, 14, 36)
    p1 = jnp.zeros((n_pad, 14, 16, 36), jnp.bfloat16)
    p1 = p1.at[:n, :, :14, :].set(pat.astype(jnp.bfloat16))
    p1 = p1.reshape(n_blk, B * _ROWS1, 36)

    trunk = conv_trunk(p1, fp, B)                           # [n_blk, B*112, 64]
    flat = trunk.reshape(n_pad, _FLAT)                      # free reshape in HBM

    m_pad, tile_b = _fc_padding(n_pad)
    if m_pad != n_pad:
        flat = jnp.pad(flat, ((0, m_pad - n_pad), (0, 0)))
    logits = fc_head(flat, fp, tile_b)                      # [m_pad, 128] f32
    return logits[:n, :10]


# ---------------------------------------------------------------------------
# Pure-JAX reference (eval-mode PyTorch semantics) for validation
# ---------------------------------------------------------------------------
def reference_forward(x, p):
    def bn(z, g, b, m, v):
        return ((z - m[None, :, None, None])
                / jnp.sqrt(v + _EPS)[None, :, None, None]
                * g[None, :, None, None] + b[None, :, None, None])

    def pool2(z):
        return jax.lax.reduce_window(z, -jnp.inf, jax.lax.max,
                                     (1, 1, 2, 2), (1, 1, 2, 2), "VALID")

    dn = ("NCHW", "OIHW", "NCHW")
    y = jax.lax.conv_general_dilated(x, p["w1"], (1, 1), ((1, 1), (1, 1)),
                                     dimension_numbers=dn)
    y = y + p["b1"][None, :, None, None]
    y = pool2(jnp.maximum(bn(y, p["g1"], p["beta1"], p["m1"], p["v1"]), 0.0))
    z = jax.lax.conv_general_dilated(y, p["w2"], (1, 1), ((0, 0), (0, 0)),
                                     dimension_numbers=dn)
    z = z + p["b2"][None, :, None, None]
    z = pool2(jnp.maximum(bn(z, p["g2"], p["beta2"], p["m2"], p["v2"]), 0.0))
    flat = z.reshape(z.shape[0], -1)
    h = flat @ p["fcw1"].T + p["fcb1"]        # Dropout2d: identity in eval mode
    h = h @ p["fcw2"].T + p["fcb2"]
    return h @ p["fcw3"].T + p["fcb3"]


# ---------------------------------------------------------------------------
if __name__ == "__main__":
    key = jax.random.PRNGKey(0)
    kx, kp = jax.random.split(key)
    x = jax.random.normal(kx, (2, 1, 28, 28), jnp.float32)   # NCHW, like PyTorch
    params = init_params(kp)
    fprep = prepare_params(params)                           # one-time prep

    out = jax.jit(fashion_cnn_forward)(x, fprep)
    out = jax.block_until_ready(out)

    assert out.shape == (2, 10), out.shape
    assert out.dtype == jnp.float32
    assert bool(jnp.all(jnp.isfinite(out)))

    ref = reference_forward(x, params)
    assert bool(jnp.allclose(out, ref, rtol=0.05, atol=0.05)), (
        float(jnp.max(jnp.abs(out - ref))))
    print("KERNEL_OK")
</pallas_src>

<mosaic_0001>
module attributes {stable_mosaic.version = 11 : i64} {
  func.func @kernel(%arg0: i32, %arg1: memref<1x224x36xbf16, #tpu.memory_space<vmem>>, %arg2: memref<36x128xbf16, #tpu.memory_space<vmem>>, %arg3: memref<1x128xf32, #tpu.memory_space<vmem>>, %arg4: memref<288x64xf32, #tpu.memory_space<vmem>>, %arg5: memref<1x64xf32, #tpu.memory_space<vmem>>, %arg6: memref<1x112x64xbf16, #tpu.memory_space<vmem>>, %arg7: memref<264x32xf32, #tpu.memory_space<vmem>>, %arg8: memref<240x64xf32, #tpu.memory_space<vmem>>) attributes {dimension_semantics = [#tpu.dimension_semantics<parallel>], iteration_bounds = array<i64: 2>, scalar_prefetch = 0 : i64, scratch_operands = 2 : i64, tpu.core_type = #tpu.core_type<tc>, window_params = [{transform_indices = @transform_0, window_bounds = array<i64: 1, 224, 36>}, {pipeline_mode = #tpu.pipeline_mode<synchronous>, transform_indices = @transform_1, window_bounds = array<i64: 36, 128>}, {pipeline_mode = #tpu.pipeline_mode<synchronous>, transform_indices = @transform_2, window_bounds = array<i64: 1, 128>}, {pipeline_mode = #tpu.pipeline_mode<synchronous>, transform_indices = @transform_3, window_bounds = array<i64: 288, 64>}, {pipeline_mode = #tpu.pipeline_mode<synchronous>, transform_indices = @transform_4, window_bounds = array<i64: 1, 64>}, {transform_indices = @transform_5, window_bounds = array<i64: 1, 112, 64>}]} {
    %c0 = arith.constant 0 : index
    %c0_0 = arith.constant 0 : index
    %c0_1 = arith.constant 0 : index
    %0 = vector.load %arg1[%c0, %c0_0, %c0_1] : memref<1x224x36xbf16, #tpu.memory_space<vmem>>, vector<1x224x36xbf16>
    %1 = vector.shape_cast %0 : vector<1x224x36xbf16> to vector<224x36xbf16>
    %c0_2 = arith.constant 0 : index
    %c0_3 = arith.constant 0 : index
    %2 = vector.load %arg2[%c0_2, %c0_3] : memref<36x128xbf16, #tpu.memory_space<vmem>>, vector<36x128xbf16>
    %cst = arith.constant dense<0.000000e+00> : vector<224x128xf32>
    %3 = tpu.matmul %1, %2, %cst {dimension_numbers = #tpu.dot_dimension_numbers<[1], [0], [0], [1], [0, 0, 1, 1], [], []>} : vector<224x36xbf16>, vector<36x128xbf16>, vector<224x128xf32> -> vector<224x128xf32>
    %c0_4 = arith.constant 0 : index
    %c0_5 = arith.constant 0 : index
    %4 = vector.load %arg3[%c0_4, %c0_5] : memref<1x128xf32, #tpu.memory_space<vmem>>, vector<1x128xf32>
    %5 = vector.broadcast %4 : vector<1x128xf32> to vector<224x128xf32>
    %6 = arith.addf %3, %5 : vector<224x128xf32>
    %cst_6 = arith.constant 0.000000e+00 : f32
    %7 = vector.broadcast %cst_6 : f32 to vector<224x128xf32>
    %8 = arith.maximumf %6, %7 : vector<224x128xf32>
    %9 = vector.extract_strided_slice %8 {offsets = [0, 0], sizes = [224, 32], strides = [1, 1]} : vector<224x128xf32> to vector<224x32xf32>
    %10 = vector.extract_strided_slice %8 {offsets = [0, 32], sizes = [224, 32], strides = [1, 1]} : vector<224x128xf32> to vector<224x32xf32>
    %11 = arith.maximumf %9, %10 : vector<224x32xf32>
    %12 = vector.extract_strided_slice %8 {offsets = [0, 64], sizes = [224, 32], strides = [1, 1]} : vector<224x128xf32> to vector<224x32xf32>
    %13 = vector.extract_strided_slice %8 {offsets = [0, 96], sizes = [224, 32], strides = [1, 1]} : vector<224x128xf32> to vector<224x32xf32>
    %14 = arith.maximumf %12, %13 : vector<224x32xf32>
    %15 = arith.maximumf %11, %14 : vector<224x32xf32>
    %c0_7 = arith.constant 0 : index
    %c0_8 = arith.constant 0 : index
    %16 = vector.load %arg7[%c0_7, %c0_8] : memref<264x32xf32, #tpu.memory_space<vmem>>, vector<224x32xf32>
    tpu.vector_store %arg7[%c0_7, %c0_8], %15 {strides = array<i32>} : memref<264x32xf32, #tpu.memory_space<vmem>>, vector<224x32xf32>,
    %cst_9 = arith.constant 0.000000e+00 : f32
    %17 = vector.broadcast %cst_9 : f32 to vector<40x32xf32>
    %c224 = arith.constant 224 : index
    %c0_10 = arith.constant 0 : index
    %18 = vector.load %arg7[%c224, %c0_10] : memref<264x32xf32, #tpu.memory_space<vmem>>, vector<40x32xf32>
    tpu.vector_store %arg7[%c224, %c0_10], %17 {strides = array<i32>} : memref<264x32xf32, #tpu.memory_space<vmem>>, vector<40x32xf32>,
    %c0_11 = arith.constant 0 : index
    %c0_12 = arith.constant 0 : index
    %19 = vector.load %arg7[%c0_11, %c0_12] : memref<264x32xf32, #tpu.memory_space<vmem>>, vector<224x32xf32>
    %c0_13 = arith.constant 0 : index
    %c0_14 = arith.constant 0 : index
    %20 = vector.load %arg4[%c0_13, %c0_14] : memref<288x64xf32, #tpu.memory_space<vmem>>, vector<32x64xf32>
    %cst_15 = arith.constant dense<0.000000e+00> : vector<224x64xf32>
    %21 = tpu.matmul %19, %20, %cst_15 {dimension_numbers = #tpu.dot_dimension_numbers<[1], [0], [0], [1], [0, 0, 1, 1], [], []>} : vector<224x32xf32>, vector<32x64xf32>, vector<224x64xf32> -> vector<224x64xf32>
    %c1 = arith.constant 1 : index
    %c0_16 = arith.constant 0 : index
    %22 = vector.load %arg7[%c1, %c0_16] : memref<264x32xf32, #tpu.memory_space<vmem>>, vector<224x32xf32>
    %c32 = arith.constant 32 : index
    %c0_17 = arith.constant 0 : index
    %23 = vector.load %arg4[%c32, %c0_17] : memref<288x64xf32, #tpu.memory_space<vmem>>, vector<32x64xf32>
    %cst_18 = arith.constant dense<0.000000e+00> : vector<224x64xf32>
    %24 = tpu.matmul %22, %23, %cst_18 {dimension_numbers = #tpu.dot_dimension_numbers<[1], [0], [0], [1], [0, 0, 1, 1], [], []>} : vector<224x32xf32>, vector<32x64xf32>, vector<224x64xf32> -> vector<224x64xf32>
    %25 = arith.addf %21, %24 : vector<224x64xf32>
    %c2 = arith.constant 2 : index
    %c0_19 = arith.constant 0 : index
    %26 = vector.load %arg7[%c2, %c0_19] : memref<264x32xf32, #tpu.memory_space<vmem>>, vector<224x32xf32>
    %c64 = arith.constant 64 : index
    %c0_20 = arith.constant 0 : index
    %27 = vector.load %arg4[%c64, %c0_20] : memref<288x64xf32, #tpu.memory_space<vmem>>, vector<32x64xf32>
    %cst_21 = arith.constant dense<0.000000e+00> : vector<224x64xf32>
    %28 = tpu.matmul %26, %27, %cst_21 {dimension_numbers = #tpu.dot_dimension_numbers<[1], [0], [0], [1], [0, 0, 1, 1], [], []>} : vector<224x32xf32>, vector<32x64xf32>, vector<224x64xf32> -> vector<224x64xf32>
    %29 = arith.addf %25, %28 : vector<224x64xf32>
    %c16 = arith.constant 16 : index
    %c0_22 = arith.constant 0 : index
    %30 = vector.load %arg7[%c16, %c0_22] : memref<264x32xf32, #tpu.memory_space<vmem>>, vector<224x32xf32>
    %c96 = arith.constant 96 : index
    %c0_23 = arith.constant 0 : index
    %31 = vector.load %arg4[%c96, %c0_23] : memref<288x64xf32, #tpu.memory_space<vmem>>, vector<32x64xf32>
    %cst_24 = arith.constant dense<0.000000e+00> : vector<224x64xf32>
    %32 = tpu.matmul %30, %31, %cst_24 {dimension_numbers = #tpu.dot_dimension_numbers<[1], [0], [0], [1], [0, 0, 1, 1], [], []>} : vector<224x32xf32>, vector<32x64xf32>, vector<224x64xf32> -> vector<224x64xf32>
    %33 = arith.addf %29, %32 : vector<224x64xf32>
    %c17 = arith.constant 17 : index
    %c0_25 = arith.constant 0 : index
    %34 = vector.load %arg7[%c17, %c0_25] : memref<264x32xf32, #tpu.memory_space<vmem>>, vector<224x32xf32>
    %c128 = arith.constant 128 : index
    %c0_26 = arith.constant 0 : index
    %35 = vector.load %arg4[%c128, %c0_26] : memref<288x64xf32, #tpu.memory_space<vmem>>, vector<32x64xf32>
    %cst_27 = arith.constant dense<0.000000e+00> : vector<224x64xf32>
    %36 = tpu.matmul %34, %35, %cst_27 {dimension_numbers = #tpu.dot_dimension_numbers<[1], [0], [0], [1], [0, 0, 1, 1], [], []>} : vector<224x32xf32>, vector<32x64xf32>, vector<224x64xf32> -> vector<224x64xf32>
    %37 = arith.addf %33, %36 : vector<224x64xf32>
    %c18 = arith.constant 18 : index
    %c0_28 = arith.constant 0 : index
    %38 = vector.load %arg7[%c18, %c0_28] : memref<264x32xf32, #tpu.memory_space<vmem>>, vector<224x32xf32>
    %c160 = arith.constant 160 : index
    %c0_29 = arith.constant 0 : index
    %39 = vector.load %arg4[%c160, %c0_29] : memref<288x64xf32, #tpu.memory_space<vmem>>, vector<32x64xf32>
    %cst_30 = arith.constant dense<0.000000e+00> : vector<224x64xf32>
    %40 = tpu.matmul %38, %39, %cst_30 {dimension_numbers = #tpu.dot_dimension_numbers<[1], [0], [0], [1], [0, 0, 1, 1], [], []>} : vector<224x32xf32>, vector<32x64xf32>, vector<224x64xf32> -> vector<224x64xf32>
    %41 = arith.addf %37, %40 : vector<224x64xf32>
    %c32_31 = arith.constant 32 : index
    %c0_32 = arith.constant 0 : index
    %42 = vector.load %arg7[%c32_31, %c0_32] : memref<264x32xf32, #tpu.memory_space<vmem>>, vector<224x32xf32>
    %c192 = arith.constant 192 : index
    %c0_33 = arith.constant 0 : index
    %43 = vector.load %arg4[%c192, %c0_33] : memref<288x64xf32, #tpu.memory_space<vmem>>, vector<32x64xf32>
    %cst_34 = arith.constant dense<0.000000e+00> : vector<224x64xf32>
    %44 = tpu.matmul %42, %43, %cst_34 {dimension_numbers = #tpu.dot_dimension_numbers<[1], [0], [0], [1], [0, 0, 1, 1], [], []>} : vector<224x32xf32>, vector<32x64xf32>, vector<224x64xf32> -> vector<224x64xf32>
    %45 = arith.addf %41, %44 : vector<224x64xf32>
    %c33 = arith.constant 33 : index
    %c0_35 = arith.constant 0 : index
    %46 = vector.load %arg7[%c33, %c0_35] : memref<264x32xf32, #tpu.memory_space<vmem>>, vector<224x32xf32>
    %c224_36 = arith.constant 224 : index
    %c0_37 = arith.constant 0 : index
    %47 = vector.load %arg4[%c224_36, %c0_37] : memref<288x64xf32, #tpu.memory_space<vmem>>, vector<32x64xf32>
    %cst_38 = arith.constant dense<0.000000e+00> : vector<224x64xf32>
    %48 = tpu.matmul %46, %47, %cst_38 {dimension_numbers = #tpu.dot_dimension_numbers<[1], [0], [0], [1], [0, 0, 1, 1], [], []>} : vector<224x32xf32>, vector<32x64xf32>, vector<224x64xf32> -> vector<224x64xf32>
    %49 = arith.addf %45, %48 : vector<224x64xf32>
    %c34 = arith.constant 34 : index
    %c0_39 = arith.constant 0 : index
    %50 = vector.load %arg7[%c34, %c0_39] : memref<264x32xf32, #tpu.memory_space<vmem>>, vector<224x32xf32>
    %c256 = arith.constant 256 : index
    %c0_40 = arith.constant 0 : index
    %51 = vector.load %arg4[%c256, %c0_40] : memref<288x64xf32, #tpu.memory_space<vmem>>, vector<32x64xf32>
    %cst_41 = arith.constant dense<0.000000e+00> : vector<224x64xf32>
    %52 = tpu.matmul %50, %51, %cst_41 {dimension_numbers = #tpu.dot_dimension_numbers<[1], [0], [0], [1], [0, 0, 1, 1], [], []>} : vector<224x32xf32>, vector<32x64xf32>, vector<224x64xf32> -> vector<224x64xf32>
    %53 = arith.addf %49, %52 : vector<224x64xf32>
    %c0_42 = arith.constant 0 : index
    %c0_43 = arith.constant 0 : index
    %54 = vector.load %arg5[%c0_42, %c0_43] : memref<1x64xf32, #tpu.memory_space<vmem>>, vector<1x64xf32>
    %55 = vector.broadcast %54 : vector<1x64xf32> to vector<224x64xf32>
    %56 = arith.addf %53, %55 : vector<224x64xf32>
    %cst_44 = arith.constant 0.000000e+00 : f32
    %57 = vector.broadcast %cst_44 : f32 to vector<224x64xf32>
    %58 = arith.maximumf %56, %57 : vector<224x64xf32>
    %c0_45 = arith.constant 0 : index
    %c0_46 = arith.constant 0 : index
    %59 = vector.load %arg8[%c0_45, %c0_46] : memref<240x64xf32, #tpu.memory_space<vmem>>, vector<224x64xf32>
    tpu.vector_store %arg8[%c0_45, %c0_46], %58 {strides = array<i32>} : memref<240x64xf32, #tpu.memory_space<vmem>>, vector<224x64xf32>,
    %cst_47 = arith.constant 0.000000e+00 : f32
    %60 = vector.broadcast %cst_47 : f32 to vector<16x64xf32>
    %c224_48 = arith.constant 224 : index
    %c0_49 = arith.constant 0 : index
    %61 = vector.load %arg8[%c224_48, %c0_49] : memref<240x64xf32, #tpu.memory_space<vmem>>, vector<16x64xf32>
    tpu.vector_store %arg8[%c224_48, %c0_49], %60 {strides = array<i32>} : memref<240x64xf32, #tpu.memory_space<vmem>>, vector<16x64xf32>,
    %c0_50 = arith.constant 0 : index
    %c0_51 = arith.constant 0 : index
    %62 = tpu.strided_load %arg8[%c0_50, %c0_51] {strides = array<i32: 2, 1>} : memref<240x64xf32, #tpu.memory_space<vmem>>, vector<112x64xf32>
    %c1_52 = arith.constant 1 : index
    %c0_53 = arith.constant 0 : index
    %63 = tpu.strided_load %arg8[%c1_52, %c0_53] {strides = array<i32: 2, 1>} : memref<240x64xf32, #tpu.memory_space<vmem>>, vector<112x64xf32>
    %c16_54 = arith.constant 16 : index
    %c0_55 = arith.constant 0 : index
    %64 = tpu.strided_load %arg8[%c16_54, %c0_55] {strides = array<i32: 2, 1>} : memref<240x64xf32, #tpu.memory_space<vmem>>, vector<112x64xf32>
    %c17_56 = arith.constant 17 : index
    %c0_57 = arith.constant 0 : index
    %65 = tpu.strided_load %arg8[%c17_56, %c0_57] {strides = array<i32: 2, 1>} : memref<240x64xf32, #tpu.memory_space<vmem>>, vector<112x64xf32>
    %66 = arith.maximumf %62, %63 : vector<112x64xf32>
    %67 = arith.maximumf %64, %65 : vector<112x64xf32>
    %68 = arith.maximumf %66, %67 : vector<112x64xf32>
    %69 = arith.truncf %68 : vector<112x64xf32> to vector<112x64xbf16>
    %c0_58 = arith.constant 0 : index
    %c0_59 = arith.constant 0 : index
    %c0_60 = arith.constant 0 : index
    %70 = vector.load %arg6[%c0_58, %c0_59, %c0_60] : memref<1x112x64xbf16, #tpu.memory_space<vmem>>, vector<1x112x64xbf16>
    %71 = vector.shape_cast %70 : vector<1x112x64xbf16> to vector<112x64xbf16>
    %72 = vector.shape_cast %69 : vector<112x64xbf16> to vector<1x112x64xbf16>
    tpu.vector_store %arg6[%c0_58, %c0_59, %c0_60], %72 {strides = array<i32>} : memref<1x112x64xbf16, #tpu.memory_space<vmem>>, vector<1x112x64xbf16>,
    return
  }
  func.func @transform_0(%arg0: i32) -> (i32, i32, i32) {
    %c0_i32 = arith.constant 0 : i32
    %c0_i32_0 = arith.constant 0 : i32
    %c0_i32_1 = arith.constant 0 : i32
    return %arg0, %c0_i32, %c0_i32_0 : i32, i32, i32
  }
  func.func @transform_1(%arg0: i32) -> (i32, i32) {
    %c0_i32 = arith.constant 0 : i32
    %c0_i32_0 = arith.constant 0 : i32
    %c0_i32_1 = arith.constant 0 : i32
    return %c0_i32, %c0_i32_0 : i32, i32
  }
  func.func @transform_2(%arg0: i32) -> (i32, i32) {
    %c0_i32 = arith.constant 0 : i32
    %c0_i32_0 = arith.constant 0 : i32
    %c0_i32_1 = arith.constant 0 : i32
    return %c0_i32, %c0_i32_0 : i32, i32
  }
  func.func @transform_3(%arg0: i32) -> (i32, i32) {
    %c0_i32 = arith.constant 0 : i32
    %c0_i32_0 = arith.constant 0 : i32
    %c0_i32_1 = arith.constant 0 : i32
    return %c0_i32, %c0_i32_0 : i32, i32
  }
  func.func @transform_4(%arg0: i32) -> (i32, i32) {
    %c0_i32 = arith.constant 0 : i32
    %c0_i32_0 = arith.constant 0 : i32
    %c0_i32_1 = arith.constant 0 : i32
    return %c0_i32, %c0_i32_0 : i32, i32
  }
  func.func @transform_5(%arg0: i32) -> (i32, i32, i32) {
    %c0_i32 = arith.constant 0 : i32
    %c0_i32_0 = arith.constant 0 : i32
    %c0_i32_1 = arith.constant 0 : i32
    return %arg0, %c0_i32, %c0_i32_0 : i32, i32, i32
  }
}

module attributes {stable_mosaic.version = 11 : i64} {
  func.func @kernel(%arg0: i32, %arg1: memref<8x7168xbf16, #tpu.memory_space<vmem>>, %arg2: memref<7168x128xbf16, #tpu.memory_space<vmem>>, %arg3: memref<1x128xf32, #tpu.memory_space<vmem>>, %arg4: memref<8x128xf32, #tpu.memory_space<vmem>>) attributes {dimension_semantics = [#tpu.dimension_semantics<parallel>], iteration_bounds = array<i64: 2>, scalar_prefetch = 0 : i64, scratch_operands = 0 : i64, tpu.core_type = #tpu.core_type<tc>, window_params = [{transform_indices = @transform_0, window_bounds = array<i64: 8, 7168>}, {pipeline_mode = #tpu.pipeline_mode<synchronous>, transform_indices = @transform_1, window_bounds = array<i64: 7168, 128>}, {pipeline_mode = #tpu.pipeline_mode<synchronous>, transform_indices = @transform_2, window_bounds = array<i64: 1, 128>}, {transform_indices = @transform_3, window_bounds = array<i64: 8, 128>}]} {
    %c0 = arith.constant 0 : index
    %c0_0 = arith.constant 0 : index
    %0 = vector.load %arg1[%c0, %c0_0] : memref<8x7168xbf16, #tpu.memory_space<vmem>>, vector<8x7168xbf16>
    %c0_1 = arith.constant 0 : index
    %c0_2 = arith.constant 0 : index
    %1 = vector.load %arg2[%c0_1, %c0_2] : memref<7168x128xbf16, #tpu.memory_space<vmem>>, vector<7168x128xbf16>
    %cst = arith.constant dense<0.000000e+00> : vector<8x128xf32>
    %2 = tpu.matmul %0, %1, %cst {dimension_numbers = #tpu.dot_dimension_numbers<[1], [0], [0], [1], [0, 0, 1, 1], [], []>} : vector<8x7168xbf16>, vector<7168x128xbf16>, vector<8x128xf32> -> vector<8x128xf32>
    %c0_3 = arith.constant 0 : index
    %c0_4 = arith.constant 0 : index
    %3 = vector.load %arg3[%c0_3, %c0_4] : memref<1x128xf32, #tpu.memory_space<vmem>>, vector<1x128xf32>
    %4 = vector.broadcast %3 : vector<1x128xf32> to vector<8x128xf32>
    %5 = arith.addf %2, %4 : vector<8x128xf32>
    %c0_5 = arith.constant 0 : index
    %c0_6 = arith.constant 0 : index
    %6 = vector.load %arg4[%c0_5, %c0_6] : memref<8x128xf32, #tpu.memory_space<vmem>>, vector<8x128xf32>
    tpu.vector_store %arg4[%c0_5, %c0_6], %5 {strides = array<i32>} : memref<8x128xf32, #tpu.memory_space<vmem>>, vector<8x128xf32>,
    return
  }
  func.func @transform_0(%arg0: i32) -> (i32, i32) {
    %c0_i32 = arith.constant 0 : i32
    %c0_i32_0 = arith.constant 0 : i32
    return %arg0, %c0_i32 : i32, i32
  }
  func.func @transform_1(%arg0: i32) -> (i32, i32) {
    %c0_i32 = arith.constant 0 : i32
    %c0_i32_0 = arith.constant 0 : i32
    %c0_i32_1 = arith.constant 0 : i32
    return %c0_i32, %c0_i32_0 : i32, i32
  }
  func.func @transform_2(%arg0: i32) -> (i32, i32) {
    %c0_i32 = arith.constant 0 : i32
    %c0_i32_0 = arith.constant 0 : i32
    %c0_i32_1 = arith.constant 0 : i32
    return %c0_i32, %c0_i32_0 : i32, i32
  }
  func.func @transform_3(%arg0: i32) -> (i32, i32) {
    %c0_i32 = arith.constant 0 : i32
    %c0_i32_0 = arith.constant 0 : i32
    return %arg0, %c0_i32 : i32, i32
  }
}

</mosaic_0001>

<bundles_post_ra>
// kernel: fashion_cnn_forward.2
= control target key start
LH: loop header
LB: loop body
LE: loop exit
PB: predicated region body
PF: predicated region fallthrough
CT: control target
= control target key end

     0   :  { %s5757_s18 = smov 0   ;;  %s7142_s0 = inlined_call_operand.vmem [shape: bf16[2,224,36], index: 0, kind: input, shape index: {}]   ;;  %s7143_s1 = inlined_call_operand.vmem [shape: bf16[36,128], index: 1, kind: input, shape index: {}]   ;;  %s7144_s2 = inlined_call_operand.vmem [shape: f32[1,128], index: 2, kind: input, shape index: {}]   ;;  %s7145_s3 = inlined_call_operand.vmem [shape: f32[288,64], index: 3, kind: input, shape index: {}]   ;;  %s7146_s4 = inlined_call_operand.vmem [shape: f32[1,64], index: 4, kind: input, shape index: {}]   ;;  %s7147_s5 = inlined_call_operand.vmem [shape: bf16[2,112,64], index: 5, kind: output, shape index: {}]  }
   0x1 LB: > { %s4278_s19 = sadd.s32 4294967295, %s5722_s18   ;;  %p4282_p0 = scmp.ge.s32.totalorder %s5722_s18, 1  ;;  %s5722_s18 = sphi %s5757_s18, %s15_s18  }
   0x2   : > { %p187_p1 = scmp.lt.s32.totalorder %s5722_s18, 3 }
   0x4   : > { %p188_p2 = pnand %p4282_p0, %p187_p1 }
   0x6   : > { %191 = sbr.rel (%p188_p2) target bundleno = 1004 (0x3ec), region = 40 }
   0xd   : > { %v5699_v0 = vld [vmem:[%s7143_s1] sm:$0xff]   ;;  %v5700_v1 = vld [vmem:[%s7143_s1 + $0x8] sm:$0xff]   ;;  %p215_p3 = scmp.lt.s32.totalorder %s4278_s19, 1  ;;  %v5701_v2 = vld [vmem:[%s7143_s1 + $0x10] ss:$0 sps:$4 sm:$0x33]  }
   0xe   : > { %4905 = vmatprep.subr.bf16.mxu0 %v5699_v0  ;;  %vm394_vm0 = vcmask 1041408   ;;  %vm351_vm1 = vcmask 293888   ;;  %v5813_v18 = vld [vmem:[%s7144_s2] ss:$0 sm:$0xff]  ;;  %s5724_s7 = smov 96   ;;  %s5725_s16 = smov 64  }
   0xf   : > { %4906 = vmatpush3.bf16.msra.mxu0 %v5699_v0  ;;  %s7236_s19 = smov (!%p215_p3, %s4278_s19), 1  ;;  %v396_v3 = vsel %vm394_vm0, %v5701_v2, 0  ;;  %vm851_vm2 = vcmask 261120   ;;  %vm4033_vm3 = vcmask 523264   ;;  %vm4208_vm4 = vcmask 519168  }
  0x10   : > { %4907 = vmatprep.subr.bf16.mxu0 %v5700_v1  ;;  %s5686_s26 = smul.u32 112, %s7236_s19 }
  0x11   : > { %s5687_s14 = smul.u32 56, %s7236_s19 }
  0x12   : > { %s5780_s29 = scalar_lea.vmem %s7142_s0, %s5686_s26 }
  0x13   : > { %4908 = vmatpush3.bf16.msra.mxu0 %v5700_v1  ;;  %v5702_v4 = vld [vmem:[%s5780_s29] sm:$0xff]   ;;  %v5703_v5 = vld [vmem:[%s5780_s29 + $0x8] sm:$0xff]   ;;  %v5704_v6 = vld [vmem:[%s5780_s29 + $0x10] sm:$0xff]  }
  0x14   : > { %5685 = vmatprep.subr.msk.bf16.mxu0 %vm394_vm0, %v5701_v2  ;;  %4911 = vmatprep.mubr.msk.bf16.mxu0 %vm351_vm1, %v5702_v4  ;;  %v5705_v7 = vld [vmem:[%s5780_s29 + $0x18] sm:$0xff]   ;;  %v5706_v8 = vld [vmem:[%s5780_s29 + $0x20] sm:$0xff]   ;;  %v5707_v9 = vld [vmem:[%s5780_s29 + $0x28] sm:$0xff]  }
  0x15   : > { %v5708_v10 = vld [vmem:[%s5780_s29 + $0x30] sm:$0xff]   ;;  %v5709_v11 = vld [vmem:[%s5780_s29 + $0x38] sm:$0xff]   ;;  %v5710_v12 = vld [vmem:[%s5780_s29 + $0x40] sm:$0xff]  }
  0x16   : > { %v5711_v13 = vld [vmem:[%s5780_s29 + $0x48] sm:$0xff]   ;;  %v5712_v14 = vld [vmem:[%s5780_s29 + $0x50] sm:$0xff]   ;;  %v5713_v15 = vld [vmem:[%s5780_s29 + $0x58] sm:$0xff]  }
  0x17   : > { %4910 = vmatpush3.bf16.msra.mxu0 %v396_v3  ;;  %v5714_v16 = vld [vmem:[%s5780_s29 + $0x60] sm:$0xff]   ;;  %v5715_v17 = vld [vmem:[%s5780_s29 + $0x68] sm:$0xff]  }
  0x1a   : > { %4912 = vmatmul.mubr.msk.bf16.vlgmr.msra.gmra.mrb[0].mxu0 %vm351_vm1, %v5703_v5 }
  0x1b   : > { %4915 = vmatprep.mubr.msk.bf16.mxu0 %vm351_vm1, %v5704_v6 }
  0x22   : > { %4916 = vmatmul.mubr.msk.bf16.gmra.mrb[4].mxu0 %vm351_vm1, %v5705_v7 }
  0x23   : > { %4919 = vmatprep.mubr.msk.bf16.mxu0 %vm351_vm1, %v5706_v8 }
  0x2a   : > { %4920 = vmatmul.mubr.msk.bf16.gmra.mrb[8].mxu0 %vm351_vm1, %v5707_v9 }
  0x2b   : > { %4923 = vmatprep.mubr.msk.bf16.mxu0 %vm351_vm1, %v5708_v10 }
  0x32   : > { %4924 = vmatmul.mubr.msk.bf16.gmra.mrb[12].mxu0 %vm351_vm1, %v5709_v11 }
  0x33   : > { %4927 = vmatprep.mubr.msk.bf16.mxu0 %vm351_vm1, %v5710_v12 }
  0x3a   : > { %4928 = vmatmul.mubr.msk.bf16.gmra.mrb[16].mxu0 %vm351_vm1, %v5711_v13 }
  0x3b   : > { %4931 = vmatprep.mubr.msk.bf16.mxu0 %vm351_vm1, %v5712_v14 }
  0x42   : > { %4932 = vmatmul.mubr.msk.bf16.gmra.mrb[20].mxu0 %vm351_vm1, %v5713_v15 }
  0x43   : > { %4935 = vmatprep.mubr.msk.bf16.mxu0 %vm351_vm1, %v5714_v16 }
  0x4a   : > { %4936 = vmatmul.mubr.msk.bf16.gmra.mrb[24].mxu0 %vm351_vm1, %v5715_v17 }
  0xed   : > { %v4913_v19 = vpop.f32.mrb[0].mxu0 }
  0xee   : > { %v5816_v20 = vadd.f32 %v4913_v19, %v5813_v18  ;;  %v5818_v21 = vpop.f32.mrb[1].mxu0 }
  0xef   : > { %v4914_v22 = vpop.f32.mrb[2].mxu0 }
  0xf0   : > { %v545_v23 = vmax.f32 %v5816_v20, 0.0  ;;  %v5822_v24 = vadd.f32 %v4914_v22, %v5813_v18  ;;  %v5824_v25 = vpop.f32.mrb[3].mxu0 }
  0xf2   : > { %603 = vrot.lane.b32.xlu0 %v545_v23, %s5724_s7  ;;  %v546_v26 = vmax.f32 %v5822_v24, 0.0  ;;  %v2602_v24 = vld [vmem:[%s7145_s3 + $0xa0] sm:$0xff] }
  0xf5   : > { %v4917_v27 = vpop.f32.mrb[4].mxu0 }
  0xf6   : > { %v5831_v28 = vadd.f32 %v4917_v27, %v5813_v18  ;;  %605 = vrot.lane.b32.xlu0 %v546_v26, %s5724_s7  ;;  %v448_v29 = vpop.f32.mrb[5].mxu0 }
  0xf7   : > { %v5837_v30 = vadd.f32 %v5813_v18, %v448_v29  ;;  %v4918_v31 = vpop.f32.mrb[6].mxu0 }
  0xf8   : > { %v549_v32 = vmax.f32 %v5831_v28, 0.0  ;;  %v451_v33 = vpop.f32.mrb[7].mxu0  ;;  %v5851_v36 = vadd.f32 %v4918_v31, %v5813_v18 }
  0xf9   : > { %v547_v34 = vmax.f32 %v5837_v30, 0.0  ;;  %v5842_v35 = vadd.f32 %v5813_v18, %v451_v33 }
  0xfa   : > { %611 = vrot.lane.b32.xlu0 %v549_v32, %s5724_s7  ;;  %v550_v43 = vmax.f32 %v5851_v36, 0.0 }
  0xfb   : > { %607 = vrot.lane.b32.xlu1 %v547_v34, %s5724_s7  ;;  %v548_v37 = vmax.f32 %v5842_v35, 0.0 }
  0xfd   : > { %v4921_v38 = vpop.f32.mrb[8].mxu0 }
  0xfe   : > { %v464_v39 = vpop.f32.mrb[9].mxu0  ;;  %v5862_v44 = vadd.f32 %v4921_v38, %v5813_v18 }
  0xff   : > { %v5855_v40 = vadd.f32 %v5813_v18, %v464_v39  ;;  %v4922_v41 = vpop.f32.mrb[10].mxu0  ;;  %609 = vrot.lane.b32.xlu1 %v548_v37, %s5724_s7 }
 0x100   : > { %v467_v42 = vpop.f32.mrb[11].mxu0  ;;  %v553_v47 = vmax.f32 %v5862_v44, 0.0  ;;  %v5876_v48 = vadd.f32 %v4922_v41, %v5813_v18 }
 0x101   : > { %v551_v45 = vmax.f32 %v5855_v40, 0.0  ;;  %v5866_v46 = vadd.f32 %v5813_v18, %v467_v42 }
 0x102   : > { %v554_v55 = vmax.f32 %v5876_v48, 0.0 }
 0x103   : > { %615 = vrot.lane.b32.xlu0 %v551_v45, %s5724_s7  ;;  %613 = vrot.lane.b32.xlu1 %v550_v43, %s5724_s7  ;;  %v552_v49 = vmax.f32 %v5866_v46, 0.0 }
 0x105   : > { %v4925_v50 = vpop.f32.mrb[12].mxu0 }
 0x106   : > { %v480_v51 = vpop.f32.mrb[13].mxu0  ;;  %v5890_v56 = vadd.f32 %v4925_v50, %v5813_v18 }
 0x107   : > { %v5880_v52 = vadd.f32 %v5813_v18, %v480_v51  ;;  %v4926_v53 = vpop.f32.mrb[14].mxu0  ;;  %619 = vrot.lane.b32.xlu0 %v553_v47, %s5724_s7  ;;  %617 = vrot.lane.b32.xlu1 %v552_v49, %s5724_s7 }
 0x108   : > { %v483_v54 = vpop.f32.mrb[15].mxu0  ;;  %v557_v59 = vmax.f32 %v5890_v56, 0.0  ;;  %v5904_v60 = vadd.f32 %v4926_v53, %v5813_v18 }
 0x109   : > { %v555_v57 = vmax.f32 %v5880_v52, 0.0  ;;  %v5894_v58 = vadd.f32 %v5813_v18, %v483_v54  ;;  %v5988_v54 = vadd.f32 %v5813_v18, %v5818_v21  ;;  %v6004_v21 = vadd.f32 %v5813_v18, %v5824_v25  ;;  %v2254_v25 = vld [vmem:[%s7145_s3 + $0x88] sm:$0xff] }
 0x10a   : > { %v558_v3 = vmax.f32 %v5904_v60, 0.0 }
 0x10b   : > { %623 = vrot.lane.b32.xlu0 %v555_v57, %s5724_s7  ;;  %621 = vrot.lane.b32.xlu1 %v554_v55, %s5724_s7  ;;  %v556_v61 = vmax.f32 %v5894_v58, 0.0 }
 0x10d   : > { %v4929_v62 = vpop.f32.mrb[16].mxu0 }
 0x10e   : > { %v496_v63 = vpop.f32.mrb[17].mxu0  ;;  %v5918_v4 = vadd.f32 %v4929_v62, %v5813_v18 }
 0x10f   : > { %v5908_v0 = vadd.f32 %v5813_v18, %v496_v63  ;;  %v4930_v1 = vpop.f32.mrb[18].mxu0  ;;  %627 = vrot.lane.b32.xlu0 %v557_v59, %s5724_s7  ;;  %625 = vrot.lane.b32.xlu1 %v556_v61, %s5724_s7 }
 0x110   : > { %v499_v2 = vpop.f32.mrb[19].mxu0  ;;  %v561_v7 = vmax.f32 %v5918_v4, 0.0  ;;  %v5932_v8 = vadd.f32 %v4930_v1, %v5813_v18 }
 0x111   : > { %v559_v5 = vmax.f32 %v5908_v0, 0.0  ;;  %v5922_v6 = vadd.f32 %v5813_v18, %v499_v2  ;;  %v543_v2 = vmax.f32 %v5988_v54, 0.0  ;;  %v948_v0 = vld [vmem:[%s7145_s3 + $0x38] sm:$0xff]  ;;  %v913_v54 = vld [vmem:[%s7145_s3] sm:$0xff] }
 0x112   : > { %v562_v15 = vmax.f32 %v5932_v8, 0.0 }
 0x113   : > { %631 = vrot.lane.b32.xlu0 %v559_v5, %s5724_s7  ;;  %629 = vrot.lane.b32.xlu1 %v558_v3, %s5724_s7  ;;  %v560_v9 = vmax.f32 %v5922_v6, 0.0 }
 0x115   : > { %v4933_v10 = vpop.f32.mrb[20].mxu0 }
 0x116   : > { %v512_v11 = vpop.f32.mrb[21].mxu0  ;;  %v5946_v16 = vadd.f32 %v4933_v10, %v5813_v18 }
 0x117   : > { %v5936_v12 = vadd.f32 %v5813_v18, %v512_v11  ;;  %v4934_v13 = vpop.f32.mrb[22].mxu0  ;;  %635 = vrot.lane.b32.xlu0 %v561_v7, %s5724_s7  ;;  %633 = vrot.lane.b32.xlu1 %v560_v9, %s5724_s7  ;;  %v544_v11 = vmax.f32 %v6004_v21, 0.0 }
 0x118   : > { %v515_v14 = vpop.f32.mrb[23].mxu0  ;;  %v565_v22 = vmax.f32 %v5946_v16, 0.0  ;;  %v5960_v27 = vadd.f32 %v4934_v13, %v5813_v18 }
 0x119   : > { %v563_v17 = vmax.f32 %v5936_v12, 0.0  ;;  %v5950_v19 = vadd.f32 %v5813_v18, %v515_v14 }
 0x11a   : > { %v566_v42 = vmax.f32 %v5960_v27, 0.0 }
 0x11b   : > { %639 = vrot.lane.b32.xlu0 %v563_v17, %s5724_s7  ;;  %637 = vrot.lane.b32.xlu1 %v562_v15, %s5724_s7  ;;  %v564_v29 = vmax.f32 %v5950_v19, 0.0 }
 0x11d   : > { %v4937_v31 = vpop.f32.mrb[24].mxu0 }
 0x11e   : > { %v528_v33 = vpop.f32.mrb[25].mxu0  ;;  %v5974_v50 = vadd.f32 %v4937_v31, %v5813_v18 }
 0x11f   : > { %v5964_v38 = vadd.f32 %v5813_v18, %v528_v33  ;;  %v4938_v39 = vpop.f32.mrb[26].mxu0  ;;  %643 = vrot.lane.b32.xlu0 %v565_v22, %s5724_s7  ;;  %641 = vrot.lane.b32.xlu1 %v564_v29, %s5724_s7  ;;  %v2255_v33 = vld [vmem:[%s7145_s3 + $0x90] sm:$0xff] }
 0x120   : > { %v531_v41 = vpop.f32.mrb[27].mxu0  ;;  %v569_v62 = vmax.f32 %v5974_v50, 0.0  ;;  %v5992_v63 = vadd.f32 %v4938_v39, %v5813_v18  ;;  %v2256_v39 = vld [vmem:[%s7145_s3 + $0x98] sm:$0xff] }
 0x121   : > { %v567_v51 = vmax.f32 %v5964_v38, 0.0  ;;  %v5978_v53 = vadd.f32 %v5813_v18, %v531_v41  ;;  %v2253_v18 = vld [vmem:[%s7145_s3 + $0x80] sm:$0xff]  ;;  %v5425_v41 = vpack.c.bf16 %v2256_v39, %v2255_v33  ;;  %v2603_v33 = vld [vmem:[%s7145_s3 + $0xa8] sm:$0xff] }
 0x122   : > { %v570_v10 = vmax.f32 %v5992_v63, 0.0  ;;  %v5421_v13 = vpack.c.bf16 %v2254_v25, %v2253_v18  ;;  %v945_v25 = vld [vmem:[%s7145_s3 + $0x20] sm:$0xff]  ;;  %v914_v63 = vld [vmem:[%s7145_s3 + $0x8] sm:$0xff] }
 0x123   : > { %647 = vrot.lane.b32.xlu0 %v567_v51, %s5724_s7  ;;  %645 = vrot.lane.b32.xlu1 %v566_v42, %s5724_s7  ;;  %v568_v1 = vmax.f32 %v5978_v53, 0.0 }
 0x124   : > { %5422 = vmatprep.subr.bf16.mxu1 %v5421_v13 }
 0x125   : > { %5424 = vmatpush3.bf16.msra.mxu1 %v5421_v13  ;;  %v946_v13 = vld [vmem:[%s7145_s3 + $0x28] sm:$0xff] }
 0x126   : > { %5426 = vmatprep.subr.bf16.mxu1 %v5425_v41 }
 0x127   : > { %651 = vrot.lane.b32.xlu0 %v569_v62, %s5724_s7  ;;  %649 = vrot.lane.b32.xlu1 %v568_v1, %s5724_s7 }
 0x129   : > { %5428 = vmatpush3.bf16.msra.mxu1 %v5425_v41  ;;  %v6057_v41 = vpack.c.bf16 %v2603_v33, %v2602_v24 }
 0x12b   : > { %653 = vrot.lane.b32.xlu1 %v570_v10, %s5724_s7  ;;  %599 = vrot.lane.b32.xlu0 %v543_v2, %s5724_s7 }
 0x12c   : > { %5430 = vmatprep.subr.bf16.mxu1 %v6057_v41 }
 0x12f   : > { %601 = vrot.lane.b32.xlu1 %v544_v11, %s5724_s7 }
 0x164   : > { %v604_v14 = vpop.permute.xlu0 %603 }
 0x165   : > { %v6025_v31 = vmax.f32 %v545_v23, %v604_v14  ;;  %v5389_v14 = vpack.c.bf16 %v946_v13, %v945_v25 }
 0x167   : > { %743 = vrot.lane.b32.xlu0 %v6025_v31, %s5725_s16  ;;  %5390 = vmatprep.subr.bf16.mxu0 %v5389_v14 }
 0x168   : > { %v606_v18 = vpop.permute.xlu0 %605  ;;  %5392 = vmatpush3.bf16.msra.mxu0 %v5389_v14 }
 0x169   : > { %v6037_v20 = vmax.f32 %v546_v26, %v606_v18 }
 0x16b   : > { %745 = vrot.lane.b32.xlu1 %v6037_v20, %s5725_s16 }
 0x16c   : > { %v612_v39 = vpop.permute.xlu0 %611 }
 0x16d   : > { %v608_v23 = vpop.permute.xlu1 %607  ;;  %v6064_v30 = vmax.f32 %v549_v32, %v612_v39 }
 0x16e   : > { %v6052_v26 = vmax.f32 %v547_v34, %v608_v23 }
 0x170   : > { %747 = vrot.lane.b32.xlu0 %v6052_v26, %s5725_s16 }
 0x171   : > { %v610_v18 = vpop.permute.xlu1 %609 }
 0x172   : > { %v6068_v34 = vmax.f32 %v548_v37, %v610_v18 }
 0x174   : > { %749 = vrot.lane.b32.xlu1 %v6068_v34, %s5725_s16  ;;  %751 = vrot.lane.b32.xlu0 %v6064_v30, %s5725_s16 }
 0x175   : > { %v616_v23 = vpop.permute.xlu0 %615  ;;  %v614_v25 = vpop.permute.xlu1 %613 }
 0x176   : > { %v6076_v13 = vmax.f32 %v551_v45, %v616_v23  ;;  %v6080_v28 = vmax.f32 %v550_v43, %v614_v25 }
 0x178   : > { %753 = vrot.lane.b32.xlu1 %v6080_v28, %s5725_s16  ;;  %755 = vrot.lane.b32.xlu0 %v6076_v13, %s5725_s16 }
 0x179   : > { %v620_v32 = vpop.permute.xlu0 %619  ;;  %v618_v35 = vpop.permute.xlu1 %617 }
 0x17a   : > { %v6088_v37 = vmax.f32 %v553_v47, %v620_v32  ;;  %v6092_v40 = vmax.f32 %v552_v49, %v618_v35 }
 0x17c   : > { %757 = vrot.lane.b32.xlu1 %v6092_v40, %s5725_s16  ;;  %759 = vrot.lane.b32.xlu0 %v6088_v37, %s5725_s16 }
 0x17d   : > { %v624_v36 = vpop.permute.xlu0 %623  ;;  %v622_v43 = vpop.permute.xlu1 %621 }
 0x17e   : > { %v6100_v45 = vmax.f32 %v555_v57, %v624_v36  ;;  %v6104_v44 = vmax.f32 %v554_v55, %v622_v43 }
 0x180   : > { %761 = vrot.lane.b32.xlu1 %v6104_v44, %s5725_s16  ;;  %763 = vrot.lane.b32.xlu0 %v6100_v45, %s5725_s16 }
 0x181   : > { %v628_v46 = vpop.permute.xlu0 %627  ;;  %v626_v47 = vpop.permute.xlu1 %625 }
 0x182   : > { %v6112_v49 = vmax.f32 %v557_v59, %v628_v46  ;;  %v6116_v52 = vmax.f32 %v556_v61, %v626_v47  ;;  %v947_v61 = vld [vmem:[%s7145_s3 + $0x30] sm:$0xff] }
 0x184   : > { %765 = vrot.lane.b32.xlu1 %v6116_v52, %s5725_s16  ;;  %767 = vrot.lane.b32.xlu0 %v6112_v49, %s5725_s16 }
 0x185   : > { %v632_v48 = vpop.permute.xlu0 %631  ;;  %v630_v55 = vpop.permute.xlu1 %629 }
 0x186   : > { %v6124_v57 = vmax.f32 %v559_v5, %v632_v48  ;;  %v6128_v56 = vmax.f32 %v558_v3, %v630_v55  ;;  %v5393_v5 = vpack.c.bf16 %v948_v0, %v947_v61  ;;  %v2951_v55 = vld [vmem:[%s7145_s3 + $0xc0] sm:$0xff] }
 0x188   : > { %769 = vrot.lane.b32.xlu1 %v6128_v56, %s5725_s16  ;;  %771 = vrot.lane.b32.xlu0 %v6124_v57, %s5725_s16 }
 0x189   : > { %v636_v58 = vpop.permute.xlu0 %635  ;;  %v634_v59 = vpop.permute.xlu1 %633  ;;  %5394 = vmatprep.subr.bf16.mxu0 %v5393_v5 }
 0x18a   : > { %v6142_v60 = vmax.f32 %v561_v7, %v636_v58  ;;  %v6146_v3 = vmax.f32 %v560_v9, %v634_v59  ;;  %5396 = vmatpush3.bf16.msra.mxu0 %v5393_v5 }
 0x18c   : > { %773 = vrot.lane.b32.xlu1 %v6146_v3, %s5725_s16  ;;  %775 = vrot.lane.b32.xlu0 %v6142_v60, %s5725_s16 }
 0x18d   : > { %v640_v24 = vpop.permute.xlu0 %639  ;;  %v638_v14 = vpop.permute.xlu1 %637 }
 0x18e   : > { %v6154_v33 = vmax.f32 %v563_v17, %v640_v24  ;;  %v6158_v4 = vmax.f32 %v562_v15, %v638_v14  ;;  %v5726_v17 = vmov 0.0  }
 0x18f   : > { %880 = vst.msk [vmem:[#allocation2 + $0xe0] sm:$0xff] %vm851_vm2, %v5726_v17  ;;  %881 = vst.msk [vmem:[#allocation2 + $0xe8] sm:$0xff] %vm851_vm2, %v5726_v17 }
 0x190   : > { %777 = vrot.lane.b32.xlu1 %v6158_v4, %s5725_s16  ;;  %779 = vrot.lane.b32.xlu0 %v6154_v33, %s5725_s16  ;;  %882 = vst.msk [vmem:[#allocation2 + $0xf0] sm:$0xff] %vm851_vm2, %v5726_v17  ;;  %883 = vst.msk [vmem:[#allocation2 + $0xf8] sm:$0xff] %vm851_vm2, %v5726_v17 }
 0x191   : > { %v644_v6 = vpop.permute.xlu0 %643  ;;  %v642_v7 = vpop.permute.xlu1 %641  ;;  %884 = vst.msk [vmem:[#allocation2 + $0x100] sm:$0xff] %vm851_vm2, %v5726_v17 }
 0x192   : > { %v6166_v9 = vmax.f32 %v565_v22, %v644_v6  ;;  %v6170_v12 = vmax.f32 %v564_v29, %v642_v7  ;;  %4062 = vst.msk [vmem:[#allocation3 + $0xe0] sm:$0xff] %vm4033_vm3, %v5726_v17  ;;  %4063 = vst.msk [vmem:[#allocation3 + $0xe8] sm:$0xff] %vm4033_vm3, %v5726_v17 }
 0x194   : > { %781 = vrot.lane.b32.xlu1 %v6170_v12, %s5725_s16  ;;  %783 = vrot.lane.b32.xlu0 %v6166_v9, %s5725_s16 }
 0x195   : > { %v648_v8 = vpop.permute.xlu0 %647  ;;  %v646_v15 = vpop.permute.xlu1 %645 }
 0x196   : > { %v6183_v16 = vmax.f32 %v567_v51, %v648_v8  ;;  %v6187_v19 = vmax.f32 %v566_v42, %v646_v15 }
 0x198   : > { %785 = vrot.lane.b32.xlu1 %v6187_v19, %s5725_s16  ;;  %787 = vrot.lane.b32.xlu0 %v6183_v16, %s5725_s16 }
 0x199   : > { %v652_v22 = vpop.permute.xlu0 %651  ;;  %v650_v29 = vpop.permute.xlu1 %649 }
 0x19a   : > { %v6195_v39 = vmax.f32 %v569_v62, %v652_v22  ;;  %v6199_v38 = vmax.f32 %v568_v1, %v650_v29  ;;  %v6231_v1 = vpack.c.bf16 %v914_v63, %v913_v54 }
 0x19c   : > { %789 = vrot.lane.b32.xlu1 %v6199_v38, %s5725_s16  ;;  %791 = vrot.lane.b32.xlu0 %v6195_v39, %s5725_s16 }
 0x19d   : > { %v654_v27 = vpop.permute.xlu1 %653  ;;  %v600_v42 = vpop.permute.xlu0 %599  ;;  %5398 = vmatprep.subr.bf16.mxu0 %v6231_v1 }
 0x19e   : > { %v6207_v51 = vmax.f32 %v570_v10, %v654_v27  ;;  %v6211_v50 = vmax.f32 %v543_v2, %v600_v42 }
 0x1a0   : > { %793 = vrot.lane.b32.xlu1 %v6207_v51, %s5725_s16  ;;  %739 = vrot.lane.b32.xlu0 %v6211_v50, %s5725_s16 }
 0x1a1   : > { %v602_v53 = vpop.permute.xlu1 %601 }
 0x1a2   : > { %v6221_v62 = vmax.f32 %v544_v11, %v602_v53 }
 0x1a4   : > { %741 = vrot.lane.b32.xlu1 %v6221_v62, %s5725_s16  ;;  %s7071_s16 = scalar_lea.vmem %s7147_s5, %s5687_s14 }
 0x1d9   : > { %v744_v2 = vpop.permute.xlu0 %743 }
 0x1da   : > { %v825_v21 = vmax.f32 %v6025_v31, %v744_v2  ;;  %v2604_v31 = vld [vmem:[%s7145_s3 + $0xb0] sm:$0xff] }
 0x1dc   : > { %854 = vst.msk [vmem:[#allocation2 + $0x10] sm:$0xff] %vm851_vm2, %v825_v21 }
 0x1dd   : > { %v746_v10 = vpop.permute.xlu1 %745 }
 0x1de   : > { %v826_v11 = vmax.f32 %v6037_v20, %v746_v10  ;;  %v2605_v20 = vld [vmem:[%s7145_s3 + $0xb8] sm:$0xff] }
 0x1df   : > { %v5433_v47 = vpack.c.bf16 %v2605_v20, %v2604_v31 }
 0x1e0   : > { %855 = vst.msk [vmem:[#allocation2 + $0x18] sm:$0xff] %vm851_vm2, %v826_v11 }
 0x1e2   : > { %v748_v18 = vpop.permute.xlu0 %747 }
 0x1e3   : > { %v827_v23 = vmax.f32 %v6052_v26, %v748_v18 }
 0x1e5   : > { %856 = vst.msk [vmem:[#allocation2 + $0x20] sm:$0xff] %vm851_vm2, %v827_v23 }
 0x1e6   : > { %v750_v25 = vpop.permute.xlu1 %749  ;;  %v752_v32 = vpop.permute.xlu0 %751 }
 0x1e7   : > { %v828_v35 = vmax.f32 %v6068_v34, %v750_v25  ;;  %v829_v36 = vmax.f32 %v6064_v30, %v752_v32  ;;  %v6242_v43 = vld [vmem:[#allocation2 + $0x11] sm:$0xff] }
 0x1e8   : > { %5147 = vmatprep.mubr.msk.f32.mxu1 %vm851_vm2, %v6242_v43 }
 0x1e9   : > { %857 = vst.msk [vmem:[#allocation2 + $0x28] sm:$0xff] %vm851_vm2, %v828_v35  ;;  %858 = vst.msk [vmem:[#allocation2 + $0x30] sm:$0xff] %vm851_vm2, %v829_v36 }
 0x1ea   : > { %v754_v26 = vpop.permute.xlu1 %753  ;;  %v756_v34 = vpop.permute.xlu0 %755 }
 0x1eb   : > { %v830_v30 = vmax.f32 %v6080_v28, %v754_v26  ;;  %v831_v46 = vmax.f32 %v6076_v13, %v756_v34  ;;  %v2952_v28 = vld [vmem:[%s7145_s3 + $0xc8] sm:$0xff] }
 0x1ec   : > { %v6256_v48 = vld [vmem:[#allocation2 + $0x19] sm:$0xff]  ;;  %v6275_v24 = vpack.c.bf16 %v2952_v28, %v2951_v55 }
 0x1ed   : > { %859 = vst.msk [vmem:[#allocation2 + $0x38] sm:$0xff] %vm851_vm2, %v830_v30  ;;  %860 = vst.msk [vmem:[#allocation2 + $0x40] sm:$0xff] %vm851_vm2, %v831_v46  ;;  %5148 = vmatmul.mubr.msk.f32.vlgmr.msra.gmra.mrb[0].mxu1 %vm851_vm2, %v6256_v48 }
 0x1ee   : > { %v758_v58 = vpop.permute.xlu1 %757  ;;  %5432 = vmatpush3.bf16.msra.mxu1 %v6057_v41  ;;  %v760_v13 = vpop.permute.xlu0 %759 }
 0x1ef   : > { %v832_v59 = vmax.f32 %v6092_v40, %v758_v58  ;;  %v833_v61 = vmax.f32 %v6088_v37, %v760_v13  ;;  %5434 = vmatprep.subr.bf16.mxu1 %v5433_v47 }
 0x1f0   : > { %v6271_v0 = vld [vmem:[#allocation2 + $0x21] sm:$0xff]  ;;  %v6273_v5 = vld [vmem:[#allocation2 + $0x29] sm:$0xff] }
 0x1f1   : > { %861 = vst.msk [vmem:[#allocation2 + $0x48] sm:$0xff] %vm851_vm2, %v832_v59  ;;  %862 = vst.msk [vmem:[#allocation2 + $0x50] sm:$0xff] %vm851_vm2, %v833_v61  ;;  %5150 = vmatprep.mubr.msk.f32.mxu1 %vm851_vm2, %v6271_v0 }
 0x1f2   : > { %v762_v41 = vpop.permute.xlu1 %761  ;;  %5151 = vmatmul.mubr.msk.f32.gmra.mrb[2].mxu1 %vm851_vm2, %v6273_v5  ;;  %v764_v40 = vpop.permute.xlu0 %763 }
 0x1f3   : > { %v834_v37 = vmax.f32 %v6104_v44, %v762_v41  ;;  %v835_v14 = vmax.f32 %v6100_v45, %v764_v40  ;;  %5436 = vmatpush3.bf16.msra.mxu1 %v5433_v47 }
 0x1f4   : > { %v6285_v6 = vld [vmem:[#allocation2 + $0x31] sm:$0xff]  ;;  %v6287_v7 = vld [vmem:[#allocation2 + $0x39] sm:$0xff]  ;;  %5438 = vmatprep.subr.bf16.mxu1 %v6275_v24 }
 0x1f5   : > { %863 = vst.msk [vmem:[#allocation2 + $0x58] sm:$0xff] %vm851_vm2, %v834_v37  ;;  %864 = vst.msk [vmem:[#allocation2 + $0x60] sm:$0xff] %vm851_vm2, %v835_v14  ;;  %5153 = vmatprep.mubr.msk.f32.mxu1 %vm851_vm2, %v6285_v6  ;;  %v6406_v14 = vld [vmem:[#allocation2 + $0xe1] sm:$0xff] }
 0x1f6   : > { %v766_v8 = vpop.permute.xlu1 %765  ;;  %5154 = vmatmul.mubr.msk.f32.gmra.mrb[4].mxu1 %vm851_vm2, %v6287_v7  ;;  %v768_v44 = vpop.permute.xlu0 %767 }
 0x1f7   : > { %v836_v45 = vmax.f32 %v6116_v52, %v766_v8  ;;  %v837_v15 = vmax.f32 %v6112_v49, %v768_v44  ;;  %v916_v8 = vld [vmem:[%s7145_s3 + $0x18] sm:$0xff]  ;;  %v6420_v44 = vld [vmem:[#allocation2 + $0xe9] sm:$0xff] }
 0x1f8   : > { %v6298_v17 = vld [vmem:[#allocation2 + $0x41] sm:$0xff]  ;;  %v6300_v22 = vld [vmem:[#allocation2 + $0x49] sm:$0xff]  ;;  %7177 = vst [vmem:[#allocation4_spill] sm:$0xff] %v6420_v44 }
 0x1f9   : > { %865 = vst.msk [vmem:[#allocation2 + $0x68] sm:$0xff] %vm851_vm2, %v836_v45  ;;  %866 = vst.msk [vmem:[#allocation2 + $0x70] sm:$0xff] %vm851_vm2, %v837_v15  ;;  %5156 = vmatprep.mubr.msk.f32.mxu1 %vm851_vm2, %v6298_v17 }
 0x1fa   : > { %v770_v29 = vpop.permute.xlu1 %769  ;;  %5157 = vmatmul.mubr.msk.f32.gmra.mrb[6].mxu1 %vm851_vm2, %v6300_v22  ;;  %v772_v27 = vpop.permute.xlu0 %771 }
 0x1fb   : > { %v838_v52 = vmax.f32 %v6128_v56, %v770_v29  ;;  %v839_v49 = vmax.f32 %v6124_v57, %v772_v27  ;;  %v2953_v27 = vld [vmem:[%s7145_s3 + $0xd0] sm:$0xff] }
 0x1fc   : > { %v6310_v42 = vld [vmem:[#allocation2 + $0x51] sm:$0xff]  ;;  %v6312_v53 = vld [vmem:[#allocation2 + $0x59] sm:$0xff] }
 0x1fd   : > { %867 = vst.msk [vmem:[#allocation2 + $0x78] sm:$0xff] %vm851_vm2, %v838_v52  ;;  %868 = vst.msk [vmem:[#allocation2 + $0x80] sm:$0xff] %vm851_vm2, %v839_v49  ;;  %5159 = vmatprep.mubr.msk.f32.mxu1 %vm851_vm2, %v6310_v42  ;;  %v2954_v52 = vld [vmem:[%s7145_s3 + $0xd8] sm:$0xff] }
 0x1fe   : > { %v774_v54 = vpop.permute.xlu1 %773  ;;  %5160 = vmatmul.mubr.msk.f32.gmra.mrb[8].mxu1 %vm851_vm2, %v6312_v53  ;;  %v776_v63 = vpop.permute.xlu0 %775  ;;  %v6432_v49 = vld [vmem:[#allocation2 + $0x12] sm:$0xff] }
 0x1ff   : > { %v840_v56 = vmax.f32 %v6146_v3, %v774_v54  ;;  %v841_v57 = vmax.f32 %v6142_v60, %v776_v63  ;;  %v5441_v54 = vpack.c.bf16 %v2954_v52, %v2953_v27  ;;  %v6439_v63 = vld [vmem:[#allocation2 + $0x1a] sm:$0xff]  ;;  %v6619_v52 = vld [vmem:[#allocation2 + $0xea] sm:$0xff] }
 0x200   : > { %v6322_v2 = vld [vmem:[#allocation2 + $0x61] sm:$0xff]  ;;  %v6324_v21 = vld [vmem:[#allocation2 + $0x69] sm:$0xff]  ;;  %v1558_v27 = vld [vmem:[%s7145_s3 + $0x58] sm:$0xff]  ;;  %7179 = vst [vmem:[#allocation6_spill] sm:$0xff] %v6619_v52 }
 0x201   : > { %869 = vst.msk [vmem:[#allocation2 + $0x88] sm:$0xff] %vm851_vm2, %v840_v56  ;;  %870 = vst.msk [vmem:[#allocation2 + $0x90] sm:$0xff] %vm851_vm2, %v841_v57  ;;  %5162 = vmatprep.mubr.msk.f32.mxu1 %vm851_vm2, %v6322_v2  ;;  %v1555_v56 = vld [vmem:[%s7145_s3 + $0x40] sm:$0xff]  ;;  %v1556_v57 = vld [vmem:[%s7145_s3 + $0x48] sm:$0xff] }
 0x202   : > { %v778_v10 = vpop.permute.xlu1 %777  ;;  %5163 = vmatmul.mubr.msk.f32.gmra.mrb[10].mxu1 %vm851_vm2, %v6324_v21  ;;  %v780_v11 = vpop.permute.xlu0 %779 }
 0x203   : > { %v842_v3 = vmax.f32 %v6158_v4, %v778_v10  ;;  %v843_v60 = vmax.f32 %v6154_v33, %v780_v11  ;;  %v6460_v10 = vld [vmem:[#allocation2 + $0x22] sm:$0xff]  ;;  %v6466_v11 = vld [vmem:[#allocation2 + $0x2a] sm:$0xff] }
 0x204   : > { %v6334_v18 = vld [vmem:[#allocation2 + $0x71] sm:$0xff]  ;;  %v6336_v23 = vld [vmem:[#allocation2 + $0x79] sm:$0xff] }
 0x205   : > { %871 = vst.msk [vmem:[#allocation2 + $0x98] sm:$0xff] %vm851_vm2, %v842_v3  ;;  %872 = vst.msk [vmem:[#allocation2 + $0xa0] sm:$0xff] %vm851_vm2, %v843_v60  ;;  %5165 = vmatprep.mubr.msk.f32.mxu1 %vm851_vm2, %v6334_v18  ;;  %v6481_v60 = vld [vmem:[#allocation2 + $0x3a] sm:$0xff] }
 0x206   : > { %v782_v25 = vpop.permute.xlu1 %781  ;;  %5166 = vmatmul.mubr.msk.f32.gmra.mrb[12].mxu1 %vm851_vm2, %v6336_v23  ;;  %v784_v32 = vpop.permute.xlu0 %783 }
 0x207   : > { %v844_v4 = vmax.f32 %v6170_v12, %v782_v25  ;;  %v845_v33 = vmax.f32 %v6166_v9, %v784_v32  ;;  %v6488_v25 = vld [vmem:[#allocation2 + $0x42] sm:$0xff]  ;;  %v6494_v32 = vld [vmem:[#allocation2 + $0x4a] sm:$0xff] }
 0x208   : > { %v6346_v35 = vld [vmem:[#allocation2 + $0x81] sm:$0xff]  ;;  %v6348_v36 = vld [vmem:[#allocation2 + $0x89] sm:$0xff] }
 0x209   : > { %873 = vst.msk [vmem:[#allocation2 + $0xa8] sm:$0xff] %vm851_vm2, %v844_v4  ;;  %874 = vst.msk [vmem:[#allocation2 + $0xb0] sm:$0xff] %vm851_vm2, %v845_v33  ;;  %5168 = vmatprep.mubr.msk.f32.mxu1 %vm851_vm2, %v6346_v35  ;;  %v6500_v4 = vld [vmem:[#allocation2 + $0x52] sm:$0xff]  ;;  %v6506_v33 = vld [vmem:[#allocation2 + $0x5a] sm:$0xff] }
 0x20a   : > { %v786_v31 = vpop.permute.xlu1 %785  ;;  %5169 = vmatmul.mubr.msk.f32.gmra.mrb[14].mxu1 %vm851_vm2, %v6348_v36  ;;  %v788_v20 = vpop.permute.xlu0 %787 }
 0x20b   : > { %v846_v12 = vmax.f32 %v6187_v19, %v786_v31  ;;  %v847_v9 = vmax.f32 %v6183_v16, %v788_v20  ;;  %v6512_v31 = vld [vmem:[#allocation2 + $0x62] sm:$0xff]  ;;  %v6518_v20 = vld [vmem:[#allocation2 + $0x6a] sm:$0xff] }
 0x20c   : > { %v6358_v26 = vld [vmem:[#allocation2 + $0x91] sm:$0xff]  ;;  %v6360_v34 = vld [vmem:[#allocation2 + $0x99] sm:$0xff] }
 0x20d   : > { %875 = vst.msk [vmem:[#allocation2 + $0xb8] sm:$0xff] %vm851_vm2, %v846_v12  ;;  %876 = vst.msk [vmem:[#allocation2 + $0xc0] sm:$0xff] %vm851_vm2, %v847_v9  ;;  %5171 = vmatprep.mubr.msk.f32.mxu1 %vm851_vm2, %v6358_v26  ;;  %v6524_v12 = vld [vmem:[#allocation2 + $0x72] sm:$0xff]  ;;  %v6530_v9 = vld [vmem:[#allocation2 + $0x7a] sm:$0xff] }
 0x20e   : > { %v790_v30 = vpop.permute.xlu1 %789  ;;  %5172 = vmatmul.mubr.msk.f32.gmra.mrb[16].mxu1 %vm851_vm2, %v6360_v34  ;;  %v792_v46 = vpop.permute.xlu0 %791 }
 0x20f   : > { %v848_v19 = vmax.f32 %v6199_v38, %v790_v30  ;;  %v849_v16 = vmax.f32 %v6195_v39, %v792_v46  ;;  %v6536_v30 = vld [vmem:[#allocation2 + $0x82] sm:$0xff]  ;;  %v6542_v46 = vld [vmem:[#allocation2 + $0x8a] sm:$0xff] }
 0x210   : > { %v6370_v47 = vld [vmem:[#allocation2 + $0xa1] sm:$0xff]  ;;  %v6372_v55 = vld [vmem:[#allocation2 + $0xa9] sm:$0xff] }
 0x211   : > { %877 = vst.msk [vmem:[#allocation2 + $0xc8] sm:$0xff] %vm851_vm2, %v848_v19  ;;  %878 = vst.msk [vmem:[#allocation2 + $0xd0] sm:$0xff] %vm851_vm2, %v849_v16  ;;  %5174 = vmatprep.mubr.msk.f32.mxu1 %vm851_vm2, %v6370_v47  ;;  %v6548_v19 = vld [vmem:[#allocation2 + $0x92] sm:$0xff]  ;;  %v6554_v16 = vld [vmem:[#allocation2 + $0x9a] sm:$0xff] }
 0x212   : > { %v794_v28 = vpop.permute.xlu1 %793  ;;  %5175 = vmatmul.mubr.msk.f32.gmra.mrb[18].mxu1 %vm851_vm2, %v6372_v55  ;;  %v740_v58 = vpop.permute.xlu0 %739 }
 0x213   : > { %v850_v38 = vmax.f32 %v6207_v51, %v794_v28  ;;  %v823_v39 = vmax.f32 %v6211_v50, %v740_v58  ;;  %v6560_v28 = vld [vmem:[#allocation2 + $0xa2] sm:$0xff]  ;;  %v6566_v58 = vld [vmem:[#allocation2 + $0xaa] sm:$0xff] }
 0x214   : > { %v6382_v13 = vld [vmem:[#allocation2 + $0xb1] sm:$0xff]  ;;  %v6384_v59 = vld [vmem:[#allocation2 + $0xb9] sm:$0xff] }
 0x215   : > { %879 = vst.msk [vmem:[#allocation2 + $0xd8] sm:$0xff] %vm851_vm2, %v850_v38  ;;  %852 = vst.msk [vmem:[#allocation2] sm:$0xff] %vm851_vm2, %v823_v39  ;;  %5177 = vmatprep.mubr.msk.f32.mxu1 %vm851_vm2, %v6382_v13  ;;  %v6572_v38 = vld [vmem:[#allocation2 + $0xb2] sm:$0xff]  ;;  %v6578_v39 = vld [vmem:[#allocation2 + $0xba] sm:$0xff] }
 0x216   : > { %v742_v61 = vpop.permute.xlu1 %741  ;;  %5178 = vmatmul.mubr.msk.f32.gmra.mrb[20].mxu1 %vm851_vm2, %v6384_v59 }
 0x217   : > { %v824_v41 = vmax.f32 %v6221_v62, %v742_v61  ;;  %v915_v62 = vld [vmem:[%s7145_s3 + $0x10] sm:$0xff] }
 0x218   : > { %v6393_v51 = vld [vmem:[#allocation2 + $0xc1] sm:$0xff]  ;;  %v6395_v50 = vld [vmem:[#allocation2 + $0xc9] sm:$0xff]  ;;  %v5401_v29 = vpack.c.bf16 %v916_v8, %v915_v62 }
 0x219   : > { %853 = vst.msk [vmem:[#allocation2 + $0x8] sm:$0xff] %vm851_vm2, %v824_v41  ;;  %5180 = vmatprep.mubr.msk.f32.mxu1 %vm851_vm2, %v6393_v51  ;;  %v6584_v61 = vld [vmem:[#allocation2 + $0xc2] sm:$0xff]  ;;  %v6590_v41 = vld [vmem:[#allocation2 + $0xca] sm:$0xff] }
 0x21a   : > { %5181 = vmatmul.mubr.msk.f32.gmra.mrb[22].mxu1 %vm851_vm2, %v6395_v50  ;;  %v6602_v8 = vld [vmem:[#allocation2 + $0xe2] sm:$0xff] }
 0x21b   : > { %7178 = vst [vmem:[#allocation5_spill] sm:$0xff] %v6602_v8 }
 0x21c   : > { %v6402_v40 = vld [vmem:[#allocation2 + $0xd1] sm:$0xff]  ;;  %v6404_v37 = vld [vmem:[#allocation2 + $0xd9] sm:$0xff] }
 0x21d   : > { %5183 = vmatprep.mubr.msk.f32.mxu1 %vm851_vm2, %v6402_v40  ;;  %v6596_v62 = vld [vmem:[#allocation2 + $0xd2] sm:$0xff] }
 0x21e   : > { %5184 = vmatmul.mubr.msk.f32.gmra.mrb[24].mxu1 %vm851_vm2, %v6404_v37 }
 0x21f   : > { %5186 = vmatprep.mubr.msk.f32.mxu1 %vm851_vm2, %v6406_v14 }
 0x220   : > { %v917_v45 = vld [vmem:[#allocation2 + $0x1] sm:$0xff]  ;;  %v918_v15 = vld [vmem:[#allocation2 + $0x9] sm:$0xff] }
 0x221   : > { %4947 = vmatprep.mubr.msk.f32.mxu0 %vm851_vm2, %v917_v45  ;;  %v6604_v45 = vld [vmem:[#allocation2 + $0xda] sm:$0xff] }
 0x222   : > { %4948 = vmatmul.mubr.msk.f32.vlgmr.msra.gmra.mrb[28].mxu0 %vm851_vm2, %v918_v15  ;;  %5187 = vmatmul.mubr.msk.f32.gmra.mrb[26].mxu1 %vm851_vm2, %v6420_v44  ;;  %v885_v15 = vld [vmem:[#allocation2] sm:$0xff] }
 0x223   : > { %4950 = vmatprep.mubr.msk.f32.mxu0 %vm851_vm2, %v6242_v43  ;;  %5197 = vmatprep.mubr.msk.f32.mxu1 %vm851_vm2, %v6432_v49  ;;  %v3301_v43 = vld [vmem:[%s7145_s3 + $0xe8] sm:$0xff] }
 0x224   : > { %5400 = vmatpush3.bf16.msra.mxu0 %v6231_v1  ;;  %v3300_v1 = vld [vmem:[%s7145_s3 + $0xe0] sm:$0xff] }
 0x225   : > { %5402 = vmatprep.subr.bf16.mxu0 %v5401_v29  ;;  %v6468_v3 = vpack.c.bf16 %v3301_v43, %v3300_v1  ;;  %v3303_v1 = vld [vmem:[%s7145_s3 + $0xf8] sm:$0xff]  ;;  %v6630_v43 = vld [vmem:[#allocation2 + $0x10] sm:$0xff] }
 0x226   : > { %4951 = vmatmul.mubr.msk.f32.gmra.mrb[30].mxu0 %vm851_vm2, %v6256_v48  ;;  %5198 = vmatmul.mubr.msk.f32.vlgmr.msra.gmra.mrb[0].mxu1 %vm851_vm2, %v6439_v63  ;;  %v6464_v48 = vpack.c.bf16 %v1556_v57, %v1555_v56  ;;  %v3302_v57 = vld [vmem:[%s7145_s3 + $0xf0] sm:$0xff]  ;;  %7180 = vst [vmem:[#allocation7_spill] sm:$0xff] %v6630_v43 }
 0x227   : > { %5440 = vmatpush3.bf16.msra.mxu1 %v6275_v24  ;;  %4953 = vmatprep.mubr.msk.f32.mxu0 %vm851_vm2, %v6271_v0  ;;  %v6474_v24 = vld [vmem:[#allocation2 + $0x32] sm:$0xff] }
 0x228   : > { %5200 = vmatprep.mubr.msk.f32.mxu1 %vm851_vm2, %v6460_v10  ;;  %5442 = vmatprep.subr.bf16.mxu1 %v5441_v54 }
 0x229   : > { %5404 = vmatpush3.bf16.msra.mxu0 %v5401_v29  ;;  %v1557_v29 = vld [vmem:[%s7145_s3 + $0x50] sm:$0xff] }
 0x22a   : > { %4954 = vmatmul.mubr.msk.f32.gmra.mrb[32].mxu0 %vm851_vm2, %v6273_v5  ;;  %5201 = vmatmul.mubr.msk.f32.gmra.mrb[2].mxu1 %vm851_vm2, %v6466_v11  ;;  %v5409_v56 = vpack.c.bf16 %v1558_v27, %v1557_v29  ;;  %v6638_v29 = vld [vmem:[#allocation2 + $0x18] sm:$0xff]  ;;  %v5449_v27 = vpack.c.bf16 %v3303_v1, %v3302_v57  ;;  %v3650_v57 = vld [vmem:[%s7145_s3 + $0x108] sm:$0xff]  ;;  %v6662_v1 = vld [vmem:[#allocation2 + $0x30] sm:$0xff] }
 0x22b   : > { %4956 = vmatprep.mubr.msk.f32.mxu0 %vm851_vm2, %v6285_v6  ;;  %5203 = vmatprep.mubr.msk.f32.mxu1 %vm851_vm2, %v6474_v24  ;;  %7181 = vst [vmem:[#allocation8_spill] sm:$0xff] %v6638_v29  ;;  %7182 = vst [vmem:[#allocation9_spill] sm:$0xff] %v6662_v1 }
 0x22c   : > { %5444 = vmatpush3.bf16.msra.mxu1 %v5441_v54  ;;  %5406 = vmatprep.subr.bf16.mxu0 %v6464_v48  ;;  %v886_v54 = vld [vmem:[#allocation2 + $0x8] sm:$0xff] }
 0x22d   : > { %5446 = vmatprep.subr.bf16.mxu1 %v6468_v3 }
 0x22e   : > { %4957 = vmatmul.mubr.msk.f32.gmra.mrb[34].mxu0 %vm851_vm2, %v6287_v7  ;;  %5204 = vmatmul.mubr.msk.f32.gmra.mrb[4].mxu1 %vm851_vm2, %v6481_v60 }
 0x22f   : > { %4959 = vmatprep.mubr.msk.f32.mxu0 %vm851_vm2, %v6298_v17  ;;  %5206 = vmatprep.mubr.msk.f32.mxu1 %vm851_vm2, %v6488_v25 }
 0x232   : > { %4960 = vmatmul.mubr.msk.f32.gmra.mrb[36].mxu0 %vm851_vm2, %v6300_v22  ;;  %5207 = vmatmul.mubr.msk.f32.gmra.mrb[6].mxu1 %vm851_vm2, %v6494_v32 }
 0x233   : > { %4962 = vmatprep.mubr.msk.f32.mxu0 %vm851_vm2, %v6310_v42  ;;  %5209 = vmatprep.mubr.msk.f32.mxu1 %vm851_vm2, %v6500_v4 }
 0x236   : > { %4963 = vmatmul.mubr.msk.f32.gmra.mrb[38].mxu0 %vm851_vm2, %v6312_v53  ;;  %5210 = vmatmul.mubr.msk.f32.gmra.mrb[8].mxu1 %vm851_vm2, %v6506_v33 }
 0x237   : > { %4965 = vmatprep.mubr.msk.f32.mxu0 %vm851_vm2, %v6322_v2  ;;  %5212 = vmatprep.mubr.msk.f32.mxu1 %vm851_vm2, %v6512_v31 }
 0x23a   : > { %4966 = vmatmul.mubr.msk.f32.gmra.mrb[40].mxu0 %vm851_vm2, %v6324_v21  ;;  %5213 = vmatmul.mubr.msk.f32.gmra.mrb[10].mxu1 %vm851_vm2, %v6518_v20 }
 0x23b   : > { %4968 = vmatprep.mubr.msk.f32.mxu0 %vm851_vm2, %v6334_v18  ;;  %5215 = vmatprep.mubr.msk.f32.mxu1 %vm851_vm2, %v6524_v12 }
 0x23e   : > { %4969 = vmatmul.mubr.msk.f32.gmra.mrb[42].mxu0 %vm851_vm2, %v6336_v23  ;;  %5216 = vmatmul.mubr.msk.f32.gmra.mrb[12].mxu1 %vm851_vm2, %v6530_v9 }
 0x23f   : > { %4971 = vmatprep.mubr.msk.f32.mxu0 %vm851_vm2, %v6346_v35  ;;  %5218 = vmatprep.mubr.msk.f32.mxu1 %vm851_vm2, %v6536_v30 }
 0x242   : > { %4972 = vmatmul.mubr.msk.f32.gmra.mrb[44].mxu0 %vm851_vm2, %v6348_v36  ;;  %5219 = vmatmul.mubr.msk.f32.gmra.mrb[14].mxu1 %vm851_vm2, %v6542_v46 }
 0x243   : > { %4974 = vmatprep.mubr.msk.f32.mxu0 %vm851_vm2, %v6358_v26  ;;  %5221 = vmatprep.mubr.msk.f32.mxu1 %vm851_vm2, %v6548_v19 }
 0x246   : > { %4975 = vmatmul.mubr.msk.f32.gmra.mrb[46].mxu0 %vm851_vm2, %v6360_v34  ;;  %5222 = vmatmul.mubr.msk.f32.gmra.mrb[16].mxu1 %vm851_vm2, %v6554_v16 }
 0x247   : > { %4977 = vmatprep.mubr.msk.f32.mxu0 %vm851_vm2, %v6370_v47  ;;  %5224 = vmatprep.mubr.msk.f32.mxu1 %vm851_vm2, %v6560_v28 }
 0x24a   : > { %4978 = vmatmul.mubr.msk.f32.gmra.mrb[48].mxu0 %vm851_vm2, %v6372_v55  ;;  %5225 = vmatmul.mubr.msk.f32.gmra.mrb[18].mxu1 %vm851_vm2, %v6566_v58 }
 0x24b   : > { %4980 = vmatprep.mubr.msk.f32.mxu0 %vm851_vm2, %v6382_v13  ;;  %5227 = vmatprep.mubr.msk.f32.mxu1 %vm851_vm2, %v6572_v38 }
 0x24e   : > { %4981 = vmatmul.mubr.msk.f32.gmra.mrb[50].mxu0 %vm851_vm2, %v6384_v59  ;;  %5228 = vmatmul.mubr.msk.f32.gmra.mrb[20].mxu1 %vm851_vm2, %v6578_v39 }
 0x24f   : > { %4983 = vmatprep.mubr.msk.f32.mxu0 %vm851_vm2, %v6393_v51  ;;  %5230 = vmatprep.mubr.msk.f32.mxu1 %vm851_vm2, %v6584_v61 }
 0x252   : > { %4984 = vmatmul.mubr.msk.f32.gmra.mrb[52].mxu0 %vm851_vm2, %v6395_v50  ;;  %5231 = vmatmul.mubr.msk.f32.gmra.mrb[22].mxu1 %vm851_vm2, %v6590_v41 }
 0x253   : > { %4986 = vmatprep.mubr.msk.f32.mxu0 %vm851_vm2, %v6402_v40  ;;  %5233 = vmatprep.mubr.msk.f32.mxu1 %vm851_vm2, %v6596_v62 }
 0x256   : > { %4987 = vmatmul.mubr.msk.f32.gmra.mrb[54].mxu0 %vm851_vm2, %v6404_v37  ;;  %5234 = vmatmul.mubr.msk.f32.gmra.mrb[24].mxu1 %vm851_vm2, %v6604_v45 }
 0x257   : > { %4997 = vmatprep.mubr.msk.f32.mxu0 %vm851_vm2, %v885_v15  ;;  %5236 = vmatprep.mubr.msk.f32.mxu1 %vm851_vm2, %v6602_v8  ;;  %v6632_v15 = vld [vmem:[#allocation2 + $0x20] sm:$0xff]  ;;  %v6641_v8 = vld [vmem:[#allocation2 + $0x28] sm:$0xff] }
 0x25a   : > { %4998 = vmatmul.mubr.msk.f32.vlgmr.msra.gmra.mrb[28].mxu0 %vm851_vm2, %v886_v54  ;;  %5237 = vmatmul.mubr.msk.f32.gmra.mrb[26].mxu1 %vm851_vm2, %v6619_v52  ;;  %v1904_v54 = vld [vmem:[%s7145_s3 + $0x60] sm:$0xff]  ;;  %v1905_v52 = vld [vmem:[%s7145_s3 + $0x68] sm:$0xff] }
 0x25b   : > { %5000 = vmatprep.mubr.msk.f32.mxu0 %vm851_vm2, %v6630_v43  ;;  %5247 = vmatprep.mubr.msk.f32.mxu1 %vm851_vm2, %v6632_v15  ;;  %v6668_v43 = vld [vmem:[#allocation2 + $0x38] sm:$0xff] }
 0x25c   : > { %5408 = vmatpush3.bf16.msra.mxu0 %v6464_v48  ;;  %v3649_v48 = vld [vmem:[%s7145_s3 + $0x100] sm:$0xff]  ;;  %7183 = vst [vmem:[#allocation10_spill] sm:$0xff] %v6668_v43 }
 0x25d   : > { %5410 = vmatprep.subr.bf16.mxu0 %v5409_v56  ;;  %v6670_v44 = vpack.c.bf16 %v3650_v57, %v3649_v48  ;;  %v6708_v48 = vld [vmem:[#allocation2 + $0x68] sm:$0xff]  ;;  %v6714_v57 = vld [vmem:[#allocation2 + $0x70] sm:$0xff] }
 0x25e   : > { %5001 = vmatmul.mubr.msk.f32.gmra.mrb[30].mxu0 %vm851_vm2, %v6638_v29  ;;  %5248 = vmatmul.mubr.msk.f32.vlgmr.msra.gmra.mrb[0].mxu1 %vm851_vm2, %v6641_v8  ;;  %v6666_v29 = vpack.c.bf16 %v1905_v52, %v1904_v54  ;;  %v6683_v52 = vld [vmem:[#allocation2 + $0x48] sm:$0xff]  ;;  %v6702_v54 = vld [vmem:[#allocation2 + $0x60] sm:$0xff]  ;;  %7189 = vst [vmem:[#allocation16_spill] sm:$0xff] %v6708_v48  ;;  %7190 = vst [vmem:[#allocation17_spill] sm:$0xff] %v6714_v57 }
 0x25f   : > { %5448 = vmatpush3.bf16.msra.mxu1 %v6468_v3  ;;  %5003 = vmatprep.mubr.msk.f32.mxu0 %vm851_vm2, %v6632_v15  ;;  %v6676_v3 = vld [vmem:[#allocation2 + $0x40] sm:$0xff]  ;;  %7185 = vst [vmem:[#allocation12_spill] sm:$0xff] %v6683_v52  ;;  %7188 = vst [vmem:[#allocation15_spill] sm:$0xff] %v6702_v54 }
 0x260   : > { %5250 = vmatprep.mubr.msk.f32.mxu1 %vm851_vm2, %v6662_v1  ;;  %5450 = vmatprep.subr.bf16.mxu1 %v5449_v27  ;;  %7184 = vst [vmem:[#allocation11_spill] sm:$0xff] %v6676_v3 }
 0x261   : > { %5412 = vmatpush3.bf16.msra.mxu0 %v5409_v56  ;;  %v6690_v56 = vld [vmem:[#allocation2 + $0x50] sm:$0xff] }
 0x262   : > { %5004 = vmatmul.mubr.msk.f32.gmra.mrb[32].mxu0 %vm851_vm2, %v6641_v8  ;;  %5251 = vmatmul.mubr.msk.f32.gmra.mrb[2].mxu1 %vm851_vm2, %v6668_v43  ;;  %7186 = vst [vmem:[#allocation13_spill] sm:$0xff] %v6690_v56 }
 0x263   : > { %5006 = vmatprep.mubr.msk.f32.mxu0 %vm851_vm2, %v6662_v1  ;;  %5253 = vmatprep.mubr.msk.f32.mxu1 %vm851_vm2, %v6676_v3 }
 0x264   : > { %5452 = vmatpush3.bf16.msra.mxu1 %v5449_v27  ;;  %5414 = vmatprep.subr.bf16.mxu0 %v6666_v29  ;;  %v6696_v27 = vld [vmem:[#allocation2 + $0x58] sm:$0xff] }
 0x265   : > { %5454 = vmatprep.subr.bf16.mxu1 %v6670_v44  ;;  %7187 = vst [vmem:[#allocation14_spill] sm:$0xff] %v6696_v27 }
 0x266   : > { %5007 = vmatmul.mubr.msk.f32.gmra.mrb[34].mxu0 %vm851_vm2, %v6668_v43  ;;  %5254 = vmatmul.mubr.msk.f32.gmra.mrb[4].mxu1 %vm851_vm2, %v6683_v52  ;;  %v1528_v43 = vld [vmem:[#allocation2 + $0xa] sm:$0xff] }
 0x267   : > { %5009 = vmatprep.mubr.msk.f32.mxu0 %vm851_vm2, %v6676_v3  ;;  %5256 = vmatprep.mubr.msk.f32.mxu1 %vm851_vm2, %v6690_v56  ;;  %v1527_v3 = vld [vmem:[#allocation2 + $0x2] sm:$0xff] }
 0x26a   : > { %5010 = vmatmul.mubr.msk.f32.gmra.mrb[36].mxu0 %vm851_vm2, %v6683_v52  ;;  %5257 = vmatmul.mubr.msk.f32.gmra.mrb[6].mxu1 %vm851_vm2, %v6696_v27  ;;  %v6794_v52 = vld [vmem:[#allocation2 + $0xd8] sm:$0xff] }
 0x26b   : > { %5012 = vmatprep.mubr.msk.f32.mxu0 %vm851_vm2, %v6690_v56  ;;  %5259 = vmatprep.mubr.msk.f32.mxu1 %vm851_vm2, %v6702_v54  ;;  %v6720_v56 = vld [vmem:[#allocation2 + $0x78] sm:$0xff]  ;;  %7204 = vst [vmem:[#allocation31_spill] sm:$0xff] %v6794_v52 }
 0x26c   : > { %7191 = vst [vmem:[#allocation18_spill] sm:$0xff] %v6720_v56 }
 0x26e   : > { %5013 = vmatmul.mubr.msk.f32.gmra.mrb[38].mxu0 %vm851_vm2, %v6696_v27  ;;  %5260 = vmatmul.mubr.msk.f32.gmra.mrb[8].mxu1 %vm851_vm2, %v6708_v48  ;;  %v6726_v27 = vld [vmem:[#allocation2 + $0x80] sm:$0xff] }
 0x26f   : > { %5015 = vmatprep.mubr.msk.f32.mxu0 %vm851_vm2, %v6702_v54  ;;  %5262 = vmatprep.mubr.msk.f32.mxu1 %vm851_vm2, %v6714_v57  ;;  %7192 = vst [vmem:[#allocation19_spill] sm:$0xff] %v6726_v27  ;;  %v6732_v54 = vld [vmem:[#allocation2 + $0x88] sm:$0xff] }
 0x270   : > { %7193 = vst [vmem:[#allocation20_spill] sm:$0xff] %v6732_v54 }
 0x272   : > { %5016 = vmatmul.mubr.msk.f32.gmra.mrb[40].mxu0 %vm851_vm2, %v6708_v48  ;;  %5263 = vmatmul.mubr.msk.f32.gmra.mrb[10].mxu1 %vm851_vm2, %v6720_v56  ;;  %v6738_v48 = vld [vmem:[#allocation2 + $0x90] sm:$0xff] }
 0x273   : > { %5018 = vmatprep.mubr.msk.f32.mxu0 %vm851_vm2, %v6714_v57  ;;  %5265 = vmatprep.mubr.msk.f32.mxu1 %vm851_vm2, %v6726_v27  ;;  %7194 = vst [vmem:[#allocation21_spill] sm:$0xff] %v6738_v48  ;;  %v6744_v57 = vld [vmem:[#allocation2 + $0x98] sm:$0xff] }
 0x274   : > { %7195 = vst [vmem:[#allocation22_spill] sm:$0xff] %v6744_v57 }
 0x276   : > { %5019 = vmatmul.mubr.msk.f32.gmra.mrb[42].mxu0 %vm851_vm2, %v6720_v56  ;;  %5266 = vmatmul.mubr.msk.f32.gmra.mrb[12].mxu1 %vm851_vm2, %v6732_v54  ;;  %v6750_v56 = vld [vmem:[#allocation2 + $0xa0] sm:$0xff] }
 0x277   : > { %5021 = vmatprep.mubr.msk.f32.mxu0 %vm851_vm2, %v6726_v27  ;;  %5268 = vmatprep.mubr.msk.f32.mxu1 %vm851_vm2, %v6738_v48  ;;  %7196 = vst [vmem:[#allocation23_spill] sm:$0xff] %v6750_v56  ;;  %v6756_v27 = vld [vmem:[#allocation2 + $0xa8] sm:$0xff] }
 0x278   : > { %7197 = vst [vmem:[#allocation24_spill] sm:$0xff] %v6756_v27 }
 0x27a   : > { %5022 = vmatmul.mubr.msk.f32.gmra.mrb[44].mxu0 %vm851_vm2, %v6732_v54  ;;  %5269 = vmatmul.mubr.msk.f32.gmra.mrb[14].mxu1 %vm851_vm2, %v6744_v57  ;;  %v6762_v54 = vld [vmem:[#allocation2 + $0xb0] sm:$0xff] }
 0x27b   : > { %5024 = vmatprep.mubr.msk.f32.mxu0 %vm851_vm2, %v6738_v48  ;;  %5271 = vmatprep.mubr.msk.f32.mxu1 %vm851_vm2, %v6750_v56  ;;  %7198 = vst [vmem:[#allocation25_spill] sm:$0xff] %v6762_v54  ;;  %v6768_v48 = vld [vmem:[#allocation2 + $0xb8] sm:$0xff] }
 0x27c   : > { %7199 = vst [vmem:[#allocation26_spill] sm:$0xff] %v6768_v48 }
 0x27e   : > { %5025 = vmatmul.mubr.msk.f32.gmra.mrb[46].mxu0 %vm851_vm2, %v6744_v57  ;;  %5272 = vmatmul.mubr.msk.f32.gmra.mrb[16].mxu1 %vm851_vm2, %v6756_v27  ;;  %v6774_v57 = vld [vmem:[#allocation2 + $0xc0] sm:$0xff] }
 0x27f   : > { %5027 = vmatprep.mubr.msk.f32.mxu0 %vm851_vm2, %v6750_v56  ;;  %5274 = vmatprep.mubr.msk.f32.mxu1 %vm851_vm2, %v6762_v54  ;;  %7200 = vst [vmem:[#allocation27_spill] sm:$0xff] %v6774_v57  ;;  %v6780_v56 = vld [vmem:[#allocation2 + $0xc8] sm:$0xff] }
 0x280   : > { %7201 = vst [vmem:[#allocation28_spill] sm:$0xff] %v6780_v56 }
 0x282   : > { %5028 = vmatmul.mubr.msk.f32.gmra.mrb[48].mxu0 %vm851_vm2, %v6756_v27  ;;  %5275 = vmatmul.mubr.msk.f32.gmra.mrb[18].mxu1 %vm851_vm2, %v6768_v48  ;;  %v6786_v27 = vld [vmem:[#allocation2 + $0xd0] sm:$0xff] }
 0x283   : > { %5030 = vmatprep.mubr.msk.f32.mxu0 %vm851_vm2, %v6762_v54  ;;  %5277 = vmatprep.mubr.msk.f32.mxu1 %vm851_vm2, %v6774_v57  ;;  %7202 = vst [vmem:[#allocation29_spill] sm:$0xff] %v6786_v27  ;;  %v6792_v54 = vld [vmem:[#allocation2 + $0xe0] sm:$0xff] }
 0x284   : > { %7203 = vst [vmem:[#allocation30_spill] sm:$0xff] %v6792_v54 }
 0x286   : > { %5031 = vmatmul.mubr.msk.f32.gmra.mrb[50].mxu0 %vm851_vm2, %v6768_v48  ;;  %5278 = vmatmul.mubr.msk.f32.gmra.mrb[20].mxu1 %vm851_vm2, %v6780_v56  ;;  %v2949_v48 = vld [vmem:[#allocation2 + $0xf0] sm:$0xff] }
 0x287   : > { %5033 = vmatprep.mubr.msk.f32.mxu0 %vm851_vm2, %v6774_v57  ;;  %5280 = vmatprep.mubr.msk.f32.mxu1 %vm851_vm2, %v6786_v27  ;;  %v6804_v57 = vld [vmem:[#allocation2 + $0xe8] sm:$0xff] }
 0x288   : > { %7205 = vst [vmem:[#allocation32_spill] sm:$0xff] %v6804_v57 }
 0x28a   : > { %5034 = vmatmul.mubr.msk.f32.gmra.mrb[52].mxu0 %vm851_vm2, %v6780_v56  ;;  %5281 = vmatmul.mubr.msk.f32.gmra.mrb[22].mxu1 %vm851_vm2, %v6794_v52  ;;  %v1906_v56 = vld [vmem:[%s7145_s3 + $0x70] sm:$0xff] }
 0x28b   : > { %5036 = vmatprep.mubr.msk.f32.mxu0 %vm851_vm2, %v6786_v27  ;;  %5283 = vmatprep.mubr.msk.f32.mxu1 %vm851_vm2, %v6792_v54  ;;  %v1907_v27 = vld [vmem:[%s7145_s3 + $0x78] sm:$0xff] }
 0x28c   : > { %v2950_v54 = vld [vmem:[#allocation2 + $0xf8] sm:$0xff]  ;;  %v5417_v1 = vpack.c.bf16 %v1907_v27, %v1906_v56 }
 0x28e   : > { %5037 = vmatmul.mubr.msk.f32.gmra.mrb[54].mxu0 %vm851_vm2, %v6794_v52  ;;  %5284 = vmatmul.mubr.msk.f32.gmra.mrb[24].mxu1 %vm851_vm2, %v6804_v57  ;;  %v3651_v57 = vld [vmem:[%s7145_s3 + $0x110] sm:$0xff]  ;;  %v3652_v52 = vld [vmem:[%s7145_s3 + $0x118] sm:$0xff] }
 0x28f   : > { %5047 = vmatprep.mubr.msk.f32.mxu0 %vm851_vm2, %v1527_v3  ;;  %5286 = vmatprep.mubr.msk.f32.mxu1 %vm851_vm2, %v2949_v48  ;;  %v5457_v3 = vpack.c.bf16 %v3652_v52, %v3651_v57 }
 0x292   : > { %5048 = vmatmul.mubr.msk.f32.vlgmr.msra.gmra.mrb[28].mxu0 %vm851_vm2, %v1528_v43  ;;  %5287 = vmatmul.mubr.msk.f32.gmra.mrb[26].mxu1 %vm851_vm2, %v2950_v54 }
 0x293   : > { %5050 = vmatprep.mubr.msk.f32.mxu0 %vm851_vm2, %v6432_v49  ;;  %5297 = vmatprep.mubr.msk.f32.mxu1 %vm851_vm2, %v6271_v0  ;;  %v3298_v0 = vld [vmem:[#allocation2 + $0xf1] sm:$0xff] }
 0x294   : > { %5416 = vmatpush3.bf16.msra.mxu0 %v6666_v29  ;;  %v7230_v49 = vld [vmem:[#allocation31_spill] sm:$0xff] }
 0x295   : > { %5418 = vmatprep.subr.bf16.mxu0 %v5417_v1 }
 0x296   : > { %5051 = vmatmul.mubr.msk.f32.gmra.mrb[30].mxu0 %vm851_vm2, %v6439_v63  ;;  %5298 = vmatmul.mubr.msk.f32.vlgmr.msra.gmra.mrb[0].mxu1 %vm851_vm2, %v6273_v5  ;;  %v7206_v5 = vld [vmem:[#allocation4_spill] sm:$0xff]  ;;  %v7231_v63 = vld [vmem:[#allocation30_spill] sm:$0xff] }
 0x297   : > { %5456 = vmatpush3.bf16.msra.mxu1 %v6670_v44  ;;  %5053 = vmatprep.mubr.msk.f32.mxu0 %vm851_vm2, %v6460_v10  ;;  %v7229_v44 = vld [vmem:[#allocation29_spill] sm:$0xff] }
 0x298   : > { %5300 = vmatprep.mubr.msk.f32.mxu1 %vm851_vm2, %v6285_v6  ;;  %5458 = vmatprep.subr.bf16.mxu1 %v5457_v3  ;;  %v7207_v6 = vld [vmem:[#allocation7_spill] sm:$0xff] }
 0x299   : > { %5420 = vmatpush3.bf16.msra.mxu0 %v5417_v1 }
 0x29a   : > { %5054 = vmatmul.mubr.msk.f32.gmra.mrb[32].mxu0 %vm851_vm2, %v6466_v11  ;;  %5301 = vmatmul.mubr.msk.f32.gmra.mrb[2].mxu1 %vm851_vm2, %v6287_v7  ;;  %v3299_v7 = vld [vmem:[#allocation2 + $0xf9] sm:$0xff] }
 0x29b   : > { %5056 = vmatprep.mubr.msk.f32.mxu0 %vm851_vm2, %v6474_v24  ;;  %5303 = vmatprep.mubr.msk.f32.mxu1 %vm851_vm2, %v6298_v17  ;;  %v7208_v17 = vld [vmem:[#allocation8_spill] sm:$0xff] }
 0x29c   : > { %5460 = vmatpush3.bf16.msra.mxu1 %v5457_v3 }
 0x29e   : > { %5057 = vmatmul.mubr.msk.f32.gmra.mrb[34].mxu0 %vm851_vm2, %v6481_v60  ;;  %5304 = vmatmul.mubr.msk.f32.gmra.mrb[4].mxu1 %vm851_vm2, %v6300_v22  ;;  %v7209_v22 = vld [vmem:[#allocation9_spill] sm:$0xff] }
 0x29f   : > { %5059 = vmatprep.mubr.msk.f32.mxu0 %vm851_vm2, %v6488_v25  ;;  %5306 = vmatprep.mubr.msk.f32.mxu1 %vm851_vm2, %v6310_v42  ;;  %v7210_v42 = vld [vmem:[#allocation10_spill] sm:$0xff] }
 0x2a2   : > { %5060 = vmatmul.mubr.msk.f32.gmra.mrb[36].mxu0 %vm851_vm2, %v6494_v32  ;;  %5307 = vmatmul.mubr.msk.f32.gmra.mrb[6].mxu1 %vm851_vm2, %v6312_v53  ;;  %v7211_v53 = vld [vmem:[#allocation11_spill] sm:$0xff] }
 0x2a3   : > { %5062 = vmatprep.mubr.msk.f32.mxu0 %vm851_vm2, %v6500_v4  ;;  %5309 = vmatprep.mubr.msk.f32.mxu1 %vm851_vm2, %v6322_v2  ;;  %v7212_v2 = vld [vmem:[#allocation12_spill] sm:$0xff] }
 0x2a6   : > { %5063 = vmatmul.mubr.msk.f32.gmra.mrb[38].mxu0 %vm851_vm2, %v6506_v33  ;;  %5310 = vmatmul.mubr.msk.f32.gmra.mrb[8].mxu1 %vm851_vm2, %v6324_v21  ;;  %v7213_v21 = vld [vmem:[#allocation13_spill] sm:$0xff] }
 0x2a7   : > { %5065 = vmatprep.mubr.msk.f32.mxu0 %vm851_vm2, %v6512_v31  ;;  %5312 = vmatprep.mubr.msk.f32.mxu1 %vm851_vm2, %v6334_v18  ;;  %v7214_v18 = vld [vmem:[#allocation14_spill] sm:$0xff] }
 0x2aa   : > { %5066 = vmatmul.mubr.msk.f32.gmra.mrb[40].mxu0 %vm851_vm2, %v6518_v20  ;;  %5313 = vmatmul.mubr.msk.f32.gmra.mrb[10].mxu1 %vm851_vm2, %v6336_v23  ;;  %v7215_v23 = vld [vmem:[#allocation15_spill] sm:$0xff] }
 0x2ab   : > { %5068 = vmatprep.mubr.msk.f32.mxu0 %vm851_vm2, %v6524_v12  ;;  %5315 = vmatprep.mubr.msk.f32.mxu1 %vm851_vm2, %v6346_v35  ;;  %v7216_v35 = vld [vmem:[#allocation16_spill] sm:$0xff] }
 0x2ae   : > { %5069 = vmatmul.mubr.msk.f32.gmra.mrb[42].mxu0 %vm851_vm2, %v6530_v9  ;;  %5316 = vmatmul.mubr.msk.f32.gmra.mrb[12].mxu1 %vm851_vm2, %v6348_v36  ;;  %v7217_v36 = vld [vmem:[#allocation17_spill] sm:$0xff] }
 0x2af   : > { %5071 = vmatprep.mubr.msk.f32.mxu0 %vm851_vm2, %v6536_v30  ;;  %5318 = vmatprep.mubr.msk.f32.mxu1 %vm851_vm2, %v6358_v26  ;;  %v7218_v26 = vld [vmem:[#allocation18_spill] sm:$0xff] }
 0x2b2   : > { %5072 = vmatmul.mubr.msk.f32.gmra.mrb[44].mxu0 %vm851_vm2, %v6542_v46  ;;  %5319 = vmatmul.mubr.msk.f32.gmra.mrb[14].mxu1 %vm851_vm2, %v6360_v34  ;;  %v7219_v34 = vld [vmem:[#allocation19_spill] sm:$0xff] }
 0x2b3   : > { %5074 = vmatprep.mubr.msk.f32.mxu0 %vm851_vm2, %v6548_v19  ;;  %5321 = vmatprep.mubr.msk.f32.mxu1 %vm851_vm2, %v6370_v47  ;;  %v7220_v47 = vld [vmem:[#allocation20_spill] sm:$0xff] }
 0x2b6   : > { %5075 = vmatmul.mubr.msk.f32.gmra.mrb[46].mxu0 %vm851_vm2, %v6554_v16  ;;  %5322 = vmatmul.mubr.msk.f32.gmra.mrb[16].mxu1 %vm851_vm2, %v6372_v55  ;;  %v7221_v55 = vld [vmem:[#allocation21_spill] sm:$0xff] }
 0x2b7   : > { %5077 = vmatprep.mubr.msk.f32.mxu0 %vm851_vm2, %v6560_v28  ;;  %5324 = vmatprep.mubr.msk.f32.mxu1 %vm851_vm2, %v6382_v13  ;;  %v7222_v13 = vld [vmem:[#allocation22_spill] sm:$0xff] }
 0x2ba   : > { %5078 = vmatmul.mubr.msk.f32.gmra.mrb[48].mxu0 %vm851_vm2, %v6566_v58  ;;  %5325 = vmatmul.mubr.msk.f32.gmra.mrb[18].mxu1 %vm851_vm2, %v6384_v59  ;;  %v7223_v59 = vld [vmem:[#allocation23_spill] sm:$0xff] }
 0x2bb   : > { %5080 = vmatprep.mubr.msk.f32.mxu0 %vm851_vm2, %v6572_v38  ;;  %5327 = vmatprep.mubr.msk.f32.mxu1 %vm851_vm2, %v6393_v51  ;;  %v7224_v51 = vld [vmem:[#allocation24_spill] sm:$0xff] }
 0x2be   : > { %5081 = vmatmul.mubr.msk.f32.gmra.mrb[50].mxu0 %vm851_vm2, %v6578_v39  ;;  %5328 = vmatmul.mubr.msk.f32.gmra.mrb[20].mxu1 %vm851_vm2, %v6395_v50  ;;  %v7225_v50 = vld [vmem:[#allocation25_spill] sm:$0xff] }
 0x2bf   : > { %5083 = vmatprep.mubr.msk.f32.mxu0 %vm851_vm2, %v6584_v61  ;;  %5330 = vmatprep.mubr.msk.f32.mxu1 %vm851_vm2, %v6402_v40  ;;  %v7226_v40 = vld [vmem:[#allocation26_spill] sm:$0xff] }
 0x2c2   : > { %5084 = vmatmul.mubr.msk.f32.gmra.mrb[52].mxu0 %vm851_vm2, %v6590_v41  ;;  %5331 = vmatmul.mubr.msk.f32.gmra.mrb[22].mxu1 %vm851_vm2, %v6404_v37  ;;  %v7227_v37 = vld [vmem:[#allocation27_spill] sm:$0xff] }
 0x2c3   : > { %5086 = vmatprep.mubr.msk.f32.mxu0 %vm851_vm2, %v6596_v62  ;;  %5333 = vmatprep.mubr.msk.f32.mxu1 %vm851_vm2, %v6406_v14  ;;  %v7228_v14 = vld [vmem:[#allocation28_spill] sm:$0xff] }
 0x2c6   : > { %5087 = vmatmul.mubr.msk.f32.gmra.mrb[54].mxu0 %vm851_vm2, %v6604_v45  ;;  %5334 = vmatmul.mubr.msk.f32.gmra.mrb[24].mxu1 %vm851_vm2, %v7206_v5 }
 0x2c7   : > { %5097 = vmatprep.mubr.msk.f32.mxu0 %vm851_vm2, %v7207_v6  ;;  %5336 = vmatprep.mubr.msk.f32.mxu1 %vm851_vm2, %v3298_v0 }
 0x2ca   : > { %5098 = vmatmul.mubr.msk.f32.vlgmr.msra.gmra.mrb[28].mxu0 %vm851_vm2, %v7208_v17  ;;  %5337 = vmatmul.mubr.msk.f32.gmra.mrb[26].mxu1 %vm851_vm2, %v3299_v7 }
 0x2cb   : > { %5100 = vmatprep.mubr.msk.f32.mxu0 %vm851_vm2, %v6632_v15  ;;  %5347 = vmatprep.mubr.msk.f32.mxu1 %vm851_vm2, %v6460_v10  ;;  %v7232_v10 = vld [vmem:[#allocation5_spill] sm:$0xff] }
 0x2ce   : > { %5101 = vmatmul.mubr.msk.f32.gmra.mrb[30].mxu0 %vm851_vm2, %v6641_v8  ;;  %5348 = vmatmul.mubr.msk.f32.vlgmr.msra.gmra.mrb[0].mxu1 %vm851_vm2, %v6466_v11  ;;  %v3647_v11 = vld [vmem:[#allocation2 + $0xf2] sm:$0xff] }
 0x2cf   : > { %5103 = vmatprep.mubr.msk.f32.mxu0 %vm851_vm2, %v7209_v22  ;;  %5350 = vmatprep.mubr.msk.f32.mxu1 %vm851_vm2, %v6474_v24  ;;  %v7233_v24 = vld [vmem:[#allocation32_spill] sm:$0xff] }
 0x2d2   : > { %5104 = vmatmul.mubr.msk.f32.gmra.mrb[32].mxu0 %vm851_vm2, %v7210_v42  ;;  %5351 = vmatmul.mubr.msk.f32.gmra.mrb[2].mxu1 %vm851_vm2, %v6481_v60  ;;  %v7234_v60 = vld [vmem:[#allocation6_spill] sm:$0xff] }
 0x2d3   : > { %5106 = vmatprep.mubr.msk.f32.mxu0 %vm851_vm2, %v7211_v53  ;;  %5353 = vmatprep.mubr.msk.f32.mxu1 %vm851_vm2, %v6488_v25  ;;  %v3648_v25 = vld [vmem:[#allocation2 + $0xfa] sm:$0xff] }
 0x2d6   : > { %5107 = vmatmul.mubr.msk.f32.gmra.mrb[34].mxu0 %vm851_vm2, %v7212_v2  ;;  %5354 = vmatmul.mubr.msk.f32.gmra.mrb[4].mxu1 %vm851_vm2, %v6494_v32 }
 0x2d7   : > { %5109 = vmatprep.mubr.msk.f32.mxu0 %vm851_vm2, %v7213_v21  ;;  %5356 = vmatprep.mubr.msk.f32.mxu1 %vm851_vm2, %v6500_v4 }
 0x2da   : > { %5110 = vmatmul.mubr.msk.f32.gmra.mrb[36].mxu0 %vm851_vm2, %v7214_v18  ;;  %5357 = vmatmul.mubr.msk.f32.gmra.mrb[6].mxu1 %vm851_vm2, %v6506_v33 }
 0x2db   : > { %5112 = vmatprep.mubr.msk.f32.mxu0 %vm851_vm2, %v7215_v23  ;;  %5359 = vmatprep.mubr.msk.f32.mxu1 %vm851_vm2, %v6512_v31 }
 0x2de   : > { %5113 = vmatmul.mubr.msk.f32.gmra.mrb[38].mxu0 %vm851_vm2, %v7216_v35  ;;  %5360 = vmatmul.mubr.msk.f32.gmra.mrb[8].mxu1 %vm851_vm2, %v6518_v20  ;;  %v7047_v20 = vld [vmem:[%s7146_s4] ss:$0 sm:$0xff] }
 0x2df   : > { %5115 = vmatprep.mubr.msk.f32.mxu0 %vm851_vm2, %v7217_v36  ;;  %5362 = vmatprep.mubr.msk.f32.mxu1 %vm851_vm2, %v6524_v12 }
 0x2e2   : > { %5116 = vmatmul.mubr.msk.f32.gmra.mrb[40].mxu0 %vm851_vm2, %v7218_v26  ;;  %5363 = vmatmul.mubr.msk.f32.gmra.mrb[10].mxu1 %vm851_vm2, %v6530_v9 }
 0x2e3   : > { %5118 = vmatprep.mubr.msk.f32.mxu0 %vm851_vm2, %v7219_v34  ;;  %5365 = vmatprep.mubr.msk.f32.mxu1 %vm851_vm2, %v6536_v30 }
 0x2e6   : > { %5119 = vmatmul.mubr.msk.f32.gmra.mrb[42].mxu0 %vm851_vm2, %v7220_v47  ;;  %5366 = vmatmul.mubr.msk.f32.gmra.mrb[12].mxu1 %vm851_vm2, %v6542_v46 }
 0x2e7   : > { %5121 = vmatprep.mubr.msk.f32.mxu0 %vm851_vm2, %v7221_v55  ;;  %5368 = vmatprep.mubr.msk.f32.mxu1 %vm851_vm2, %v6548_v19 }
 0x2ea   : > { %5122 = vmatmul.mubr.msk.f32.gmra.mrb[44].mxu0 %vm851_vm2, %v7222_v13  ;;  %5369 = vmatmul.mubr.msk.f32.gmra.mrb[14].mxu1 %vm851_vm2, %v6554_v16 }
 0x2eb   : > { %5124 = vmatprep.mubr.msk.f32.mxu0 %vm851_vm2, %v7223_v59  ;;  %5371 = vmatprep.mubr.msk.f32.mxu1 %vm851_vm2, %v6560_v28 }
 0x2ee   : > { %5125 = vmatmul.mubr.msk.f32.gmra.mrb[46].mxu0 %vm851_vm2, %v7224_v51  ;;  %5372 = vmatmul.mubr.msk.f32.gmra.mrb[16].mxu1 %vm851_vm2, %v6566_v58 }
 0x2ef   : > { %5127 = vmatprep.mubr.msk.f32.mxu0 %vm851_vm2, %v7225_v50  ;;  %5374 = vmatprep.mubr.msk.f32.mxu1 %vm851_vm2, %v6572_v38 }
 0x2f2   : > { %5128 = vmatmul.mubr.msk.f32.gmra.mrb[48].mxu0 %vm851_vm2, %v7226_v40  ;;  %5375 = vmatmul.mubr.msk.f32.gmra.mrb[18].mxu1 %vm851_vm2, %v6578_v39 }
 0x2f3   : > { %5130 = vmatprep.mubr.msk.f32.mxu0 %vm851_vm2, %v7227_v37  ;;  %5377 = vmatprep.mubr.msk.f32.mxu1 %vm851_vm2, %v6584_v61 }
 0x2f6   : > { %5131 = vmatmul.mubr.msk.f32.gmra.mrb[50].mxu0 %vm851_vm2, %v7228_v14  ;;  %5378 = vmatmul.mubr.msk.f32.gmra.mrb[20].mxu1 %vm851_vm2, %v6590_v41 }
 0x2f7   : > { %5133 = vmatprep.mubr.msk.f32.mxu0 %vm851_vm2, %v7229_v44  ;;  %5380 = vmatprep.mubr.msk.f32.mxu1 %vm851_vm2, %v6596_v62 }
 0x2fa   : > { %5134 = vmatmul.mubr.msk.f32.gmra.mrb[52].mxu0 %vm851_vm2, %v7230_v49  ;;  %5381 = vmatmul.mubr.msk.f32.gmra.mrb[22].mxu1 %vm851_vm2, %v6604_v45 }
 0x2fb   : > { %5136 = vmatprep.mubr.msk.f32.mxu0 %vm851_vm2, %v7231_v63  ;;  %5383 = vmatprep.mubr.msk.f32.mxu1 %vm851_vm2, %v7232_v10 }
 0x2fe   : > { %5137 = vmatmul.mubr.msk.f32.gmra.mrb[54].mxu0 %vm851_vm2, %v7233_v24  ;;  %5384 = vmatmul.mubr.msk.f32.gmra.mrb[24].mxu1 %vm851_vm2, %v7234_v60 }
 0x2ff   : > { %5386 = vmatprep.mubr.msk.f32.mxu1 %vm851_vm2, %v3647_v11 }
 0x302   : > { %5387 = vmatmul.mubr.msk.f32.gmra.mrb[26].mxu1 %vm851_vm2, %v3648_v25 }
 0x39d   : > { %v5099_v32 = vpop.f32.mrb[28].mxu0 }
 0x39e   : > { %v2058_v4 = vpop.f32.mrb[29].mxu0 }
 0x3a1   : > { %v5102_v33 = vpop.f32.mrb[30].mxu0  ;;  %v5349_v31 = vpop.f32.mrb[0].mxu1 }
 0x3a2   : > { %v5461_v12 = vadd.f32 %v5349_v31, %v5099_v32  ;;  %v2068_v9 = vpop.f32.mrb[31].mxu0  ;;  %v3803_v30 = vpop.f32.mrb[1].mxu1 }
 0x3a3   : > { %v5462_v46 = vadd.f32 %v3803_v30, %v2058_v4 }
 0x3a4   : > { %v3978_v19 = vadd.f32 %v5461_v12, %v7047_v20 }
 0x3a5   : > { %v3977_v16 = vadd.f32 %v5462_v46, %v7047_v20  ;;  %v5105_v28 = vpop.f32.mrb[32].mxu0  ;;  %v5352_v58 = vpop.f32.mrb[2].mxu1 }
 0x3a6   : > { %v4006_v38 = vmax.f32 %v3978_v19, 0.0  ;;  %v5463_v39 = vadd.f32 %v5352_v58, %v5102_v33  ;;  %v2078_v61 = vpop.f32.mrb[33].mxu0  ;;  %v3813_v41 = vpop.f32.mrb[3].mxu1 }
 0x3a7   : > { %v4005_v62 = vmax.f32 %v3977_v16, 0.0  ;;  %v5464_v8 = vadd.f32 %v3813_v41, %v2068_v9 }
 0x3a8   : > { %4035 = vst.msk [vmem:[#allocation3 + $0x8] sm:$0xff] %vm4033_vm3, %v4006_v38  ;;  %v3980_v45 = vadd.f32 %v5463_v39, %v7047_v20 }
 0x3a9   : > { %4034 = vst.msk [vmem:[#allocation3] sm:$0xff] %vm4033_vm3, %v4005_v62  ;;  %v3979_v43 = vadd.f32 %v5464_v8, %v7047_v20  ;;  %v5108_v15 = vpop.f32.mrb[34].mxu0  ;;  %v5355_v29 = vpop.f32.mrb[4].mxu1 }
 0x3aa   : > { %v4008_v1 = vmax.f32 %v3980_v45, 0.0  ;;  %v5465_v52 = vadd.f32 %v5355_v29, %v5105_v28  ;;  %v2088_v56 = vpop.f32.mrb[35].mxu0  ;;  %v3823_v27 = vpop.f32.mrb[5].mxu1 }
 0x3ab   : > { %v4007_v54 = vmax.f32 %v3979_v43, 0.0  ;;  %v5466_v48 = vadd.f32 %v3823_v27, %v2078_v61 }
 0x3ac   : > { %4037 = vst.msk [vmem:[#allocation3 + $0x18] sm:$0xff] %vm4033_vm3, %v4008_v1  ;;  %v3982_v57 = vadd.f32 %v5465_v52, %v7047_v20 }
 0x3ad   : > { %4036 = vst.msk [vmem:[#allocation3 + $0x10] sm:$0xff] %vm4033_vm3, %v4007_v54  ;;  %v3981_v3 = vadd.f32 %v5466_v48, %v7047_v20  ;;  %v5111_v0 = vpop.f32.mrb[36].mxu0  ;;  %v5358_v5 = vpop.f32.mrb[6].mxu1 }
 0x3ae   : > { %v4010_v6 = vmax.f32 %v3982_v57, 0.0  ;;  %v5467_v7 = vadd.f32 %v5358_v5, %v5108_v15  ;;  %v2098_v17 = vpop.f32.mrb[37].mxu0  ;;  %v3833_v22 = vpop.f32.mrb[7].mxu1 }
 0x3af   : > { %v4009_v42 = vmax.f32 %v3981_v3, 0.0  ;;  %v5468_v53 = vadd.f32 %v3833_v22, %v2088_v56 }
 0x3b0   : > { %4039 = vst.msk [vmem:[#allocation3 + $0x28] sm:$0xff] %vm4033_vm3, %v4010_v6  ;;  %v3984_v2 = vadd.f32 %v5467_v7, %v7047_v20  ;;  %v4064_v21 = vld [vmem:[#allocation3] ss:$2 sm:$0xff]  ;;  %v4092_v36 = vld [vmem:[#allocation3 + $0x1] ss:$2 sm:$0xff] }
 0x3b1   : > { %4038 = vst.msk [vmem:[#allocation3 + $0x20] sm:$0xff] %vm4033_vm3, %v4009_v42  ;;  %v3983_v18 = vadd.f32 %v5468_v53, %v7047_v20  ;;  %v5114_v23 = vpop.f32.mrb[38].mxu0  ;;  %v5361_v35 = vpop.f32.mrb[8].mxu1  ;;  %v4123_v37 = vmax.f32 %v4064_v21, %v4092_v36 }
 0x3b2   : > { %v4012_v26 = vmax.f32 %v3984_v2, 0.0  ;;  %v5469_v34 = vadd.f32 %v5361_v35, %v5111_v0  ;;  %v2108_v47 = vpop.f32.mrb[39].mxu0  ;;  %v3843_v55 = vpop.f32.mrb[9].mxu1 }
 0x3b3   : > { %v4011_v13 = vmax.f32 %v3983_v18, 0.0  ;;  %v5470_v59 = vadd.f32 %v3843_v55, %v2098_v17 }
 0x3b4   : > { %v4066_v51 = vld [vmem:[#allocation3 + $0x10] ss:$2 sm:$0xff]  ;;  %v4094_v50 = vld [vmem:[#allocation3 + $0x11] ss:$2 sm:$0xff]  ;;  %4041 = vst.msk [vmem:[#allocation3 + $0x38] sm:$0xff] %vm4033_vm3, %v4012_v26  ;;  %v3986_v40 = vadd.f32 %v5469_v34, %v7047_v20 }
 0x3b5   : > { %v4124_v14 = vmax.f32 %v4066_v51, %v4094_v50  ;;  %4040 = vst.msk [vmem:[#allocation3 + $0x30] sm:$0xff] %vm4033_vm3, %v4011_v13  ;;  %v3985_v44 = vadd.f32 %v5470_v59, %v7047_v20  ;;  %v5117_v49 = vpop.f32.mrb[40].mxu0  ;;  %v5364_v63 = vpop.f32.mrb[10].mxu1 }
 0x3b6   : > { %v4014_v10 = vmax.f32 %v3986_v40, 0.0  ;;  %v5471_v11 = vadd.f32 %v5364_v63, %v5114_v23  ;;  %v2118_v24 = vpop.f32.mrb[41].mxu0  ;;  %v3853_v60 = vpop.f32.mrb[11].mxu1 }
 0x3b7   : > { %v4138_v25 = vmax.f32 %v4123_v37, %v4124_v14  ;;  %v4013_v32 = vmax.f32 %v3985_v44, 0.0  ;;  %v5472_v4 = vadd.f32 %v3853_v60, %v2108_v47 }
 0x3b8   : > { %v4068_v33 = vld [vmem:[#allocation3 + $0x20] ss:$2 sm:$0xff]  ;;  %v4096_v31 = vld [vmem:[#allocation3 + $0x21] ss:$2 sm:$0xff]  ;;  %4043 = vst.msk [vmem:[#allocation3 + $0x48] sm:$0xff] %vm4033_vm3, %v4014_v10  ;;  %v3988_v12 = vadd.f32 %v5471_v11, %v7047_v20 }
 0x3b9   : > { %v4586_v9 = vpack.c.bf16 %v4138_v25, %v4138_v25  ;;  %v4125_v30 = vmax.f32 %v4068_v33, %v4096_v31  ;;  %4042 = vst.msk [vmem:[#allocation3 + $0x40] sm:$0xff] %vm4033_vm3, %v4013_v32  ;;  %v3987_v46 = vadd.f32 %v5472_v4, %v7047_v20  ;;  %v5120_v19 = vpop.f32.mrb[42].mxu0  ;;  %v5367_v16 = vpop.f32.mrb[12].mxu1 }
 0x3ba   : > { %v4016_v28 = vmax.f32 %v3988_v12, 0.0  ;;  %v5473_v58 = vadd.f32 %v5367_v16, %v5117_v49  ;;  %v2128_v38 = vpop.f32.mrb[43].mxu0  ;;  %v3863_v39 = vpop.f32.mrb[13].mxu1 }
 0x3bb   : > { %4209 = vst.msk [vmem:[%s7071_s16] sm:$0xf] %vm4208_vm4, %v4586_v9  ;;  %v4139_v61 = vmax.f32 %v4124_v14, %v4125_v30  ;;  %v4015_v41 = vmax.f32 %v3987_v46, 0.0  ;;  %v5474_v62 = vadd.f32 %v3863_v39, %v2118_v24 }
 0x3bc   : > { %v4070_v8 = vld [vmem:[#allocation3 + $0x30] ss:$2 sm:$0xff]  ;;  %v4098_v45 = vld [vmem:[#allocation3 + $0x31] ss:$2 sm:$0xff]  ;;  %4045 = vst.msk [vmem:[#allocation3 + $0x58] sm:$0xff] %vm4033_vm3, %v4016_v28  ;;  %v3990_v43 = vadd.f32 %v5473_v58, %v7047_v20 }
 0x3bd   : > { %v4587_v15 = vpack.c.bf16 %v4139_v61, %v4139_v61  ;;  %v4126_v29 = vmax.f32 %v4070_v8, %v4098_v45  ;;  %4044 = vst.msk [vmem:[#allocation3 + $0x50] sm:$0xff] %vm4033_vm3, %v4015_v41  ;;  %v3989_v1 = vadd.f32 %v5474_v62, %v7047_v20  ;;  %v5123_v52 = vpop.f32.mrb[44].mxu0  ;;  %v5370_v56 = vpop.f32.mrb[14].mxu1 }
 0x3be   : > { %v4018_v27 = vmax.f32 %v3990_v43, 0.0  ;;  %v5475_v54 = vadd.f32 %v5370_v56, %v5120_v19  ;;  %v2138_v48 = vpop.f32.mrb[45].mxu0  ;;  %v3873_v57 = vpop.f32.mrb[15].mxu1 }
 0x3bf   : > { %4210 = vst.msk [vmem:[%s7071_s16 + $0x4] sm:$0xf] %vm4208_vm4, %v4587_v15  ;;  %v4140_v3 = vmax.f32 %v4125_v30, %v4126_v29  ;;  %v4017_v0 = vmax.f32 %v3989_v1, 0.0  ;;  %v5476_v5 = vadd.f32 %v3873_v57, %v2128_v38 }
 0x3c0   : > { %v4072_v6 = vld [vmem:[#allocation3 + $0x40] ss:$2 sm:$0xff]  ;;  %v4100_v7 = vld [vmem:[#allocation3 + $0x41] ss:$2 sm:$0xff]  ;;  %4047 = vst.msk [vmem:[#allocation3 + $0x68] sm:$0xff] %vm4033_vm3, %v4018_v27  ;;  %v3992_v17 = vadd.f32 %v5475_v54, %v7047_v20 }
 0x3c1   : > { %v4588_v22 = vpack.c.bf16 %v4140_v3, %v4140_v3  ;;  %v4127_v42 = vmax.f32 %v4072_v6, %v4100_v7  ;;  %4046 = vst.msk [vmem:[#allocation3 + $0x60] sm:$0xff] %vm4033_vm3, %v4017_v0  ;;  %v3991_v53 = vadd.f32 %v5476_v5, %v7047_v20  ;;  %v5126_v2 = vpop.f32.mrb[46].mxu0  ;;  %v5373_v21 = vpop.f32.mrb[16].mxu1 }
 0x3c2   : > { %v4020_v18 = vmax.f32 %v3992_v17, 0.0  ;;  %v5477_v23 = vadd.f32 %v5373_v21, %v5123_v52  ;;  %v2148_v35 = vpop.f32.mrb[47].mxu0  ;;  %v3883_v36 = vpop.f32.mrb[17].mxu1 }
 0x3c3   : > { %4211 = vst.msk [vmem:[%s7071_s16 + $0x8] sm:$0xf] %vm4208_vm4, %v4588_v22  ;;  %v4141_v26 = vmax.f32 %v4126_v29, %v4127_v42  ;;  %v4019_v34 = vmax.f32 %v3991_v53, 0.0  ;;  %v5478_v47 = vadd.f32 %v3883_v36, %v2138_v48 }
 0x3c4   : > { %v4074_v55 = vld [vmem:[#allocation3 + $0x50] ss:$2 sm:$0xff]  ;;  %v4102_v13 = vld [vmem:[#allocation3 + $0x51] ss:$2 sm:$0xff]  ;;  %4049 = vst.msk [vmem:[#allocation3 + $0x78] sm:$0xff] %vm4033_vm3, %v4020_v18  ;;  %v3994_v59 = vadd.f32 %v5477_v23, %v7047_v20 }
 0x3c5   : > { %v4589_v51 = vpack.c.bf16 %v4141_v26, %v4141_v26  ;;  %v4128_v50 = vmax.f32 %v4074_v55, %v4102_v13  ;;  %4048 = vst.msk [vmem:[#allocation3 + $0x70] sm:$0xff] %vm4033_vm3, %v4019_v34  ;;  %v3993_v40 = vadd.f32 %v5478_v47, %v7047_v20  ;;  %v5129_v37 = vpop.f32.mrb[48].mxu0  ;;  %v5376_v14 = vpop.f32.mrb[18].mxu1 }
 0x3c6   : > { %v4022_v44 = vmax.f32 %v3994_v59, 0.0  ;;  %v5479_v49 = vadd.f32 %v5376_v14, %v5126_v2  ;;  %v2158_v63 = vpop.f32.mrb[49].mxu0  ;;  %v3893_v10 = vpop.f32.mrb[19].mxu1 }
 0x3c7   : > { %4212 = vst.msk [vmem:[%s7071_s16 + $0xc] sm:$0xf] %vm4208_vm4, %v4589_v51  ;;  %v4142_v11 = vmax.f32 %v4127_v42, %v4128_v50  ;;  %v4021_v24 = vmax.f32 %v3993_v40, 0.0  ;;  %v5480_v60 = vadd.f32 %v3893_v10, %v2148_v35 }
 0x3c8   : > { %v4076_v25 = vld [vmem:[#allocation3 + $0x60] ss:$2 sm:$0xff]  ;;  %v4104_v32 = vld [vmem:[#allocation3 + $0x61] ss:$2 sm:$0xff]  ;;  %4051 = vst.msk [vmem:[#allocation3 + $0x88] sm:$0xff] %vm4033_vm3, %v4022_v44  ;;  %v3996_v4 = vadd.f32 %v5479_v49, %v7047_v20 }
 0x3c9   : > { %v4590_v33 = vpack.c.bf16 %v4142_v11, %v4142_v11  ;;  %v4129_v31 = vmax.f32 %v4076_v25, %v4104_v32  ;;  %4050 = vst.msk [vmem:[#allocation3 + $0x80] sm:$0xff] %vm4033_vm3, %v4021_v24  ;;  %v3995_v12 = vadd.f32 %v5480_v60, %v7047_v20  ;;  %v5132_v9 = vpop.f32.mrb[50].mxu0  ;;  %v5379_v30 = vpop.f32.mrb[20].mxu1 }
 0x3ca   : > { %v4024_v46 = vmax.f32 %v3996_v4, 0.0  ;;  %v5481_v19 = vadd.f32 %v5379_v30, %v5129_v37  ;;  %v2168_v16 = vpop.f32.mrb[51].mxu0  ;;  %v3903_v28 = vpop.f32.mrb[21].mxu1 }
 0x3cb   : > { %4213 = vst.msk [vmem:[%s7071_s16 + $0x10] sm:$0xf] %vm4208_vm4, %v4590_v33  ;;  %v4143_v58 = vmax.f32 %v4128_v50, %v4129_v31  ;;  %v4023_v38 = vmax.f32 %v3995_v12, 0.0  ;;  %v5482_v39 = vadd.f32 %v3903_v28, %v2158_v63  ;;  %v4122_v28 = vld [vmem:[#allocation3 + $0xe1] ss:$2 sm:$0xff] }
 0x3cc   : > { %v4078_v61 = vld [vmem:[#allocation3 + $0x70] ss:$2 sm:$0xff]  ;;  %v4106_v41 = vld [vmem:[#allocation3 + $0x71] ss:$2 sm:$0xff]  ;;  %4053 = vst.msk [vmem:[#allocation3 + $0x98] sm:$0xff] %vm4033_vm3, %v4024_v46  ;;  %v3998_v62 = vadd.f32 %v5481_v19, %v7047_v20 }
 0x3cd   : > { %v4591_v8 = vpack.c.bf16 %v4143_v58, %v4143_v58  ;;  %v4130_v45 = vmax.f32 %v4078_v61, %v4106_v41  ;;  %4052 = vst.msk [vmem:[#allocation3 + $0x90] sm:$0xff] %vm4033_vm3, %v4023_v38  ;;  %v3997_v43 = vadd.f32 %v5482_v39, %v7047_v20  ;;  %v5135_v15 = vpop.f32.mrb[52].mxu0  ;;  %v5382_v29 = vpop.f32.mrb[22].mxu1  ;;  %v4120_v19 = vld [vmem:[#allocation3 + $0xe0] ss:$2 sm:$0xff] }
 0x3ce   : > { %v4026_v1 = vmax.f32 %v3998_v62, 0.0  ;;  %v5483_v52 = vadd.f32 %v5382_v29, %v5132_v9  ;;  %v2178_v56 = vpop.f32.mrb[53].mxu0  ;;  %v3913_v27 = vpop.f32.mrb[23].mxu1  ;;  %v4137_v61 = vmax.f32 %v4120_v19, %v4122_v28 }
 0x3cf   : > { %4214 = vst.msk [vmem:[%s7071_s16 + $0x14] sm:$0xf] %vm4208_vm4, %v4591_v8  ;;  %v4144_v54 = vmax.f32 %v4129_v31, %v4130_v45  ;;  %v4025_v48 = vmax.f32 %v3997_v43, 0.0  ;;  %v5484_v57 = vadd.f32 %v3913_v27, %v2168_v16 }
 0x3d0   : > { %v4080_v3 = vld [vmem:[#allocation3 + $0x80] ss:$2 sm:$0xff]  ;;  %v4108_v0 = vld [vmem:[#allocation3 + $0x81] ss:$2 sm:$0xff]  ;;  %4055 = vst.msk [vmem:[#allocation3 + $0xa8] sm:$0xff] %vm4033_vm3, %v4026_v1  ;;  %v4000_v5 = vadd.f32 %v5483_v52, %v7047_v20 }
 0x3d1   : > { %v4592_v6 = vpack.c.bf16 %v4144_v54, %v4144_v54  ;;  %v4131_v7 = vmax.f32 %v4080_v3, %v4108_v0  ;;  %4054 = vst.msk [vmem:[#allocation3 + $0xa0] sm:$0xff] %vm4033_vm3, %v4025_v48  ;;  %v3999_v17 = vadd.f32 %v5484_v57, %v7047_v20  ;;  %v5138_v22 = vpop.f32.mrb[54].mxu0  ;;  %v5385_v42 = vpop.f32.mrb[24].mxu1 }
 0x3d2   : > { %v4028_v53 = vmax.f32 %v4000_v5, 0.0  ;;  %v5485_v2 = vadd.f32 %v5385_v42, %v5135_v15  ;;  %v2188_v21 = vpop.f32.mrb[55].mxu0  ;;  %v3923_v18 = vpop.f32.mrb[25].mxu1 }
 0x3d3   : > { %4215 = vst.msk [vmem:[%s7071_s16 + $0x18] sm:$0xf] %vm4208_vm4, %v4592_v6  ;;  %v4145_v23 = vmax.f32 %v4130_v45, %v4131_v7  ;;  %v4027_v35 = vmax.f32 %v3999_v17, 0.0  ;;  %v5486_v36 = vadd.f32 %v3923_v18, %v2178_v56 }
 0x3d4   : > { %v4082_v26 = vld [vmem:[#allocation3 + $0x90] ss:$2 sm:$0xff]  ;;  %v4110_v34 = vld [vmem:[#allocation3 + $0x91] ss:$2 sm:$0xff]  ;;  %4057 = vst.msk [vmem:[#allocation3 + $0xb8] sm:$0xff] %vm4033_vm3, %v4028_v53  ;;  %v4002_v47 = vadd.f32 %v5485_v2, %v7047_v20 }
 0x3d5   : > { %v4593_v55 = vpack.c.bf16 %v4145_v23, %v4145_v23  ;;  %v4132_v13 = vmax.f32 %v4082_v26, %v4110_v34  ;;  %4056 = vst.msk [vmem:[#allocation3 + $0xb0] sm:$0xff] %vm4033_vm3, %v4027_v35  ;;  %v4001_v59 = vadd.f32 %v5486_v36, %v7047_v20  ;;  %v5388_v51 = vpop.f32.mrb[26].mxu1 }
 0x3d6   : > { %v4030_v50 = vmax.f32 %v4002_v47, 0.0  ;;  %v5487_v40 = vadd.f32 %v5388_v51, %v5138_v22  ;;  %v3933_v37 = vpop.f32.mrb[27].mxu1 }
 0x3d7   : > { %4216 = vst.msk [vmem:[%s7071_s16 + $0x1c] sm:$0xf] %vm4208_vm4, %v4593_v55  ;;  %v4146_v14 = vmax.f32 %v4131_v7, %v4132_v13  ;;  %v4029_v44 = vmax.f32 %v4001_v59, 0.0  ;;  %v5488_v49 = vadd.f32 %v3933_v37, %v2188_v21 }
 0x3d8   : > { %v4084_v63 = vld [vmem:[#allocation3 + $0xa0] ss:$2 sm:$0xff]  ;;  %v4112_v10 = vld [vmem:[#allocation3 + $0xa1] ss:$2 sm:$0xff]  ;;  %4059 = vst.msk [vmem:[#allocation3 + $0xc8] sm:$0xff] %vm4033_vm3, %v4030_v50  ;;  %v4004_v11 = vadd.f32 %v5487_v40, %v7047_v20 }
 0x3d9   : > { %v4594_v24 = vpack.c.bf16 %v4146_v14, %v4146_v14  ;;  %v4133_v60 = vmax.f32 %v4084_v63, %v4112_v10  ;;  %4058 = vst.msk [vmem:[#allocation3 + $0xc0] sm:$0xff] %vm4033_vm3, %v4029_v44  ;;  %v4003_v25 = vadd.f32 %v5488_v49, %v7047_v20 }
 0x3da   : > { %v4032_v32 = vmax.f32 %v4004_v11, 0.0 }
 0x3db   : > { %4217 = vst.msk [vmem:[%s7071_s16 + $0x20] sm:$0xf] %vm4208_vm4, %v4594_v24  ;;  %v4147_v4 = vmax.f32 %v4132_v13, %v4133_v60  ;;  %v4031_v33 = vmax.f32 %v4003_v25, 0.0 }
 0x3dc   : > { %v4086_v31 = vld [vmem:[#allocation3 + $0xb0] ss:$2 sm:$0xff]  ;;  %v4114_v12 = vld [vmem:[#allocation3 + $0xb1] ss:$2 sm:$0xff]  ;;  %4061 = vst.msk [vmem:[#allocation3 + $0xd8] sm:$0xff] %vm4033_vm3, %v4032_v32 }
 0x3dd   : > { %v4595_v9 = vpack.c.bf16 %v4147_v4, %v4147_v4  ;;  %v4134_v30 = vmax.f32 %v4086_v31, %v4114_v12  ;;  %4060 = vst.msk [vmem:[#allocation3 + $0xd0] sm:$0xff] %vm4033_vm3, %v4031_v33 }
 0x3df   : > { %4218 = vst.msk [vmem:[%s7071_s16 + $0x24] sm:$0xf] %vm4208_vm4, %v4595_v9  ;;  %v4148_v46 = vmax.f32 %v4133_v60, %v4134_v30 }
 0x3e0   : > { %v4088_v20 = vld [vmem:[#allocation3 + $0xc0] ss:$2 sm:$0xff]  ;;  %v4116_v16 = vld [vmem:[#allocation3 + $0xc1] ss:$2 sm:$0xff] }
 0x3e1   : > { %v4596_v58 = vpack.c.bf16 %v4148_v46, %v4148_v46  ;;  %v4135_v38 = vmax.f32 %v4088_v20, %v4116_v16 }
 0x3e3   : > { %4219 = vst.msk [vmem:[%s7071_s16 + $0x28] sm:$0xf] %vm4208_vm4, %v4596_v58  ;;  %v4149_v39 = vmax.f32 %v4134_v30, %v4135_v38 }
 0x3e4   : > { %v4090_v41 = vld [vmem:[#allocation3 + $0xd0] ss:$2 sm:$0xff]  ;;  %v4118_v62 = vld [vmem:[#allocation3 + $0xd1] ss:$2 sm:$0xff] }
 0x3e5   : > { %v4597_v8 = vpack.c.bf16 %v4149_v39, %v4149_v39  ;;  %v4136_v45 = vmax.f32 %v4090_v41, %v4118_v62 }
 0x3e7   : > { %4220 = vst.msk [vmem:[%s7071_s16 + $0x2c] sm:$0xf] %vm4208_vm4, %v4597_v8  ;;  %v4150_v43 = vmax.f32 %v4135_v38, %v4136_v45  ;;  %v4151_v15 = vmax.f32 %v4136_v45, %v4137_v61 }
 0x3e9   : > { %v4598_v29 = vpack.c.bf16 %v4150_v43, %v4150_v43  ;;  %v4599_v1 = vpack.c.bf16 %v4151_v15, %v4151_v15 }
 0x3eb   : > { %4221 = vst.msk [vmem:[%s7071_s16 + $0x30] sm:$0xf] %vm4208_vm4, %v4598_v29  ;;  %4222 = vst.msk [vmem:[%s7071_s16 + $0x34] sm:$0xf] %vm4208_vm4, %v4599_v1 }
 0x3ec PF: > { %s15_s18 = sadd.s32 1, %s5722_s18  }
 0x3ed   : > { %p12_p4 = scmp.ge.s32.totalorder %s15_s18, 4  }
 0x3ef   :  { %14 = sbr.rel (!%p12_p4) target bundleno = 1 (0x1), region = 99 }

// kernel: fashion_cnn_forward.3
= control target key start
LH: loop header
LB: loop body
LE: loop exit
PB: predicated region body
PF: predicated region fallthrough
CT: control target
= control target key end

     0   :  { %s6830_s12 = smov 0   ;;  %s8250_s0 = inlined_call_operand.vmem [shape: bf16[16,7168], index: 0, kind: input, shape index: {}]   ;;  %s8251_s1 = inlined_call_operand.vmem [shape: bf16[7168,128], index: 1, kind: input, shape index: {}]   ;;  %s8252_s2 = inlined_call_operand.vmem [shape: f32[1,128], index: 2, kind: input, shape index: {}]   ;;  %s8253_s3 = inlined_call_operand.vmem [shape: f32[16,128], index: 3, kind: output, shape index: {}]  }
   0x1 LB: > { %s5159_s13 = sadd.s32 4294967295, %s6808_s12   ;;  %p5163_p0 = scmp.ge.s32.totalorder %s6808_s12, 1  ;;  %s6808_s12 = sphi %s6830_s12, %s13_s12  }
   0x2   : > { %p137_p1 = scmp.lt.s32.totalorder %s6808_s12, 3 }
   0x4   : > { %p138_p2 = pnand %p5163_p0, %p137_p1 }
   0x5   : > { %v6298_v0 = vld [vmem:[%s8251_s1 + $0x40] sm:$0xff] (!%p138_p2)   ;;  %v6302_v4 = vld [vmem:[%s8251_s1 + $0x48] sm:$0xff] (!%p138_p2)   ;;  %v6306_v8 = vld [vmem:[%s8251_s1 + $0x50] sm:$0xff] (!%p138_p2)   ;;  %p160_p3 = scmp.lt.s32.totalorder (!%p138_p2), %s5159_s13, 1 }
   0x6   : > { %141 = sbr.rel (%p138_p2) target bundleno = 675 (0x2a3), region = 32  ;;  %v6299_v1 = vld [vmem:[%s8251_s1 + $0xc0] sm:$0xff] (!%p138_p2)   ;;  %5673 = vmatprep.subr.bf16.mxu0 (!%p138_p2), %v6298_v0  ;;  %v6303_v5 = vld [vmem:[%s8251_s1 + $0xc8] sm:$0xff] (!%p138_p2)   ;;  %v6307_v9 = vld [vmem:[%s8251_s1 + $0xd0] sm:$0xff] (!%p138_p2)  }
   0x7   : > { %v6300_v2 = vld [vmem:[%s8251_s1] sm:$0xff] (!%p138_p2)   ;;  %5695 = vmatprep.subr.bf16.mxu1 (!%p138_p2), %v6299_v1  ;;  %v6304_v6 = vld [vmem:[%s8251_s1 + $0x8] sm:$0xff] (!%p138_p2)   ;;  %v6308_v10 = vld [vmem:[%s8251_s1 + $0x10] sm:$0xff] (!%p138_p2)  }
   0x8   : > { %v6301_v3 = vld [vmem:[%s8251_s1 + $0x80] sm:$0xff] (!%p138_p2)   ;;  %5674 = vmatpush3.bf16.msra.mxu0 (!%p138_p2), %v6300_v2  ;;  %v6305_v7 = vld [vmem:[%s8251_s1 + $0x88] sm:$0xff] (!%p138_p2)   ;;  %v6309_v11 = vld [vmem:[%s8251_s1 + $0x90] sm:$0xff] (!%p138_p2)  }
   0x9   : > { %5696 = vmatpush3.bf16.msra.mxu1 (!%p138_p2), %v6301_v3  ;;  %5675 = vmatprep.subr.bf16.mxu0 (!%p138_p2), %v6302_v4  ;;  %v6310_v12 = vld [vmem:[%s8251_s1 + $0x58] sm:$0xff] (!%p138_p2)   ;;  %v6314_v16 = vld [vmem:[%s8251_s1 + $0x60] sm:$0xff] (!%p138_p2)   ;;  %v6318_v20 = vld [vmem:[%s8251_s1 + $0x68] sm:$0xff] (!%p138_p2)  }
   0xa   : > { %5697 = vmatprep.subr.bf16.mxu1 (!%p138_p2), %v6303_v5  ;;  %v6311_v13 = vld [vmem:[%s8251_s1 + $0xd8] sm:$0xff] (!%p138_p2)   ;;  %v6315_v17 = vld [vmem:[%s8251_s1 + $0xe0] sm:$0xff] (!%p138_p2)   ;;  %v6319_v21 = vld [vmem:[%s8251_s1 + $0xe8] sm:$0xff] (!%p138_p2)  }
   0xb   : > { %v6312_v14 = vld [vmem:[%s8251_s1 + $0x18] sm:$0xff] (!%p138_p2)   ;;  %v6316_v18 = vld [vmem:[%s8251_s1 + $0x20] sm:$0xff] (!%p138_p2)   ;;  %v6320_v22 = vld [vmem:[%s8251_s1 + $0x28] sm:$0xff] (!%p138_p2)  }
   0xc   : > { %5676 = vmatpush3.bf16.msra.mxu0 (!%p138_p2), %v6304_v6  ;;  %v6313_v15 = vld [vmem:[%s8251_s1 + $0x98] sm:$0xff] (!%p138_p2)   ;;  %v6317_v19 = vld [vmem:[%s8251_s1 + $0xa0] sm:$0xff] (!%p138_p2)   ;;  %v6321_v23 = vld [vmem:[%s8251_s1 + $0xa8] sm:$0xff] (!%p138_p2)  }
   0xd   : > { %5698 = vmatpush3.bf16.msra.mxu1 %v6305_v7  ;;  %5677 = vmatprep.subr.bf16.mxu0 %v6306_v8  ;;  %s8255_s13 = smov (!%p160_p3, %s5159_s13), 1  ;;  %v6322_v24 = vld [vmem:[%s8251_s1 + $0x70] sm:$0xff]   ;;  %v6326_v28 = vld [vmem:[%s8251_s1 + $0x78] sm:$0xff]   ;;  %v6334_v38 = vld [vmem:[%s8251_s1 + $0x140] sm:$0xff]  }
   0xe   : > { %5699 = vmatprep.subr.bf16.mxu1 %v6307_v9  ;;  %v6323_v25 = vld [vmem:[%s8251_s1 + $0xf0] sm:$0xff]   ;;  %s6289_s16 = smul.u32 224, %s8255_s13  ;;  %v6327_v29 = vld [vmem:[%s8251_s1 + $0xf8] sm:$0xff]   ;;  %v6335_v39 = vld [vmem:[%s8251_s1 + $0x1c0] sm:$0xff]  }
   0xf   : > { %v6324_v26 = vld [vmem:[%s8251_s1 + $0x30] sm:$0xff]   ;;  %v6328_v30 = vld [vmem:[%s8251_s1 + $0x38] sm:$0xff]   ;;  %v6336_v40 = vld [vmem:[%s8251_s1 + $0x100] sm:$0xff]  }
  0x10   : > { %5678 = vmatpush3.bf16.msra.mxu0 %v6308_v10  ;;  %v6325_v27 = vld [vmem:[%s8251_s1 + $0xb0] sm:$0xff]   ;;  %s6938_s27 = scalar_lea.vmem %s8250_s0, %s6289_s16  ;;  %v6329_v31 = vld [vmem:[%s8251_s1 + $0xb8] sm:$0xff]   ;;  %v6337_v41 = vld [vmem:[%s8251_s1 + $0x180] sm:$0xff]  }
  0x11   : > { %5700 = vmatpush3.bf16.msra.mxu1 %v6309_v11  ;;  %5679 = vmatprep.subr.bf16.mxu0 %v6310_v12  ;;  %v170_v32 = vld [vmem:[%s6938_s27] sm:$0xff]  ;;  %v171_v33 = vld [vmem:[%s6938_s27 + $0x8] sm:$0xff]  ;;  %v6342_v46 = vld [vmem:[%s8251_s1 + $0x150] sm:$0xff]  }
  0x12   : > { %5701 = vmatprep.subr.bf16.mxu1 %v6311_v13  ;;  %v5167_v34 = vcombine.low %v170_v32, %v170_v32  ;;  %v5168_v35 = vcombine.high %v170_v32, %v170_v32  ;;  %v5169_v36 = vcombine.low %v171_v33, %v171_v33  ;;  %v5170_v37 = vcombine.high %v171_v33, %v171_v33  ;;  %v6338_v42 = vld [vmem:[%s8251_s1 + $0x148] sm:$0xff]   ;;  %v6343_v47 = vld [vmem:[%s8251_s1 + $0x1d0] sm:$0xff]   ;;  %v6346_v50 = vld [vmem:[%s8251_s1 + $0x158] sm:$0xff]  }
  0x13   : > { %v6339_v43 = vld [vmem:[%s8251_s1 + $0x1c8] sm:$0xff]   ;;  %v6344_v48 = vld [vmem:[%s8251_s1 + $0x110] sm:$0xff]   ;;  %v6347_v51 = vld [vmem:[%s8251_s1 + $0x1d8] sm:$0xff]  }
  0x14   : > { %5680 = vmatpush3.bf16.msra.mxu0 %v6312_v14  ;;  %4017 = vmatprep.mubr.bf16.mxu0 %v5168_v35  ;;  %v6340_v44 = vld [vmem:[%s8251_s1 + $0x108] sm:$0xff]   ;;  %v6345_v49 = vld [vmem:[%s8251_s1 + $0x190] sm:$0xff]   ;;  %v6348_v52 = vld [vmem:[%s8251_s1 + $0x118] sm:$0xff]  }
  0x15   : > { %5702 = vmatpush3.bf16.msra.mxu1 %v6313_v15  ;;  %5681 = vmatprep.subr.bf16.mxu0 %v6314_v16  ;;  %v6341_v45 = vld [vmem:[%s8251_s1 + $0x188] sm:$0xff]   ;;  %v6349_v53 = vld [vmem:[%s8251_s1 + $0x198] sm:$0xff]   ;;  %v6350_v54 = vld [vmem:[%s8251_s1 + $0x160] sm:$0xff]  }
  0x16   : > { %5703 = vmatprep.subr.bf16.mxu1 %v6315_v17  ;;  %4057 = vmatprep.mubr.bf16.mxu1 %v5170_v37  ;;  %v6351_v55 = vld [vmem:[%s8251_s1 + $0x1e0] sm:$0xff]   ;;  %v6354_v58 = vld [vmem:[%s8251_s1 + $0x168] sm:$0xff]   ;;  %v6358_v62 = vld [vmem:[%s8251_s1 + $0x170] sm:$0xff]  }
  0x17   : > { %v6352_v56 = vld [vmem:[%s8251_s1 + $0x120] sm:$0xff]   ;;  %v6355_v59 = vld [vmem:[%s8251_s1 + $0x1e8] sm:$0xff]   ;;  %v6359_v63 = vld [vmem:[%s8251_s1 + $0x1f0] sm:$0xff]  }
  0x18   : > { %5682 = vmatpush3.bf16.msra.mxu0 %v6316_v18  ;;  %v6353_v57 = vld [vmem:[%s8251_s1 + $0x1a0] sm:$0xff]   ;;  %v6356_v60 = vld [vmem:[%s8251_s1 + $0x128] sm:$0xff]   ;;  %v6360_v0 = vld [vmem:[%s8251_s1 + $0x130] sm:$0xff]  }
  0x19   : > { %5704 = vmatpush3.bf16.msra.mxu1 %v6317_v19  ;;  %5683 = vmatprep.subr.bf16.mxu0 %v6318_v20  ;;  %v6357_v61 = vld [vmem:[%s8251_s1 + $0x1a8] sm:$0xff]   ;;  %v6361_v1 = vld [vmem:[%s8251_s1 + $0x1b0] sm:$0xff]   ;;  %v6362_v2 = vld [vmem:[%s8251_s1 + $0x178] sm:$0xff]  }
  0x1a   : > { %5705 = vmatprep.subr.bf16.mxu1 %v6319_v21  ;;  %v6363_v3 = vld [vmem:[%s8251_s1 + $0x1f8] sm:$0xff]   ;;  %v172_v6 = vld [vmem:[%s6938_s27 + $0x10] sm:$0xff]  ;;  %v6370_v12 = vld [vmem:[%s8251_s1 + $0x240] sm:$0xff]  }
  0x1b   : > { %v6364_v4 = vld [vmem:[%s8251_s1 + $0x138] sm:$0xff]   ;;  %v5171_v7 = vcombine.low %v172_v6, %v172_v6  ;;  %v5172_v8 = vcombine.high %v172_v6, %v172_v6  ;;  %v6371_v13 = vld [vmem:[%s8251_s1 + $0x2c0] sm:$0xff]   ;;  %v6374_v16 = vld [vmem:[%s8251_s1 + $0x248] sm:$0xff]  }
  0x1c   : > { %5684 = vmatpush3.bf16.msra.mxu0 %v6320_v22  ;;  %v6365_v5 = vld [vmem:[%s8251_s1 + $0x1b8] sm:$0xff]   ;;  %v6372_v14 = vld [vmem:[%s8251_s1 + $0x200] sm:$0xff]   ;;  %v6375_v17 = vld [vmem:[%s8251_s1 + $0x2c8] sm:$0xff]  }
  0x1d   : > { %5706 = vmatpush3.bf16.msra.mxu1 %v6321_v23  ;;  %5685 = vmatprep.subr.bf16.mxu0 %v6322_v24  ;;  %v173_v9 = vld [vmem:[%s6938_s27 + $0x18] sm:$0xff]  ;;  %v6373_v15 = vld [vmem:[%s8251_s1 + $0x280] sm:$0xff]   ;;  %v6376_v18 = vld [vmem:[%s8251_s1 + $0x208] sm:$0xff]  }
  0x1e   : > { %5707 = vmatprep.subr.bf16.mxu1 %v6323_v25  ;;  %v5173_v10 = vcombine.low %v173_v9, %v173_v9  ;;  %v5174_v11 = vcombine.high %v173_v9, %v173_v9  ;;  %v6377_v19 = vld [vmem:[%s8251_s1 + $0x288] sm:$0xff]   ;;  %v6378_v20 = vld [vmem:[%s8251_s1 + $0x250] sm:$0xff]   ;;  %v6382_v24 = vld [vmem:[%s8251_s1 + $0x258] sm:$0xff]  }
  0x1f   : > { %v6379_v21 = vld [vmem:[%s8251_s1 + $0x2d0] sm:$0xff]   ;;  %v6383_v25 = vld [vmem:[%s8251_s1 + $0x2d8] sm:$0xff]   ;;  %v6390_v32 = vld [vmem:[%s8251_s1 + $0x268] sm:$0xff]  }
  0x20   : > { %5686 = vmatpush3.bf16.msra.mxu0 %v6324_v26  ;;  %v6380_v22 = vld [vmem:[%s8251_s1 + $0x210] sm:$0xff]   ;;  %v6384_v26 = vld [vmem:[%s8251_s1 + $0x218] sm:$0xff]   ;;  %v6391_v33 = vld [vmem:[%s8251_s1 + $0x2e8] sm:$0xff]  }
  0x21   : > { %5708 = vmatpush3.bf16.msra.mxu1 %v6325_v27  ;;  %5687 = vmatprep.subr.bf16.mxu0 %v6326_v28  ;;  %v6381_v23 = vld [vmem:[%s8251_s1 + $0x290] sm:$0xff]   ;;  %v6385_v27 = vld [vmem:[%s8251_s1 + $0x298] sm:$0xff]   ;;  %v6386_v28 = vld [vmem:[%s8251_s1 + $0x260] sm:$0xff]  }
  0x22   : > { %5709 = vmatprep.subr.bf16.mxu1 %v6327_v29  ;;  %v6387_v29 = vld [vmem:[%s8251_s1 + $0x2e0] sm:$0xff]   ;;  %v6393_v35 = vld [vmem:[%s8251_s1 + $0x2a8] sm:$0xff]   ;;  %v6395_v37 = vld [vmem:[%s8251_s1 + $0x2f0] sm:$0xff]  }
  0x23   : > { %v6426_v6 = vld [vmem:[%s8251_s1 + $0x368] sm:$0xff]  }
  0x24   : > { %5688 = vmatpush3.bf16.msra.mxu0 %v6328_v30  ;;  %v6388_v30 = vld [vmem:[%s8251_s1 + $0x220] sm:$0xff]   ;;  %v6429_v9 = vld [vmem:[%s8251_s1 + $0x3a8] sm:$0xff]  }
  0x25   : > { %5710 = vmatpush3.bf16.msra.mxu1 %v6329_v31  ;;  %5717 = vmatprep.subr.bf16.mxu0 %v6334_v38  ;;  %v6389_v31 = vld [vmem:[%s8251_s1 + $0x2a0] sm:$0xff]   ;;  %v6396_v38 = vld [vmem:[%s8251_s1 + $0x230] sm:$0xff]  }
  0x26   : > { %5739 = vmatprep.subr.bf16.mxu1 %v6335_v39  ;;  %v6397_v39 = vld [vmem:[%s8251_s1 + $0x2b0] sm:$0xff]  }
  0x27   : > { %4018 = vmatmul.mubr.bf16.vlgmr.msra.gmra.mrb[0].mxu0 %v5167_v34  ;;  %v6392_v34 = vld [vmem:[%s8251_s1 + $0x228] sm:$0xff]  }
  0x28   : > { %4058 = vmatmul.mubr.bf16.vlgmr.msra.gmra.mrb[0].mxu1 %v5169_v36  ;;  %5718 = vmatpush3.bf16.msra.mxu0 %v6336_v40  ;;  %v6394_v36 = vld [vmem:[%s8251_s1 + $0x270] sm:$0xff]   ;;  %v6398_v40 = vld [vmem:[%s8251_s1 + $0x278] sm:$0xff]  }
  0x29   : > { %5740 = vmatpush3.bf16.msra.mxu1 %v6337_v41  ;;  %5719 = vmatprep.subr.bf16.mxu0 %v6338_v42  ;;  %v6399_v41 = vld [vmem:[%s8251_s1 + $0x2f8] sm:$0xff]  }
  0x2a   : > { %5741 = vmatprep.subr.bf16.mxu1 %v6339_v43  ;;  %4097 = vmatprep.mubr.bf16.mxu0 %v5172_v8  ;;  %v6400_v42 = vld [vmem:[%s8251_s1 + $0x238] sm:$0xff]   ;;  %v6428_v8 = vld [vmem:[%s8251_s1 + $0x328] sm:$0xff]  }
  0x2b   : > { %4137 = vmatprep.mubr.bf16.mxu1 %v5174_v11  ;;  %v6401_v43 = vld [vmem:[%s8251_s1 + $0x2b8] sm:$0xff]   ;;  %v6431_v11 = vld [vmem:[%s8251_s1 + $0x3f0] sm:$0xff]  }
  0x2c   : > { %5720 = vmatpush3.bf16.msra.mxu0 %v6340_v44  ;;  %v174_v44 = vld [vmem:[%s6938_s27 + $0x20] sm:$0xff] }
  0x2d   : > { %5742 = vmatpush3.bf16.msra.mxu1 %v6341_v45  ;;  %5721 = vmatprep.subr.bf16.mxu0 %v6342_v46  ;;  %v175_v45 = vld [vmem:[%s6938_s27 + $0x28] sm:$0xff]  ;;  %v5175_v46 = vcombine.low %v174_v44, %v174_v44 }
  0x2e   : > { %5743 = vmatprep.subr.bf16.mxu1 %v6343_v47  ;;  %v5176_v47 = vcombine.high %v174_v44, %v174_v44  ;;  %v6462_v44 = vld [vmem:[%s8251_s1 + $0x468] sm:$0xff]  }
  0x30   : > { %5722 = vmatpush3.bf16.msra.mxu0 %v6344_v48  ;;  %v5177_v48 = vcombine.low %v175_v45, %v175_v45 }
  0x31   : > { %5744 = vmatpush3.bf16.msra.mxu1 %v6345_v49  ;;  %5723 = vmatprep.subr.bf16.mxu0 %v6346_v50  ;;  %v5178_v49 = vcombine.high %v175_v45, %v175_v45  ;;  %v6406_v50 = vld [vmem:[%s8251_s1 + $0x340] sm:$0xff]   ;;  %v6463_v45 = vld [vmem:[%s8251_s1 + $0x4e8] sm:$0xff]  }
  0x32   : > { %5745 = vmatprep.subr.bf16.mxu1 %v6347_v51  ;;  %v6407_v51 = vld [vmem:[%s8251_s1 + $0x3c0] sm:$0xff]  }
  0x34   : > { %5724 = vmatpush3.bf16.msra.mxu0 %v6348_v52  ;;  %v6408_v52 = vld [vmem:[%s8251_s1 + $0x300] sm:$0xff]  }
  0x35   : > { %5746 = vmatpush3.bf16.msra.mxu1 %v6349_v53  ;;  %5725 = vmatprep.subr.bf16.mxu0 %v6350_v54  ;;  %v6409_v53 = vld [vmem:[%s8251_s1 + $0x380] sm:$0xff]   ;;  %v6410_v54 = vld [vmem:[%s8251_s1 + $0x348] sm:$0xff]  }
  0x36   : > { %5747 = vmatprep.subr.bf16.mxu1 %v6351_v55  ;;  %v6411_v55 = vld [vmem:[%s8251_s1 + $0x3c8] sm:$0xff]  }
  0x38   : > { %5726 = vmatpush3.bf16.msra.mxu0 %v6352_v56  ;;  %v6412_v56 = vld [vmem:[%s8251_s1 + $0x308] sm:$0xff]  }
  0x39   : > { %5748 = vmatpush3.bf16.msra.mxu1 %v6353_v57  ;;  %5727 = vmatprep.subr.bf16.mxu0 %v6354_v58  ;;  %v6413_v57 = vld [vmem:[%s8251_s1 + $0x388] sm:$0xff]   ;;  %v6414_v58 = vld [vmem:[%s8251_s1 + $0x350] sm:$0xff]  }
  0x3a   : > { %5749 = vmatprep.subr.bf16.mxu1 %v6355_v59  ;;  %v6415_v59 = vld [vmem:[%s8251_s1 + $0x3d0] sm:$0xff]  }
  0x3c   : > { %5728 = vmatpush3.bf16.msra.mxu0 %v6356_v60  ;;  %v6416_v60 = vld [vmem:[%s8251_s1 + $0x310] sm:$0xff]  }
  0x3d   : > { %5750 = vmatpush3.bf16.msra.mxu1 %v6357_v61  ;;  %5729 = vmatprep.subr.bf16.mxu0 %v6358_v62  ;;  %v6417_v61 = vld [vmem:[%s8251_s1 + $0x390] sm:$0xff]   ;;  %v6418_v62 = vld [vmem:[%s8251_s1 + $0x358] sm:$0xff]  }
  0x3e   : > { %5751 = vmatprep.subr.bf16.mxu1 %v6359_v63  ;;  %v6419_v63 = vld [vmem:[%s8251_s1 + $0x3d8] sm:$0xff]  }
  0x40   : > { %5730 = vmatpush3.bf16.msra.mxu0 %v6360_v0  ;;  %v6420_v0 = vld [vmem:[%s8251_s1 + $0x318] sm:$0xff]  }
  0x41   : > { %5752 = vmatpush3.bf16.msra.mxu1 %v6361_v1  ;;  %5731 = vmatprep.subr.bf16.mxu0 %v6362_v2  ;;  %v6421_v1 = vld [vmem:[%s8251_s1 + $0x398] sm:$0xff]   ;;  %v6422_v2 = vld [vmem:[%s8251_s1 + $0x360] sm:$0xff]  }
  0x42   : > { %5753 = vmatprep.subr.bf16.mxu1 %v6363_v3  ;;  %v6423_v3 = vld [vmem:[%s8251_s1 + $0x3e0] sm:$0xff]  }
  0x44   : > { %5732 = vmatpush3.bf16.msra.mxu0 %v6364_v4  ;;  %v6424_v4 = vld [vmem:[%s8251_s1 + $0x320] sm:$0xff]  }
  0x45   : > { %5754 = vmatpush3.bf16.msra.mxu1 %v6365_v5  ;;  %5761 = vmatprep.subr.bf16.mxu0 %v6370_v12  ;;  %v6425_v5 = vld [vmem:[%s8251_s1 + $0x3a0] sm:$0xff]   ;;  %v6432_v12 = vld [vmem:[%s8251_s1 + $0x330] sm:$0xff]  }
  0x46   : > { %5783 = vmatprep.subr.bf16.mxu1 %v6371_v13  ;;  %v6433_v13 = vld [vmem:[%s8251_s1 + $0x3b0] sm:$0xff]  }
  0x47   : > { %4098 = vmatmul.mubr.bf16.vlgmr.msra.gmra.mrb[4].mxu0 %v5171_v7  ;;  %v6427_v7 = vld [vmem:[%s8251_s1 + $0x3e8] sm:$0xff]  }
  0x48   : > { %4138 = vmatmul.mubr.bf16.vlgmr.msra.gmra.mrb[4].mxu1 %v5173_v10  ;;  %5762 = vmatpush3.bf16.msra.mxu0 %v6372_v14  ;;  %v6430_v10 = vld [vmem:[%s8251_s1 + $0x370] sm:$0xff]   ;;  %v6434_v14 = vld [vmem:[%s8251_s1 + $0x378] sm:$0xff]  }
  0x49   : > { %5784 = vmatpush3.bf16.msra.mxu1 %v6373_v15  ;;  %5763 = vmatprep.subr.bf16.mxu0 %v6374_v16  ;;  %v6435_v15 = vld [vmem:[%s8251_s1 + $0x3f8] sm:$0xff]  }
  0x4a   : > { %5785 = vmatprep.subr.bf16.mxu1 %v6375_v17  ;;  %4177 = vmatprep.mubr.bf16.mxu0 %v5176_v47  ;;  %v6436_v16 = vld [vmem:[%s8251_s1 + $0x338] sm:$0xff]   ;;  %v6465_v47 = vld [vmem:[%s8251_s1 + $0x4a8] sm:$0xff]  }
  0x4b   : > { %4217 = vmatprep.mubr.bf16.mxu1 %v5178_v49  ;;  %v6437_v17 = vld [vmem:[%s8251_s1 + $0x3b8] sm:$0xff]   ;;  %v6467_v49 = vld [vmem:[%s8251_s1 + $0x4f0] sm:$0xff]  }
  0x4c   : > { %5764 = vmatpush3.bf16.msra.mxu0 %v6376_v18  ;;  %v176_v18 = vld [vmem:[%s6938_s27 + $0x30] sm:$0xff] }
  0x4d   : > { %5786 = vmatpush3.bf16.msra.mxu1 %v6377_v19  ;;  %5765 = vmatprep.subr.bf16.mxu0 %v6378_v20  ;;  %v177_v19 = vld [vmem:[%s6938_s27 + $0x38] sm:$0xff]  ;;  %v5179_v20 = vcombine.low %v176_v18, %v176_v18 }
  0x4e   : > { %5787 = vmatprep.subr.bf16.mxu1 %v6379_v21  ;;  %v5180_v21 = vcombine.high %v176_v18, %v176_v18  ;;  %v6498_v18 = vld [vmem:[%s8251_s1 + $0x568] sm:$0xff]  }
  0x50   : > { %5766 = vmatpush3.bf16.msra.mxu0 %v6380_v22  ;;  %v5181_v22 = vcombine.low %v177_v19, %v177_v19 }
  0x51   : > { %5788 = vmatpush3.bf16.msra.mxu1 %v6381_v23  ;;  %5767 = vmatprep.subr.bf16.mxu0 %v6382_v24  ;;  %v6442_v23 = vld [vmem:[%s8251_s1 + $0x440] sm:$0xff]   ;;  %v5182_v24 = vcombine.high %v177_v19, %v177_v19  ;;  %v6499_v19 = vld [vmem:[%s8251_s1 + $0x5e8] sm:$0xff]  }
  0x52   : > { %5789 = vmatprep.subr.bf16.mxu1 %v6383_v25  ;;  %v6443_v25 = vld [vmem:[%s8251_s1 + $0x4c0] sm:$0xff]  }
  0x54   : > { %5768 = vmatpush3.bf16.msra.mxu0 %v6384_v26  ;;  %v6444_v26 = vld [vmem:[%s8251_s1 + $0x400] sm:$0xff]  }
  0x55   : > { %5790 = vmatpush3.bf16.msra.mxu1 %v6385_v27  ;;  %5769 = vmatprep.subr.bf16.mxu0 %v6386_v28  ;;  %v6445_v27 = vld [vmem:[%s8251_s1 + $0x480] sm:$0xff]   ;;  %v6446_v28 = vld [vmem:[%s8251_s1 + $0x448] sm:$0xff]  }
  0x56   : > { %5791 = vmatprep.subr.bf16.mxu1 %v6387_v29  ;;  %v6447_v29 = vld [vmem:[%s8251_s1 + $0x4c8] sm:$0xff]  }
  0x58   : > { %5770 = vmatpush3.bf16.msra.mxu0 %v6388_v30  ;;  %v6448_v30 = vld [vmem:[%s8251_s1 + $0x408] sm:$0xff]  }
  0x59   : > { %5792 = vmatpush3.bf16.msra.mxu1 %v6389_v31  ;;  %5771 = vmatprep.subr.bf16.mxu0 %v6390_v32  ;;  %v6449_v31 = vld [vmem:[%s8251_s1 + $0x488] sm:$0xff]   ;;  %v6450_v32 = vld [vmem:[%s8251_s1 + $0x450] sm:$0xff]  }
  0x5a   : > { %5793 = vmatprep.subr.bf16.mxu1 %v6391_v33  ;;  %v6451_v33 = vld [vmem:[%s8251_s1 + $0x4d0] sm:$0xff]  }
  0x5c   : > { %5772 = vmatpush3.bf16.msra.mxu0 %v6392_v34  ;;  %v6452_v34 = vld [vmem:[%s8251_s1 + $0x410] sm:$0xff]  }
  0x5d   : > { %5794 = vmatpush3.bf16.msra.mxu1 %v6393_v35  ;;  %5773 = vmatprep.subr.bf16.mxu0 %v6394_v36  ;;  %v6453_v35 = vld [vmem:[%s8251_s1 + $0x490] sm:$0xff]   ;;  %v6454_v36 = vld [vmem:[%s8251_s1 + $0x458] sm:$0xff]  }
  0x5e   : > { %5795 = vmatprep.subr.bf16.mxu1 %v6395_v37  ;;  %v6455_v37 = vld [vmem:[%s8251_s1 + $0x4d8] sm:$0xff]  }
  0x60   : > { %5774 = vmatpush3.bf16.msra.mxu0 %v6396_v38  ;;  %v6456_v38 = vld [vmem:[%s8251_s1 + $0x418] sm:$0xff]  }
  0x61   : > { %5796 = vmatpush3.bf16.msra.mxu1 %v6397_v39  ;;  %5775 = vmatprep.subr.bf16.mxu0 %v6398_v40  ;;  %v6457_v39 = vld [vmem:[%s8251_s1 + $0x498] sm:$0xff]   ;;  %v6458_v40 = vld [vmem:[%s8251_s1 + $0x460] sm:$0xff]  }
  0x62   : > { %5797 = vmatprep.subr.bf16.mxu1 %v6399_v41  ;;  %v6459_v41 = vld [vmem:[%s8251_s1 + $0x4e0] sm:$0xff]  }
  0x64   : > { %5776 = vmatpush3.bf16.msra.mxu0 %v6400_v42  ;;  %v6460_v42 = vld [vmem:[%s8251_s1 + $0x420] sm:$0xff]  }
  0x65   : > { %5798 = vmatpush3.bf16.msra.mxu1 %v6401_v43  ;;  %5805 = vmatprep.subr.bf16.mxu0 %v6406_v50  ;;  %v6461_v43 = vld [vmem:[%s8251_s1 + $0x4a0] sm:$0xff]   ;;  %v6468_v50 = vld [vmem:[%s8251_s1 + $0x430] sm:$0xff]  }
  0x66   : > { %5827 = vmatprep.subr.bf16.mxu1 %v6407_v51  ;;  %v6469_v51 = vld [vmem:[%s8251_s1 + $0x4b0] sm:$0xff]  }
  0x67   : > { %4178 = vmatmul.mubr.bf16.vlgmr.msra.gmra.mrb[8].mxu0 %v5175_v46  ;;  %v6464_v46 = vld [vmem:[%s8251_s1 + $0x428] sm:$0xff]  }
  0x68   : > { %4218 = vmatmul.mubr.bf16.vlgmr.msra.gmra.mrb[8].mxu1 %v5177_v48  ;;  %5806 = vmatpush3.bf16.msra.mxu0 %v6408_v52  ;;  %v6466_v48 = vld [vmem:[%s8251_s1 + $0x470] sm:$0xff]   ;;  %v6470_v52 = vld [vmem:[%s8251_s1 + $0x478] sm:$0xff]  }
  0x69   : > { %5828 = vmatpush3.bf16.msra.mxu1 %v6409_v53  ;;  %5807 = vmatprep.subr.bf16.mxu0 %v6410_v54  ;;  %v6471_v53 = vld [vmem:[%s8251_s1 + $0x4f8] sm:$0xff]  }
  0x6a   : > { %5829 = vmatprep.subr.bf16.mxu1 %v6411_v55  ;;  %4257 = vmatprep.mubr.bf16.mxu0 %v5180_v21  ;;  %v6472_v54 = vld [vmem:[%s8251_s1 + $0x438] sm:$0xff]   ;;  %v6501_v21 = vld [vmem:[%s8251_s1 + $0x5a8] sm:$0xff]  }
  0x6b   : > { %4297 = vmatprep.mubr.bf16.mxu1 %v5182_v24  ;;  %v6473_v55 = vld [vmem:[%s8251_s1 + $0x4b8] sm:$0xff]   ;;  %v6504_v24 = vld [vmem:[%s8251_s1 + $0x530] sm:$0xff]  }
  0x6c   : > { %5808 = vmatpush3.bf16.msra.mxu0 %v6412_v56  ;;  %v178_v56 = vld [vmem:[%s6938_s27 + $0x40] sm:$0xff] }
  0x6d   : > { %5830 = vmatpush3.bf16.msra.mxu1 %v6413_v57  ;;  %5809 = vmatprep.subr.bf16.mxu0 %v6414_v58  ;;  %v5183_v57 = vcombine.low %v178_v56, %v178_v56  ;;  %v5184_v58 = vcombine.high %v178_v56, %v178_v56  ;;  %v6534_v56 = vld [vmem:[%s8251_s1 + $0x668] sm:$0xff]  }
  0x6e   : > { %5831 = vmatprep.subr.bf16.mxu1 %v6415_v59  ;;  %v179_v59 = vld [vmem:[%s6938_s27 + $0x48] sm:$0xff] }
  0x70   : > { %5810 = vmatpush3.bf16.msra.mxu0 %v6416_v60  ;;  %v5185_v60 = vcombine.low %v179_v59, %v179_v59 }
  0x71   : > { %5832 = vmatpush3.bf16.msra.mxu1 %v6417_v61  ;;  %5811 = vmatprep.subr.bf16.mxu0 %v6418_v62  ;;  %v5186_v61 = vcombine.high %v179_v59, %v179_v59  ;;  %v6478_v62 = vld [vmem:[%s8251_s1 + $0x540] sm:$0xff]   ;;  %v6537_v59 = vld [vmem:[%s8251_s1 + $0x6a8] sm:$0xff]  }
  0x72   : > { %5833 = vmatprep.subr.bf16.mxu1 %v6419_v63  ;;  %v6479_v63 = vld [vmem:[%s8251_s1 + $0x5c0] sm:$0xff]  }
  0x74   : > { %5812 = vmatpush3.bf16.msra.mxu0 %v6420_v0  ;;  %v6480_v0 = vld [vmem:[%s8251_s1 + $0x500] sm:$0xff]  }
  0x75   : > { %5834 = vmatpush3.bf16.msra.mxu1 %v6421_v1  ;;  %5813 = vmatprep.subr.bf16.mxu0 %v6422_v2  ;;  %v6481_v1 = vld [vmem:[%s8251_s1 + $0x580] sm:$0xff]   ;;  %v6482_v2 = vld [vmem:[%s8251_s1 + $0x548] sm:$0xff]  }
  0x76   : > { %5835 = vmatprep.subr.bf16.mxu1 %v6423_v3  ;;  %v6483_v3 = vld [vmem:[%s8251_s1 + $0x5c8] sm:$0xff]  }
  0x78   : > { %5814 = vmatpush3.bf16.msra.mxu0 %v6424_v4  ;;  %v6484_v4 = vld [vmem:[%s8251_s1 + $0x508] sm:$0xff]  }
  0x79   : > { %5836 = vmatpush3.bf16.msra.mxu1 %v6425_v5  ;;  %5815 = vmatprep.subr.bf16.mxu0 %v6426_v6  ;;  %v6485_v5 = vld [vmem:[%s8251_s1 + $0x588] sm:$0xff]   ;;  %v6486_v6 = vld [vmem:[%s8251_s1 + $0x550] sm:$0xff]  }
  0x7a   : > { %5837 = vmatprep.subr.bf16.mxu1 %v6427_v7  ;;  %v6487_v7 = vld [vmem:[%s8251_s1 + $0x5d0] sm:$0xff]  }
  0x7c   : > { %5816 = vmatpush3.bf16.msra.mxu0 %v6428_v8  ;;  %v6488_v8 = vld [vmem:[%s8251_s1 + $0x510] sm:$0xff]  }
  0x7d   : > { %5838 = vmatpush3.bf16.msra.mxu1 %v6429_v9  ;;  %5817 = vmatprep.subr.bf16.mxu0 %v6430_v10  ;;  %v6489_v9 = vld [vmem:[%s8251_s1 + $0x590] sm:$0xff]   ;;  %v6490_v10 = vld [vmem:[%s8251_s1 + $0x558] sm:$0xff]  }
  0x7e   : > { %5839 = vmatprep.subr.bf16.mxu1 %v6431_v11  ;;  %v6491_v11 = vld [vmem:[%s8251_s1 + $0x5d8] sm:$0xff]  }
  0x80   : > { %5818 = vmatpush3.bf16.msra.mxu0 %v6432_v12  ;;  %v6492_v12 = vld [vmem:[%s8251_s1 + $0x518] sm:$0xff]  }
  0x81   : > { %5840 = vmatpush3.bf16.msra.mxu1 %v6433_v13  ;;  %5819 = vmatprep.subr.bf16.mxu0 %v6434_v14  ;;  %v6493_v13 = vld [vmem:[%s8251_s1 + $0x598] sm:$0xff]   ;;  %v6494_v14 = vld [vmem:[%s8251_s1 + $0x560] sm:$0xff]  }
  0x82   : > { %5841 = vmatprep.subr.bf16.mxu1 %v6435_v15  ;;  %v6495_v15 = vld [vmem:[%s8251_s1 + $0x5e0] sm:$0xff]  }
  0x84   : > { %5820 = vmatpush3.bf16.msra.mxu0 %v6436_v16  ;;  %v6496_v16 = vld [vmem:[%s8251_s1 + $0x520] sm:$0xff]  }
  0x85   : > { %5842 = vmatpush3.bf16.msra.mxu1 %v6437_v17  ;;  %5849 = vmatprep.subr.bf16.mxu0 %v6442_v23  ;;  %v6497_v17 = vld [vmem:[%s8251_s1 + $0x5a0] sm:$0xff]   ;;  %v6503_v23 = vld [vmem:[%s8251_s1 + $0x5f0] sm:$0xff]  }
  0x86   : > { %5871 = vmatprep.subr.bf16.mxu1 %v6443_v25  ;;  %v6505_v25 = vld [vmem:[%s8251_s1 + $0x5b0] sm:$0xff]  }
  0x87   : > { %4258 = vmatmul.mubr.bf16.vlgmr.msra.gmra.mrb[12].mxu0 %v5179_v20  ;;  %v6500_v20 = vld [vmem:[%s8251_s1 + $0x528] sm:$0xff]  }
  0x88   : > { %4298 = vmatmul.mubr.bf16.vlgmr.msra.gmra.mrb[12].mxu1 %v5181_v22  ;;  %5850 = vmatpush3.bf16.msra.mxu0 %v6444_v26  ;;  %v6502_v22 = vld [vmem:[%s8251_s1 + $0x570] sm:$0xff]   ;;  %v6506_v26 = vld [vmem:[%s8251_s1 + $0x578] sm:$0xff]  }
  0x89   : > { %5872 = vmatpush3.bf16.msra.mxu1 %v6445_v27  ;;  %5851 = vmatprep.subr.bf16.mxu0 %v6446_v28  ;;  %v6507_v27 = vld [vmem:[%s8251_s1 + $0x5f8] sm:$0xff]  }
  0x8a   : > { %5873 = vmatprep.subr.bf16.mxu1 %v6447_v29  ;;  %4337 = vmatprep.mubr.bf16.mxu0 %v5184_v58  ;;  %v6508_v28 = vld [vmem:[%s8251_s1 + $0x538] sm:$0xff]   ;;  %v6536_v58 = vld [vmem:[%s8251_s1 + $0x628] sm:$0xff]  }
  0x8b   : > { %4377 = vmatprep.mubr.bf16.mxu1 %v5186_v61  ;;  %v6509_v29 = vld [vmem:[%s8251_s1 + $0x5b8] sm:$0xff]   ;;  %v6539_v61 = vld [vmem:[%s8251_s1 + $0x6f0] sm:$0xff]  }
  0x8c   : > { %5852 = vmatpush3.bf16.msra.mxu0 %v6448_v30  ;;  %v180_v30 = vld [vmem:[%s6938_s27 + $0x50] sm:$0xff] }
  0x8d   : > { %5874 = vmatpush3.bf16.msra.mxu1 %v6449_v31  ;;  %5853 = vmatprep.subr.bf16.mxu0 %v6450_v32  ;;  %v181_v31 = vld [vmem:[%s6938_s27 + $0x58] sm:$0xff]  ;;  %v5187_v32 = vcombine.low %v180_v30, %v180_v30 }
  0x8e   : > { %5875 = vmatprep.subr.bf16.mxu1 %v6451_v33  ;;  %v5188_v33 = vcombine.high %v180_v30, %v180_v30  ;;  %v6569_v30 = vld [vmem:[%s8251_s1 + $0x7a0] sm:$0xff]  }
  0x90   : > { %5854 = vmatpush3.bf16.msra.mxu0 %v6452_v34  ;;  %v5189_v34 = vcombine.low %v181_v31, %v181_v31 }
  0x91   : > { %5876 = vmatpush3.bf16.msra.mxu1 %v6453_v35  ;;  %5855 = vmatprep.subr.bf16.mxu0 %v6454_v36  ;;  %v5190_v35 = vcombine.high %v181_v31, %v181_v31  ;;  %v6514_v36 = vld [vmem:[%s8251_s1 + $0x640] sm:$0xff]  }
  0x92   : > { %5877 = vmatprep.subr.bf16.mxu1 %v6455_v37  ;;  %v6515_v37 = vld [vmem:[%s8251_s1 + $0x6c0] sm:$0xff]  }
  0x94   : > { %5856 = vmatpush3.bf16.msra.mxu0 %v6456_v38  ;;  %v6516_v38 = vld [vmem:[%s8251_s1 + $0x600] sm:$0xff]  }
  0x95   : > { %5878 = vmatpush3.bf16.msra.mxu1 %v6457_v39  ;;  %5857 = vmatprep.subr.bf16.mxu0 %v6458_v40  ;;  %v6517_v39 = vld [vmem:[%s8251_s1 + $0x680] sm:$0xff]   ;;  %v6518_v40 = vld [vmem:[%s8251_s1 + $0x648] sm:$0xff]  }
  0x96   : > { %5879 = vmatprep.subr.bf16.mxu1 %v6459_v41  ;;  %v6519_v41 = vld [vmem:[%s8251_s1 + $0x6c8] sm:$0xff]  }
  0x98   : > { %5858 = vmatpush3.bf16.msra.mxu0 %v6460_v42  ;;  %v6520_v42 = vld [vmem:[%s8251_s1 + $0x608] sm:$0xff]  }
  0x99   : > { %5880 = vmatpush3.bf16.msra.mxu1 %v6461_v43  ;;  %5859 = vmatprep.subr.bf16.mxu0 %v6462_v44  ;;  %v6521_v43 = vld [vmem:[%s8251_s1 + $0x688] sm:$0xff]   ;;  %v6522_v44 = vld [vmem:[%s8251_s1 + $0x650] sm:$0xff]  }
  0x9a   : > { %5881 = vmatprep.subr.bf16.mxu1 %v6463_v45  ;;  %v6523_v45 = vld [vmem:[%s8251_s1 + $0x6d0] sm:$0xff]  }
  0x9c   : > { %5860 = vmatpush3.bf16.msra.mxu0 %v6464_v46  ;;  %v6524_v46 = vld [vmem:[%s8251_s1 + $0x610] sm:$0xff]  }
  0x9d   : > { %5882 = vmatpush3.bf16.msra.mxu1 %v6465_v47  ;;  %5861 = vmatprep.subr.bf16.mxu0 %v6466_v48  ;;  %v6525_v47 = vld [vmem:[%s8251_s1 + $0x690] sm:$0xff]   ;;  %v6526_v48 = vld [vmem:[%s8251_s1 + $0x658] sm:$0xff]  }
  0x9e   : > { %5883 = vmatprep.subr.bf16.mxu1 %v6467_v49  ;;  %v6527_v49 = vld [vmem:[%s8251_s1 + $0x6d8] sm:$0xff]  }
  0xa0   : > { %5862 = vmatpush3.bf16.msra.mxu0 %v6468_v50  ;;  %v6528_v50 = vld [vmem:[%s8251_s1 + $0x618] sm:$0xff]  }
  0xa1   : > { %5884 = vmatpush3.bf16.msra.mxu1 %v6469_v51  ;;  %5863 = vmatprep.subr.bf16.mxu0 %v6470_v52  ;;  %v6529_v51 = vld [vmem:[%s8251_s1 + $0x698] sm:$0xff]   ;;  %v6530_v52 = vld [vmem:[%s8251_s1 + $0x660] sm:$0xff]  }
  0xa2   : > { %5885 = vmatprep.subr.bf16.mxu1 %v6471_v53  ;;  %v6531_v53 = vld [vmem:[%s8251_s1 + $0x6e0] sm:$0xff]  }
  0xa4   : > { %5864 = vmatpush3.bf16.msra.mxu0 %v6472_v54  ;;  %v6532_v54 = vld [vmem:[%s8251_s1 + $0x620] sm:$0xff]  }
  0xa5   : > { %5886 = vmatpush3.bf16.msra.mxu1 %v6473_v55  ;;  %5893 = vmatprep.subr.bf16.mxu0 %v6478_v62  ;;  %v6533_v55 = vld [vmem:[%s8251_s1 + $0x6a0] sm:$0xff]   ;;  %v6540_v62 = vld [vmem:[%s8251_s1 + $0x630] sm:$0xff]  }
  0xa6   : > { %5915 = vmatprep.subr.bf16.mxu1 %v6479_v63  ;;  %v6541_v63 = vld [vmem:[%s8251_s1 + $0x6b0] sm:$0xff]  }
  0xa7   : > { %4338 = vmatmul.mubr.bf16.vlgmr.msra.gmra.mrb[16].mxu0 %v5183_v57  ;;  %v6535_v57 = vld [vmem:[%s8251_s1 + $0x6e8] sm:$0xff]  }
  0xa8   : > { %4378 = vmatmul.mubr.bf16.vlgmr.msra.gmra.mrb[16].mxu1 %v5185_v60  ;;  %5894 = vmatpush3.bf16.msra.mxu0 %v6480_v0  ;;  %v6538_v60 = vld [vmem:[%s8251_s1 + $0x670] sm:$0xff]   ;;  %v6542_v0 = vld [vmem:[%s8251_s1 + $0x678] sm:$0xff]  }
  0xa9   : > { %5916 = vmatpush3.bf16.msra.mxu1 %v6481_v1  ;;  %5895 = vmatprep.subr.bf16.mxu0 %v6482_v2  ;;  %v6543_v1 = vld [vmem:[%s8251_s1 + $0x6f8] sm:$0xff]  }
  0xaa   : > { %5917 = vmatprep.subr.bf16.mxu1 %v6483_v3  ;;  %4417 = vmatprep.mubr.bf16.mxu0 %v5188_v33  ;;  %v6544_v2 = vld [vmem:[%s8251_s1 + $0x638] sm:$0xff]  }
  0xab   : > { %4457 = vmatprep.mubr.bf16.mxu1 %v5190_v35  ;;  %v6545_v3 = vld [vmem:[%s8251_s1 + $0x6b8] sm:$0xff]  }
  0xac   : > { %5896 = vmatpush3.bf16.msra.mxu0 %v6484_v4  ;;  %v182_v4 = vld [vmem:[%s6938_s27 + $0x60] sm:$0xff] }
  0xad   : > { %5918 = vmatpush3.bf16.msra.mxu1 %v6485_v5  ;;  %5897 = vmatprep.subr.bf16.mxu0 %v6486_v6  ;;  %v183_v5 = vld [vmem:[%s6938_s27 + $0x68] sm:$0xff]  ;;  %v5191_v6 = vcombine.low %v182_v4, %v182_v4 }
  0xae   : > { %5919 = vmatprep.subr.bf16.mxu1 %v6487_v7  ;;  %v5192_v7 = vcombine.high %v182_v4, %v182_v4  ;;  %v6593_v4 = vld [vmem:[%s8251_s1 + $0x888] sm:$0xff]  }
  0xb0   : > { %5898 = vmatpush3.bf16.msra.mxu0 %v6488_v8  ;;  %v5193_v8 = vcombine.low %v183_v5, %v183_v5 }
  0xb1   : > { %5920 = vmatpush3.bf16.msra.mxu1 %v6489_v9  ;;  %5899 = vmatprep.subr.bf16.mxu0 %v6490_v10  ;;  %v6550_v9 = vld [vmem:[%s8251_s1 + $0x740] sm:$0xff]   ;;  %v5194_v10 = vcombine.high %v183_v5, %v183_v5  ;;  %v6594_v5 = vld [vmem:[%s8251_s1 + $0x850] sm:$0xff]  }
  0xb2   : > { %5921 = vmatprep.subr.bf16.mxu1 %v6491_v11  ;;  %v6551_v11 = vld [vmem:[%s8251_s1 + $0x7c0] sm:$0xff]  }
  0xb4   : > { %5900 = vmatpush3.bf16.msra.mxu0 %v6492_v12  ;;  %v6552_v12 = vld [vmem:[%s8251_s1 + $0x700] sm:$0xff]  }
  0xb5   : > { %5922 = vmatpush3.bf16.msra.mxu1 %v6493_v13  ;;  %5901 = vmatprep.subr.bf16.mxu0 %v6494_v14  ;;  %v6553_v13 = vld [vmem:[%s8251_s1 + $0x780] sm:$0xff]   ;;  %v6554_v14 = vld [vmem:[%s8251_s1 + $0x748] sm:$0xff]  }
  0xb6   : > { %5923 = vmatprep.subr.bf16.mxu1 %v6495_v15  ;;  %v6555_v15 = vld [vmem:[%s8251_s1 + $0x7c8] sm:$0xff]  }
  0xb8   : > { %5902 = vmatpush3.bf16.msra.mxu0 %v6496_v16  ;;  %v6556_v16 = vld [vmem:[%s8251_s1 + $0x708] sm:$0xff]  }
  0xb9   : > { %5924 = vmatpush3.bf16.msra.mxu1 %v6497_v17  ;;  %5903 = vmatprep.subr.bf16.mxu0 %v6498_v18  ;;  %v6557_v17 = vld [vmem:[%s8251_s1 + $0x788] sm:$0xff]   ;;  %v6558_v18 = vld [vmem:[%s8251_s1 + $0x750] sm:$0xff]  }
  0xba   : > { %5925 = vmatprep.subr.bf16.mxu1 %v6499_v19  ;;  %v6559_v19 = vld [vmem:[%s8251_s1 + $0x7d0] sm:$0xff]  }
  0xbc   : > { %5904 = vmatpush3.bf16.msra.mxu0 %v6500_v20  ;;  %v6560_v20 = vld [vmem:[%s8251_s1 + $0x710] sm:$0xff]  }
  0xbd   : > { %5926 = vmatpush3.bf16.msra.mxu1 %v6501_v21  ;;  %5905 = vmatprep.subr.bf16.mxu0 %v6502_v22  ;;  %v6561_v21 = vld [vmem:[%s8251_s1 + $0x790] sm:$0xff]   ;;  %v6562_v22 = vld [vmem:[%s8251_s1 + $0x758] sm:$0xff]  }
  0xbe   : > { %5927 = vmatprep.subr.bf16.mxu1 %v6503_v23  ;;  %v6563_v23 = vld [vmem:[%s8251_s1 + $0x7d8] sm:$0xff]  }
  0xc0   : > { %5906 = vmatpush3.bf16.msra.mxu0 %v6504_v24  ;;  %v6564_v24 = vld [vmem:[%s8251_s1 + $0x718] sm:$0xff]  }
  0xc1   : > { %5928 = vmatpush3.bf16.msra.mxu1 %v6505_v25  ;;  %5907 = vmatprep.subr.bf16.mxu0 %v6506_v26  ;;  %v6565_v25 = vld [vmem:[%s8251_s1 + $0x798] sm:$0xff]   ;;  %v6566_v26 = vld [vmem:[%s8251_s1 + $0x760] sm:$0xff]  }
  0xc2   : > { %5929 = vmatprep.subr.bf16.mxu1 %v6507_v27  ;;  %v6567_v27 = vld [vmem:[%s8251_s1 + $0x7e0] sm:$0xff]  }
  0xc4   : > { %5908 = vmatpush3.bf16.msra.mxu0 %v6508_v28  ;;  %v6568_v28 = vld [vmem:[%s8251_s1 + $0x720] sm:$0xff]  }
  0xc5   : > { %5930 = vmatpush3.bf16.msra.mxu1 %v6509_v29  ;;  %5937 = vmatprep.subr.bf16.mxu0 %v6514_v36 }
  0xc6   : > { %5959 = vmatprep.subr.bf16.mxu1 %v6515_v37  ;;  %v6570_v37 = vld [vmem:[%s8251_s1 + $0x768] sm:$0xff]  }
  0xc7   : > { %4418 = vmatmul.mubr.bf16.vlgmr.msra.gmra.mrb[20].mxu0 %v5187_v32  ;;  %v5166_v32 = vld [vmem:[%s8252_s2] ss:$0 sm:$0xff] }
  0xc8   : > { %4458 = vmatmul.mubr.bf16.vlgmr.msra.gmra.mrb[20].mxu1 %v5189_v34  ;;  %5938 = vmatpush3.bf16.msra.mxu0 %v6516_v38 }
  0xc9   : > { %5960 = vmatpush3.bf16.msra.mxu1 %v6517_v39  ;;  %5939 = vmatprep.subr.bf16.mxu0 %v6518_v40  ;;  %v6571_v39 = vld [vmem:[%s8251_s1 + $0x7e8] sm:$0xff]  }
  0xca   : > { %5961 = vmatprep.subr.bf16.mxu1 %v6519_v41  ;;  %4497 = vmatprep.mubr.bf16.mxu0 %v5192_v7  ;;  %v6596_v7 = vld [vmem:[%s8251_s1 + $0x810] sm:$0xff]  }
  0xcb   : > { %4537 = vmatprep.mubr.bf16.mxu1 %v5194_v10  ;;  %v6599_v10 = vld [vmem:[%s8251_s1 + $0x8d8] sm:$0xff]  }
  0xcc   : > { %5940 = vmatpush3.bf16.msra.mxu0 %v6520_v42  ;;  %v6572_v42 = vld [vmem:[%s8251_s1 + $0x728] sm:$0xff]  }
  0xcd   : > { %5962 = vmatpush3.bf16.msra.mxu1 %v6521_v43  ;;  %5941 = vmatprep.subr.bf16.mxu0 %v6522_v44  ;;  %v6573_v44 = vld [vmem:[%s8251_s1 + $0x7a8] sm:$0xff]  }
  0xce   : > { %5963 = vmatprep.subr.bf16.mxu1 %v6523_v45 }
  0xd0   : > { %5942 = vmatpush3.bf16.msra.mxu0 %v6524_v46 }
  0xd1   : > { %5964 = vmatpush3.bf16.msra.mxu1 %v6525_v47  ;;  %5943 = vmatprep.subr.bf16.mxu0 %v6526_v48  ;;  %v6574_v47 = vld [vmem:[%s8251_s1 + $0x770] sm:$0xff]  }
  0xd2   : > { %5965 = vmatprep.subr.bf16.mxu1 %v6527_v49  ;;  %v6575_v48 = vld [vmem:[%s8251_s1 + $0x7f0] sm:$0xff]  }
  0xd3   : > { %v6576_v49 = vld [vmem:[%s8251_s1 + $0x730] sm:$0xff]  }
  0xd4   : > { %5944 = vmatpush3.bf16.msra.mxu0 %v6528_v50  ;;  %v6577_v50 = vld [vmem:[%s8251_s1 + $0x7b0] sm:$0xff]  }
  0xd5   : > { %5966 = vmatpush3.bf16.msra.mxu1 %v6529_v51  ;;  %5945 = vmatprep.subr.bf16.mxu0 %v6530_v52  ;;  %v6578_v51 = vld [vmem:[%s8251_s1 + $0x778] sm:$0xff]  }
  0xd6   : > { %5967 = vmatprep.subr.bf16.mxu1 %v6531_v53  ;;  %v6579_v52 = vld [vmem:[%s8251_s1 + $0x7f8] sm:$0xff]  }
  0xd7   : > { %v6580_v53 = vld [vmem:[%s8251_s1 + $0x738] sm:$0xff]  }
  0xd8   : > { %5946 = vmatpush3.bf16.msra.mxu0 %v6532_v54  ;;  %v6581_v54 = vld [vmem:[%s8251_s1 + $0x7b8] sm:$0xff]  }
  0xd9   : > { %5968 = vmatpush3.bf16.msra.mxu1 %v6533_v55  ;;  %5947 = vmatprep.subr.bf16.mxu0 %v6534_v56  ;;  %v184_v55 = vld [vmem:[%s6938_s27 + $0x70] sm:$0xff]  ;;  %v185_v56 = vld [vmem:[%s6938_s27 + $0x78] sm:$0xff] }
  0xda   : > { %5969 = vmatprep.subr.bf16.mxu1 %v6535_v57  ;;  %v5195_v57 = vcombine.low %v184_v55, %v184_v55 }
  0xdc   : > { %5948 = vmatpush3.bf16.msra.mxu0 %v6536_v58  ;;  %v5196_v58 = vcombine.high %v184_v55, %v184_v55  ;;  %v6630_v55 = vld [vmem:[%s8251_s1 + $0x950] sm:$0xff]  }
  0xdd   : > { %5970 = vmatpush3.bf16.msra.mxu1 %v6537_v59  ;;  %5949 = vmatprep.subr.bf16.mxu0 %v6538_v60  ;;  %v5197_v59 = vcombine.low %v185_v56, %v185_v56  ;;  %v5198_v60 = vcombine.high %v185_v56, %v185_v56  ;;  %v6631_v56 = vld [vmem:[%s8251_s1 + $0x9d0] sm:$0xff]  }
  0xde   : > { %5971 = vmatprep.subr.bf16.mxu1 %v6539_v61  ;;  %v6586_v61 = vld [vmem:[%s8251_s1 + $0x840] sm:$0xff]  }
  0xe0   : > { %5950 = vmatpush3.bf16.msra.mxu0 %v6540_v62  ;;  %v6587_v62 = vld [vmem:[%s8251_s1 + $0x8c0] sm:$0xff]  }
  0xe1   : > { %5972 = vmatpush3.bf16.msra.mxu1 %v6541_v63  ;;  %5951 = vmatprep.subr.bf16.mxu0 %v6542_v0  ;;  %v6588_v63 = vld [vmem:[%s8251_s1 + $0x800] sm:$0xff]  }
  0xe2   : > { %5973 = vmatprep.subr.bf16.mxu1 %v6543_v1  ;;  %v6589_v0 = vld [vmem:[%s8251_s1 + $0x880] sm:$0xff]   ;;  %v6590_v1 = vld [vmem:[%s8251_s1 + $0x848] sm:$0xff]  }
  0xe4   : > { %5952 = vmatpush3.bf16.msra.mxu0 %v6544_v2  ;;  %v6591_v2 = vld [vmem:[%s8251_s1 + $0x8c8] sm:$0xff]  }
  0xe5   : > { %5974 = vmatpush3.bf16.msra.mxu1 %v6545_v3  ;;  %5981 = vmatprep.subr.bf16.mxu0 %v6550_v9  ;;  %v6592_v3 = vld [vmem:[%s8251_s1 + $0x808] sm:$0xff]   ;;  %v6598_v9 = vld [vmem:[%s8251_s1 + $0x858] sm:$0xff]  }
  0xe6   : > { %6003 = vmatprep.subr.bf16.mxu1 %v6551_v11  ;;  %v6600_v11 = vld [vmem:[%s8251_s1 + $0x818] sm:$0xff]  }
  0xe7   : > { %4498 = vmatmul.mubr.bf16.vlgmr.msra.gmra.mrb[24].mxu0 %v5191_v6  ;;  %v6595_v6 = vld [vmem:[%s8251_s1 + $0x8d0] sm:$0xff]  }
  0xe8   : > { %4538 = vmatmul.mubr.bf16.vlgmr.msra.gmra.mrb[24].mxu1 %v5193_v8  ;;  %5982 = vmatpush3.bf16.msra.mxu0 %v6552_v12  ;;  %v6597_v8 = vld [vmem:[%s8251_s1 + $0x890] sm:$0xff]   ;;  %v6601_v12 = vld [vmem:[%s8251_s1 + $0x898] sm:$0xff]  }
  0xe9   : > { %6004 = vmatpush3.bf16.msra.mxu1 %v6553_v13  ;;  %5983 = vmatprep.subr.bf16.mxu0 %v6554_v14  ;;  %v6602_v13 = vld [vmem:[%s8251_s1 + $0x860] sm:$0xff]  }
  0xea   : > { %6005 = vmatprep.subr.bf16.mxu1 %v6555_v15  ;;  %4577 = vmatprep.mubr.bf16.mxu0 %v5196_v58  ;;  %v6603_v14 = vld [vmem:[%s8251_s1 + $0x8e0] sm:$0xff]   ;;  %v6633_v58 = vld [vmem:[%s8251_s1 + $0x990] sm:$0xff]  }
  0xeb   : > { %4617 = vmatprep.mubr.bf16.mxu1 %v5198_v60  ;;  %v6604_v15 = vld [vmem:[%s8251_s1 + $0x820] sm:$0xff]   ;;  %v6635_v60 = vld [vmem:[%s8251_s1 + $0x9d8] sm:$0xff]  }
  0xec   : > { %5984 = vmatpush3.bf16.msra.mxu0 %v6556_v16 }
  0xed   : > { %6006 = vmatpush3.bf16.msra.mxu1 %v6557_v17  ;;  %5985 = vmatprep.subr.bf16.mxu0 %v6558_v18  ;;  %v6605_v17 = vld [vmem:[%s8251_s1 + $0x8a0] sm:$0xff]  }
  0xee   : > { %6007 = vmatprep.subr.bf16.mxu1 %v6559_v19 }
  0xf0   : > { %5986 = vmatpush3.bf16.msra.mxu0 %v6560_v20 }
  0xf1   : > { %6008 = vmatpush3.bf16.msra.mxu1 %v6561_v21  ;;  %5987 = vmatprep.subr.bf16.mxu0 %v6562_v22 }
  0xf2   : > { %6009 = vmatprep.subr.bf16.mxu1 %v6563_v23  ;;  %v6606_v23 = vld [vmem:[%s8251_s1 + $0x868] sm:$0xff]  }
  0xf4   : > { %5988 = vmatpush3.bf16.msra.mxu0 %v6564_v24 }
  0xf5   : > { %6010 = vmatpush3.bf16.msra.mxu1 %v6565_v25  ;;  %5989 = vmatprep.subr.bf16.mxu0 %v6566_v26  ;;  %v6607_v25 = vld [vmem:[%s8251_s1 + $0x8e8] sm:$0xff]  }
  0xf6   : > { %6011 = vmatprep.subr.bf16.mxu1 %v6567_v27 }
  0xf8   : > { %5990 = vmatpush3.bf16.msra.mxu0 %v6568_v28  ;;  %v6608_v28 = vld [vmem:[%s8251_s1 + $0x828] sm:$0xff]  }
  0xf9   : > { %6012 = vmatpush3.bf16.msra.mxu1 %v6569_v30  ;;  %5991 = vmatprep.subr.bf16.mxu0 %v6570_v37  ;;  %v6609_v30 = vld [vmem:[%s8251_s1 + $0x8a8] sm:$0xff]   ;;  %v6614_v37 = vld [vmem:[%s8251_s1 + $0x878] sm:$0xff]  }
  0xfa   : > { %v5689_v29 = vpop.f32.mrb[0].mxu0  ;;  %6013 = vmatprep.subr.bf16.mxu1 %v6571_v39  ;;  %v6616_v39 = vld [vmem:[%s8251_s1 + $0x838] sm:$0xff]  }
  0xfb   : > { %v5711_v31 = vpop.f32.mrb[0].mxu1  ;;  %v5690_v33 = vpop.f32.mrb[1].mxu0 }
  0xfc   : > { %v5712_v34 = vpop.f32.mrb[1].mxu1  ;;  %v5691_v35 = vadd.f32 %v5690_v33, %v5689_v29  ;;  %v5692_v38 = vpop.f32.mrb[2].mxu0  ;;  %5992 = vmatpush3.bf16.msra.mxu0 %v6572_v42  ;;  %v6610_v33 = vld [vmem:[%s8251_s1 + $0x870] sm:$0xff]   ;;  %v187_v42 = vld [vmem:[%s6938_s27 + $0x88] sm:$0xff] }
  0xfd   : > { %v5713_v36 = vadd.f32 %v5712_v34, %v5711_v31  ;;  %v5714_v40 = vpop.f32.mrb[2].mxu1  ;;  %v5693_v43 = vpop.f32.mrb[3].mxu0  ;;  %6014 = vmatpush3.bf16.msra.mxu1 %v6573_v44  ;;  %5993 = vmatprep.subr.bf16.mxu0 %v6574_v47  ;;  %v6611_v34 = vld [vmem:[%s8251_s1 + $0x8f0] sm:$0xff]   ;;  %v6615_v38 = vld [vmem:[%s8251_s1 + $0x8f8] sm:$0xff]   ;;  %v6622_v47 = vld [vmem:[%s8251_s1 + $0x940] sm:$0xff]  }
  0xfe   : > { %v4020_v41 = vadd.f32 %v5691_v35, %v5166_v32  ;;  %v5715_v45 = vpop.f32.mrb[3].mxu1  ;;  %6015 = vmatprep.subr.bf16.mxu1 %v6575_v48  ;;  %v6612_v35 = vld [vmem:[%s8251_s1 + $0x830] sm:$0xff]   ;;  %v6617_v40 = vld [vmem:[%s8251_s1 + $0x8b8] sm:$0xff]   ;;  %v6623_v48 = vld [vmem:[%s8251_s1 + $0x9c0] sm:$0xff]  }
  0xff   : > { %v5201_v45 = vcombine.low %v187_v42, %v187_v42 }
 0x100   : > { %v7611_v46 = vadd.f32 %v5713_v36, %v4020_v41  ;;  %5994 = vmatpush3.bf16.msra.mxu0 %v6576_v49  ;;  %v6613_v36 = vld [vmem:[%s8251_s1 + $0x8b0] sm:$0xff]   ;;  %v186_v41 = vld [vmem:[%s6938_s27 + $0x80] sm:$0xff] }
 0x101   : > { %6016 = vmatpush3.bf16.msra.mxu1 %v6577_v50  ;;  %5995 = vmatprep.subr.bf16.mxu0 %v6578_v51  ;;  %v5199_v43 = vcombine.low %v186_v41, %v186_v41  ;;  %v5200_v44 = vcombine.high %v186_v41, %v186_v41  ;;  %v6624_v49 = vld [vmem:[%s8251_s1 + $0x900] sm:$0xff]   ;;  %v6626_v51 = vld [vmem:[%s8251_s1 + $0x948] sm:$0xff]   ;;  %v6666_v41 = vld [vmem:[%s8251_s1 + $0xa50] sm:$0xff]  }
 0x102   : > { %6017 = vmatprep.subr.bf16.mxu1 %v6579_v52  ;;  %v6625_v50 = vld [vmem:[%s8251_s1 + $0x980] sm:$0xff]   ;;  %v6627_v52 = vld [vmem:[%s8251_s1 + $0x9c8] sm:$0xff]  }
 0x104   : > { %5996 = vmatpush3.bf16.msra.mxu0 %v6580_v53  ;;  %v6628_v53 = vld [vmem:[%s8251_s1 + $0x908] sm:$0xff]  }
 0x105   : > { %6018 = vmatpush3.bf16.msra.mxu1 %v6581_v54  ;;  %6025 = vmatprep.subr.bf16.mxu0 %v6586_v61  ;;  %v6629_v54 = vld [vmem:[%s8251_s1 + $0x988] sm:$0xff]   ;;  %v6636_v61 = vld [vmem:[%s8251_s1 + $0x918] sm:$0xff]  }
 0x106   : > { %6047 = vmatprep.subr.bf16.mxu1 %v6587_v62  ;;  %v6637_v62 = vld [vmem:[%s8251_s1 + $0x998] sm:$0xff]  }
 0x107   : > { %4578 = vmatmul.mubr.bf16.vlgmr.msra.gmra.mrb[28].mxu0 %v5195_v57  ;;  %v6632_v57 = vld [vmem:[%s8251_s1 + $0x910] sm:$0xff]  }
 0x108   : > { %4618 = vmatmul.mubr.bf16.vlgmr.msra.gmra.mrb[28].mxu1 %v5197_v59  ;;  %6026 = vmatpush3.bf16.msra.mxu0 %v6588_v63  ;;  %v6634_v59 = vld [vmem:[%s8251_s1 + $0x958] sm:$0xff]   ;;  %v6638_v63 = vld [vmem:[%s8251_s1 + $0x960] sm:$0xff]  }
 0x109   : > { %6048 = vmatpush3.bf16.msra.mxu1 %v6589_v0  ;;  %6027 = vmatprep.subr.bf16.mxu0 %v6590_v1  ;;  %v6639_v0 = vld [vmem:[%s8251_s1 + $0x9e0] sm:$0xff]  }
 0x10a   : > { %6049 = vmatprep.subr.bf16.mxu1 %v6591_v2  ;;  %4657 = vmatprep.mubr.bf16.mxu0 %v5200_v44  ;;  %v6640_v2 = vld [vmem:[%s8251_s1 + $0x920] sm:$0xff]   ;;  %v6669_v44 = vld [vmem:[%s8251_s1 + $0xa90] sm:$0xff]  }
 0x10c   : > { %6028 = vmatpush3.bf16.msra.mxu0 %v6592_v3 }
 0x10d   : > { %6050 = vmatpush3.bf16.msra.mxu1 %v6593_v4  ;;  %6029 = vmatprep.subr.bf16.mxu0 %v6594_v5  ;;  %v6641_v4 = vld [vmem:[%s8251_s1 + $0x9a0] sm:$0xff]  }
 0x10e   : > { %6051 = vmatprep.subr.bf16.mxu1 %v6595_v6 }
 0x110   : > { %6030 = vmatpush3.bf16.msra.mxu0 %v6596_v7 }
 0x111   : > { %6052 = vmatpush3.bf16.msra.mxu1 %v6597_v8  ;;  %6031 = vmatprep.subr.bf16.mxu0 %v6598_v9  ;;  %v6642_v8 = vld [vmem:[%s8251_s1 + $0x968] sm:$0xff]  }
 0x112   : > { %6053 = vmatprep.subr.bf16.mxu1 %v6599_v10  ;;  %v6643_v10 = vld [vmem:[%s8251_s1 + $0x9e8] sm:$0xff]  }
 0x114   : > { %6032 = vmatpush3.bf16.msra.mxu0 %v6600_v11 }
 0x115   : > { %6054 = vmatpush3.bf16.msra.mxu1 %v6601_v12  ;;  %6033 = vmatprep.subr.bf16.mxu0 %v6602_v13 }
 0x116   : > { %6055 = vmatprep.subr.bf16.mxu1 %v6603_v14  ;;  %v6644_v14 = vld [vmem:[%s8251_s1 + $0x928] sm:$0xff]  }
 0x118   : > { %6034 = vmatpush3.bf16.msra.mxu0 %v6604_v15  ;;  %v6645_v15 = vld [vmem:[%s8251_s1 + $0x9a8] sm:$0xff]  }
 0x119   : > { %6056 = vmatpush3.bf16.msra.mxu1 %v6605_v17  ;;  %6035 = vmatprep.subr.bf16.mxu0 %v6606_v23  ;;  %v6650_v23 = vld [vmem:[%s8251_s1 + $0x978] sm:$0xff]  }
 0x11a   : > { %v5733_v16 = vpop.f32.mrb[4].mxu0  ;;  %6057 = vmatprep.subr.bf16.mxu1 %v6607_v25  ;;  %v6652_v25 = vld [vmem:[%s8251_s1 + $0x938] sm:$0xff]  }
 0x11b   : > { %v5755_v18 = vpop.f32.mrb[4].mxu1  ;;  %v5734_v19 = vpop.f32.mrb[5].mxu0 }
 0x11c   : > { %v5756_v20 = vpop.f32.mrb[5].mxu1  ;;  %v5735_v21 = vadd.f32 %v5734_v19, %v5733_v16  ;;  %v5736_v24 = vpop.f32.mrb[6].mxu0  ;;  %6036 = vmatpush3.bf16.msra.mxu0 %v6608_v28  ;;  %v6646_v19 = vld [vmem:[%s8251_s1 + $0x970] sm:$0xff]   ;;  %v189_v28 = vld [vmem:[%s6938_s27 + $0x98] sm:$0xff] }
 0x11d   : > { %v5757_v22 = vadd.f32 %v5756_v20, %v5755_v18  ;;  %v5758_v26 = vpop.f32.mrb[6].mxu1  ;;  %v5737_v29 = vpop.f32.mrb[7].mxu0  ;;  %6058 = vmatpush3.bf16.msra.mxu1 %v6609_v30  ;;  %6037 = vmatprep.subr.bf16.mxu0 %v6610_v33  ;;  %v6647_v20 = vld [vmem:[%s8251_s1 + $0x9f0] sm:$0xff]   ;;  %v6651_v24 = vld [vmem:[%s8251_s1 + $0x9f8] sm:$0xff]   ;;  %v5206_v33 = vcombine.high %v189_v28, %v189_v28 }
 0x11e   : > { %v4100_v27 = vadd.f32 %v5735_v21, %v7611_v46  ;;  %v5759_v31 = vpop.f32.mrb[7].mxu1  ;;  %6059 = vmatprep.subr.bf16.mxu1 %v6611_v34  ;;  %v5202_v46 = vcombine.high %v187_v42, %v187_v42  ;;  %v6648_v21 = vld [vmem:[%s8251_s1 + $0x930] sm:$0xff]   ;;  %v6653_v26 = vld [vmem:[%s8251_s1 + $0x9b8] sm:$0xff]   ;;  %v6659_v34 = vld [vmem:[%s8251_s1 + $0xac0] sm:$0xff]  }
 0x11f   : > { %v5205_v31 = vcombine.low %v189_v28, %v189_v28  ;;  %v6667_v42 = vld [vmem:[%s8251_s1 + $0xad0] sm:$0xff]  }
 0x120   : > { %v7712_v32 = vadd.f32 %v5757_v22, %v4100_v27  ;;  %6038 = vmatpush3.bf16.msra.mxu0 %v6612_v35  ;;  %4697 = vmatprep.mubr.bf16.mxu1 %v5202_v46  ;;  %v6649_v22 = vld [vmem:[%s8251_s1 + $0x9b0] sm:$0xff]   ;;  %v6660_v35 = vld [vmem:[%s8251_s1 + $0xa00] sm:$0xff]   ;;  %v6671_v46 = vld [vmem:[%s8251_s1 + $0xad8] sm:$0xff]  }
 0x121   : > { %6060 = vmatpush3.bf16.msra.mxu1 %v6613_v36  ;;  %6039 = vmatprep.subr.bf16.mxu0 %v6614_v37  ;;  %v188_v27 = vld [vmem:[%s6938_s27 + $0x90] sm:$0xff]  ;;  %v6661_v36 = vld [vmem:[%s8251_s1 + $0xa80] sm:$0xff]   ;;  %v6662_v37 = vld [vmem:[%s8251_s1 + $0xa48] sm:$0xff]  }
 0x122   : > { %6061 = vmatprep.subr.bf16.mxu1 %v6615_v38  ;;  %v5203_v29 = vcombine.low %v188_v27, %v188_v27  ;;  %v5204_v30 = vcombine.high %v188_v27, %v188_v27  ;;  %v6663_v38 = vld [vmem:[%s8251_s1 + $0xac8] sm:$0xff]   ;;  %v6702_v27 = vld [vmem:[%s8251_s1 + $0xb50] sm:$0xff]  }
 0x123   : > { %v6703_v28 = vld [vmem:[%s8251_s1 + $0xbd0] sm:$0xff]  }
 0x124   : > { %6040 = vmatpush3.bf16.msra.mxu0 %v6616_v39  ;;  %v6664_v39 = vld [vmem:[%s8251_s1 + $0xa08] sm:$0xff]  }
 0x125   : > { %6062 = vmatpush3.bf16.msra.mxu1 %v6617_v40  ;;  %6069 = vmatprep.subr.bf16.mxu0 %v6622_v47  ;;  %v6665_v40 = vld [vmem:[%s8251_s1 + $0xa88] sm:$0xff]   ;;  %v6672_v47 = vld [vmem:[%s8251_s1 + $0xa18] sm:$0xff]  }
 0x126   : > { %6091 = vmatprep.subr.bf16.mxu1 %v6623_v48  ;;  %v6673_v48 = vld [vmem:[%s8251_s1 + $0xa98] sm:$0xff]  }
 0x127   : > { %4658 = vmatmul.mubr.bf16.vlgmr.msra.gmra.mrb[32].mxu0 %v5199_v43  ;;  %v6668_v43 = vld [vmem:[%s8251_s1 + $0xa10] sm:$0xff]  }
 0x128   : > { %4698 = vmatmul.mubr.bf16.vlgmr.msra.gmra.mrb[32].mxu1 %v5201_v45  ;;  %6070 = vmatpush3.bf16.msra.mxu0 %v6624_v49  ;;  %v6670_v45 = vld [vmem:[%s8251_s1 + $0xa58] sm:$0xff]   ;;  %v6674_v49 = vld [vmem:[%s8251_s1 + $0xa60] sm:$0xff]  }
 0x129   : > { %6092 = vmatpush3.bf16.msra.mxu1 %v6625_v50  ;;  %6071 = vmatprep.subr.bf16.mxu0 %v6626_v51  ;;  %v6675_v50 = vld [vmem:[%s8251_s1 + $0xae0] sm:$0xff]  }
 0x12a   : > { %6093 = vmatprep.subr.bf16.mxu1 %v6627_v52  ;;  %4737 = vmatprep.mubr.bf16.mxu0 %v5204_v30  ;;  %v6676_v52 = vld [vmem:[%s8251_s1 + $0xa20] sm:$0xff]   ;;  %v6705_v30 = vld [vmem:[%s8251_s1 + $0xb90] sm:$0xff]  }
 0x12b   : > { %4777 = vmatprep.mubr.bf16.mxu1 %v5206_v33  ;;  %v6708_v33 = vld [vmem:[%s8251_s1 + $0xb18] sm:$0xff]  }
 0x12c   : > { %6072 = vmatpush3.bf16.msra.mxu0 %v6628_v53 }
 0x12d   : > { %6094 = vmatpush3.bf16.msra.mxu1 %v6629_v54  ;;  %6073 = vmatprep.subr.bf16.mxu0 %v6630_v55  ;;  %v6677_v54 = vld [vmem:[%s8251_s1 + $0xaa0] sm:$0xff]  }
 0x12e   : > { %6095 = vmatprep.subr.bf16.mxu1 %v6631_v56 }
 0x130   : > { %6074 = vmatpush3.bf16.msra.mxu0 %v6632_v57  ;;  %v6678_v57 = vld [vmem:[%s8251_s1 + $0xa68] sm:$0xff]  }
 0x131   : > { %6096 = vmatpush3.bf16.msra.mxu1 %v6633_v58  ;;  %6075 = vmatprep.subr.bf16.mxu0 %v6634_v59 }
 0x132   : > { %6097 = vmatprep.subr.bf16.mxu1 %v6635_v60  ;;  %v6679_v60 = vld [vmem:[%s8251_s1 + $0xae8] sm:$0xff]  }
 0x134   : > { %6076 = vmatpush3.bf16.msra.mxu0 %v6636_v61 }
 0x135   : > { %6098 = vmatpush3.bf16.msra.mxu1 %v6637_v62  ;;  %6077 = vmatprep.subr.bf16.mxu0 %v6638_v63  ;;  %v6680_v63 = vld [vmem:[%s8251_s1 + $0xa28] sm:$0xff]  }
 0x136   : > { %6099 = vmatprep.subr.bf16.mxu1 %v6639_v0 }
 0x138   : > { %6078 = vmatpush3.bf16.msra.mxu0 %v6640_v2 }
 0x139   : > { %6100 = vmatpush3.bf16.msra.mxu1 %v6641_v4  ;;  %6079 = vmatprep.subr.bf16.mxu0 %v6642_v8  ;;  %v6682_v4 = vld [vmem:[%s8251_s1 + $0xa70] sm:$0xff]  }
 0x13a   : > { %v5777_v1 = vpop.f32.mrb[8].mxu0  ;;  %6101 = vmatprep.subr.bf16.mxu1 %v6643_v10  ;;  %v6685_v8 = vld [vmem:[%s8251_s1 + $0xab0] sm:$0xff]   ;;  %v6687_v10 = vld [vmem:[%s8251_s1 + $0xaf8] sm:$0xff]  }
 0x13b   : > { %v5799_v3 = vpop.f32.mrb[8].mxu1  ;;  %v5778_v5 = vpop.f32.mrb[9].mxu0 }
 0x13c   : > { %v5779_v6 = vadd.f32 %v5778_v5, %v5777_v1  ;;  %v5800_v7 = vpop.f32.mrb[9].mxu1  ;;  %v5780_v11 = vpop.f32.mrb[10].mxu0  ;;  %6080 = vmatpush3.bf16.msra.mxu0 %v6644_v14  ;;  %v6681_v1 = vld [vmem:[%s8251_s1 + $0xaa8] sm:$0xff]  }
 0x13d   : > { %v5801_v9 = vadd.f32 %v5800_v7, %v5799_v3  ;;  %v5802_v13 = vpop.f32.mrb[10].mxu1  ;;  %v5781_v16 = vpop.f32.mrb[11].mxu0  ;;  %6102 = vmatpush3.bf16.msra.mxu1 %v6645_v15  ;;  %6081 = vmatprep.subr.bf16.mxu0 %v6646_v19  ;;  %v6684_v7 = vld [vmem:[%s8251_s1 + $0xa30] sm:$0xff]   ;;  %v6688_v11 = vld [vmem:[%s8251_s1 + $0xa38] sm:$0xff]   ;;  %v6694_v19 = vld [vmem:[%s8251_s1 + $0xb40] sm:$0xff]  }
 0x13e   : > { %v4180_v12 = vadd.f32 %v5779_v6, %v7712_v32  ;;  %v5803_v18 = vpop.f32.mrb[11].mxu1  ;;  %6103 = vmatprep.subr.bf16.mxu1 %v6647_v20  ;;  %v6658_v32 = vld [vmem:[%s8251_s1 + $0xa40] sm:$0xff]   ;;  %v6683_v6 = vld [vmem:[%s8251_s1 + $0xaf0] sm:$0xff]   ;;  %v191_v16 = vld [vmem:[%s6938_s27 + $0xa8] sm:$0xff] }
 0x13f   : > { %v190_v13 = vld [vmem:[%s6938_s27 + $0xa0] sm:$0xff]  ;;  %v5210_v18 = vcombine.high %v191_v16, %v191_v16 }
 0x140   : > { %v7813_v17 = vadd.f32 %v5801_v9, %v4180_v12  ;;  %6082 = vmatpush3.bf16.msra.mxu0 %v6648_v21  ;;  %v6686_v9 = vld [vmem:[%s8251_s1 + $0xa78] sm:$0xff]   ;;  %v5207_v14 = vcombine.low %v190_v13, %v190_v13  ;;  %v5208_v15 = vcombine.high %v190_v13, %v190_v13  ;;  %v6695_v20 = vld [vmem:[%s8251_s1 + $0xbc0] sm:$0xff]   ;;  %v6738_v13 = vld [vmem:[%s8251_s1 + $0xc50] sm:$0xff]  }
 0x141   : > { %6104 = vmatpush3.bf16.msra.mxu1 %v6649_v22  ;;  %6083 = vmatprep.subr.bf16.mxu0 %v6650_v23  ;;  %v6689_v12 = vld [vmem:[%s8251_s1 + $0xab8] sm:$0xff]   ;;  %v6696_v21 = vld [vmem:[%s8251_s1 + $0xb00] sm:$0xff]   ;;  %v6698_v23 = vld [vmem:[%s8251_s1 + $0xb48] sm:$0xff]  }
 0x142   : > { %6105 = vmatprep.subr.bf16.mxu1 %v6651_v24  ;;  %v6697_v22 = vld [vmem:[%s8251_s1 + $0xb80] sm:$0xff]   ;;  %v6699_v24 = vld [vmem:[%s8251_s1 + $0xbc8] sm:$0xff]  }
 0x144   : > { %6084 = vmatpush3.bf16.msra.mxu0 %v6652_v25  ;;  %v6700_v25 = vld [vmem:[%s8251_s1 + $0xb08] sm:$0xff]  }
 0x145   : > { %6106 = vmatpush3.bf16.msra.mxu1 %v6653_v26  ;;  %6113 = vmatprep.subr.bf16.mxu0 %v6658_v32  ;;  %v6701_v26 = vld [vmem:[%s8251_s1 + $0xb88] sm:$0xff]   ;;  %v6707_v32 = vld [vmem:[%s8251_s1 + $0xbd8] sm:$0xff]  }
 0x146   : > { %6135 = vmatprep.subr.bf16.mxu1 %v6659_v34  ;;  %v6709_v34 = vld [vmem:[%s8251_s1 + $0xb98] sm:$0xff]  }
 0x147   : > { %4738 = vmatmul.mubr.bf16.vlgmr.msra.gmra.mrb[36].mxu0 %v5203_v29  ;;  %v6704_v29 = vld [vmem:[%s8251_s1 + $0xb10] sm:$0xff]  }
 0x148   : > { %4778 = vmatmul.mubr.bf16.vlgmr.msra.gmra.mrb[36].mxu1 %v5205_v31  ;;  %6114 = vmatpush3.bf16.msra.mxu0 %v6660_v35  ;;  %v6706_v31 = vld [vmem:[%s8251_s1 + $0xb58] sm:$0xff]   ;;  %v6710_v35 = vld [vmem:[%s8251_s1 + $0xb60] sm:$0xff]  }
 0x149   : > { %6136 = vmatpush3.bf16.msra.mxu1 %v6661_v36  ;;  %6115 = vmatprep.subr.bf16.mxu0 %v6662_v37  ;;  %v6711_v36 = vld [vmem:[%s8251_s1 + $0xbe0] sm:$0xff]  }
 0x14a   : > { %6137 = vmatprep.subr.bf16.mxu1 %v6663_v38  ;;  %4817 = vmatprep.mubr.bf16.mxu0 %v5208_v15  ;;  %v6712_v38 = vld [vmem:[%s8251_s1 + $0xb20] sm:$0xff]   ;;  %v6740_v15 = vld [vmem:[%s8251_s1 + $0xc10] sm:$0xff]  }
 0x14b   : > { %4857 = vmatprep.mubr.bf16.mxu1 %v5210_v18  ;;  %v6743_v18 = vld [vmem:[%s8251_s1 + $0xcd8] sm:$0xff]  }
 0x14c   : > { %6116 = vmatpush3.bf16.msra.mxu0 %v6664_v39 }
 0x14d   : > { %6138 = vmatpush3.bf16.msra.mxu1 %v6665_v40  ;;  %6117 = vmatprep.subr.bf16.mxu0 %v6666_v41  ;;  %v6713_v40 = vld [vmem:[%s8251_s1 + $0xba0] sm:$0xff]  }
 0x14e   : > { %6139 = vmatprep.subr.bf16.mxu1 %v6667_v42 }
 0x150   : > { %6118 = vmatpush3.bf16.msra.mxu0 %v6668_v43  ;;  %v6714_v43 = vld [vmem:[%s8251_s1 + $0xb68] sm:$0xff]  }
 0x151   : > { %6140 = vmatpush3.bf16.msra.mxu1 %v6669_v44  ;;  %6119 = vmatprep.subr.bf16.mxu0 %v6670_v45 }
 0x152   : > { %6141 = vmatprep.subr.bf16.mxu1 %v6671_v46  ;;  %v6715_v46 = vld [vmem:[%s8251_s1 + $0xbe8] sm:$0xff]  }
 0x154   : > { %6120 = vmatpush3.bf16.msra.mxu0 %v6672_v47 }
 0x155   : > { %6142 = vmatpush3.bf16.msra.mxu1 %v6673_v48  ;;  %6121 = vmatprep.subr.bf16.mxu0 %v6674_v49  ;;  %v6716_v49 = vld [vmem:[%s8251_s1 + $0xb28] sm:$0xff]  }
 0x156   : > { %6143 = vmatprep.subr.bf16.mxu1 %v6675_v50 }
 0x158   : > { %6122 = vmatpush3.bf16.msra.mxu0 %v6676_v52 }
 0x159   : > { %6144 = vmatpush3.bf16.msra.mxu1 %v6677_v54  ;;  %6123 = vmatprep.subr.bf16.mxu0 %v6678_v57  ;;  %v6718_v54 = vld [vmem:[%s8251_s1 + $0xb70] sm:$0xff]  }
 0x15a   : > { %v5821_v51 = vpop.f32.mrb[12].mxu0  ;;  %6145 = vmatprep.subr.bf16.mxu1 %v6679_v60  ;;  %v6720_v57 = vld [vmem:[%s8251_s1 + $0xb30] sm:$0xff]   ;;  %v6723_v60 = vld [vmem:[%s8251_s1 + $0xbf8] sm:$0xff]  }
 0x15b   : > { %v5843_v53 = vpop.f32.mrb[12].mxu1  ;;  %v5822_v55 = vpop.f32.mrb[13].mxu0 }
 0x15c   : > { %v5844_v56 = vpop.f32.mrb[13].mxu1  ;;  %v5823_v58 = vadd.f32 %v5822_v55, %v5821_v51  ;;  %v5824_v61 = vpop.f32.mrb[14].mxu0  ;;  %6124 = vmatpush3.bf16.msra.mxu0 %v6680_v63  ;;  %v6717_v51 = vld [vmem:[%s8251_s1 + $0xba8] sm:$0xff]   ;;  %v192_v63 = vld [vmem:[%s6938_s27 + $0xb0] sm:$0xff] }
 0x15d   : > { %v5845_v59 = vadd.f32 %v5844_v56, %v5843_v53  ;;  %v5846_v62 = vpop.f32.mrb[14].mxu1  ;;  %v5825_v2 = vpop.f32.mrb[15].mxu0  ;;  %6146 = vmatpush3.bf16.msra.mxu1 %v6681_v1  ;;  %6125 = vmatprep.subr.bf16.mxu0 %v6682_v4  ;;  %v6719_v56 = vld [vmem:[%s8251_s1 + $0xbf0] sm:$0xff]   ;;  %v6724_v61 = vld [vmem:[%s8251_s1 + $0xb38] sm:$0xff]   ;;  %v5211_v1 = vcombine.low %v192_v63, %v192_v63 }
 0x15e   : > { %v4260_v0 = vadd.f32 %v5823_v58, %v7813_v17  ;;  %v5847_v3 = vpop.f32.mrb[15].mxu1  ;;  %6147 = vmatprep.subr.bf16.mxu1 %v6683_v6  ;;  %v5209_v17 = vcombine.low %v191_v16, %v191_v16  ;;  %v6721_v58 = vld [vmem:[%s8251_s1 + $0xbb0] sm:$0xff]   ;;  %v6725_v62 = vld [vmem:[%s8251_s1 + $0xbb8] sm:$0xff]   ;;  %v5212_v2 = vcombine.high %v192_v63, %v192_v63  ;;  %v6731_v6 = vld [vmem:[%s8251_s1 + $0xcc0] sm:$0xff]  }
 0x15f   : > { %v6741_v16 = vld [vmem:[%s8251_s1 + $0xc90] sm:$0xff]  }
 0x160   : > { %v7917_v5 = vadd.f32 %v5845_v59, %v4260_v0  ;;  %6126 = vmatpush3.bf16.msra.mxu0 %v6684_v7  ;;  %v6722_v59 = vld [vmem:[%s8251_s1 + $0xb78] sm:$0xff]   ;;  %v6732_v7 = vld [vmem:[%s8251_s1 + $0xc00] sm:$0xff]   ;;  %v6774_v63 = vld [vmem:[%s8251_s1 + $0xd50] sm:$0xff]  }
 0x161   : > { %6148 = vmatpush3.bf16.msra.mxu1 %v6685_v8  ;;  %6127 = vmatprep.subr.bf16.mxu0 %v6686_v9  ;;  %v193_v0 = vld [vmem:[%s6938_s27 + $0xb8] sm:$0xff]  ;;  %v6733_v8 = vld [vmem:[%s8251_s1 + $0xc80] sm:$0xff]   ;;  %v6734_v9 = vld [vmem:[%s8251_s1 + $0xc48] sm:$0xff]  }
 0x162   : > { %6149 = vmatprep.subr.bf16.mxu1 %v6687_v10  ;;  %v5213_v3 = vcombine.low %v193_v0, %v193_v0  ;;  %v5214_v4 = vcombine.high %v193_v0, %v193_v0  ;;  %v6735_v10 = vld [vmem:[%s8251_s1 + $0xcc8] sm:$0xff]   ;;  %v6775_v0 = vld [vmem:[%s8251_s1 + $0xdd0] sm:$0xff]  }
 0x164   : > { %6128 = vmatpush3.bf16.msra.mxu0 %v6688_v11  ;;  %v6736_v11 = vld [vmem:[%s8251_s1 + $0xc08] sm:$0xff]  }
 0x165   : > { %6150 = vmatpush3.bf16.msra.mxu1 %v6689_v12  ;;  %6157 = vmatprep.subr.bf16.mxu0 %v6694_v19  ;;  %v6737_v12 = vld [vmem:[%s8251_s1 + $0xc88] sm:$0xff]   ;;  %v6744_v19 = vld [vmem:[%s8251_s1 + $0xc18] sm:$0xff]  }
 0x166   : > { %6179 = vmatprep.subr.bf16.mxu1 %v6695_v20  ;;  %v6745_v20 = vld [vmem:[%s8251_s1 + $0xc98] sm:$0xff]  }
 0x167   : > { %4818 = vmatmul.mubr.bf16.vlgmr.msra.gmra.mrb[40].mxu0 %v5207_v14  ;;  %v6739_v14 = vld [vmem:[%s8251_s1 + $0xcd0] sm:$0xff]  }
 0x168   : > { %4858 = vmatmul.mubr.bf16.vlgmr.msra.gmra.mrb[40].mxu1 %v5209_v17  ;;  %6158 = vmatpush3.bf16.msra.mxu0 %v6696_v21  ;;  %v6742_v17 = vld [vmem:[%s8251_s1 + $0xc58] sm:$0xff]   ;;  %v6746_v21 = vld [vmem:[%s8251_s1 + $0xc60] sm:$0xff]  }
 0x169   : > { %6180 = vmatpush3.bf16.msra.mxu1 %v6697_v22  ;;  %6159 = vmatprep.subr.bf16.mxu0 %v6698_v23  ;;  %v6747_v22 = vld [vmem:[%s8251_s1 + $0xce0] sm:$0xff]  }
 0x16a   : > { %6181 = vmatprep.subr.bf16.mxu1 %v6699_v24  ;;  %4897 = vmatprep.mubr.bf16.mxu0 %v5212_v2  ;;  %v6748_v24 = vld [vmem:[%s8251_s1 + $0xc20] sm:$0xff]   ;;  %v6777_v2 = vld [vmem:[%s8251_s1 + $0xd90] sm:$0xff]  }
 0x16b   : > { %4937 = vmatprep.mubr.bf16.mxu1 %v5214_v4  ;;  %v6779_v4 = vld [vmem:[%s8251_s1 + $0xdd8] sm:$0xff]  }
 0x16c   : > { %6160 = vmatpush3.bf16.msra.mxu0 %v6700_v25 }
 0x16d   : > { %6182 = vmatpush3.bf16.msra.mxu1 %v6701_v26  ;;  %6161 = vmatprep.subr.bf16.mxu0 %v6702_v27  ;;  %v6749_v26 = vld [vmem:[%s8251_s1 + $0xca0] sm:$0xff]  }
 0x16e   : > { %6183 = vmatprep.subr.bf16.mxu1 %v6703_v28 }
 0x170   : > { %6162 = vmatpush3.bf16.msra.mxu0 %v6704_v29 }
 0x171   : > { %6184 = vmatpush3.bf16.msra.mxu1 %v6705_v30  ;;  %6163 = vmatprep.subr.bf16.mxu0 %v6706_v31  ;;  %v6750_v30 = vld [vmem:[%s8251_s1 + $0xc68] sm:$0xff]  }
 0x172   : > { %6185 = vmatprep.subr.bf16.mxu1 %v6707_v32  ;;  %v6751_v32 = vld [vmem:[%s8251_s1 + $0xce8] sm:$0xff]  }
 0x174   : > { %6164 = vmatpush3.bf16.msra.mxu0 %v6708_v33 }
 0x175   : > { %6186 = vmatpush3.bf16.msra.mxu1 %v6709_v34  ;;  %6165 = vmatprep.subr.bf16.mxu0 %v6710_v35 }
 0x176   : > { %6187 = vmatprep.subr.bf16.mxu1 %v6711_v36  ;;  %v6752_v36 = vld [vmem:[%s8251_s1 + $0xc28] sm:$0xff]  }
 0x178   : > { %6166 = vmatpush3.bf16.msra.mxu0 %v6712_v38 }
 0x179   : > { %6188 = vmatpush3.bf16.msra.mxu1 %v6713_v40  ;;  %6167 = vmatprep.subr.bf16.mxu0 %v6714_v43  ;;  %v6756_v43 = vld [vmem:[%s8251_s1 + $0xc30] sm:$0xff]  }
 0x17a   : > { %v5865_v37 = vpop.f32.mrb[16].mxu0  ;;  %6189 = vmatprep.subr.bf16.mxu1 %v6715_v46  ;;  %v6759_v46 = vld [vmem:[%s8251_s1 + $0xcf8] sm:$0xff]  }
 0x17b   : > { %v5887_v39 = vpop.f32.mrb[16].mxu1  ;;  %v5866_v41 = vpop.f32.mrb[17].mxu0 }
 0x17c   : > { %v5888_v42 = vpop.f32.mrb[17].mxu1  ;;  %v5867_v44 = vadd.f32 %v5866_v41, %v5865_v37  ;;  %v5868_v47 = vpop.f32.mrb[18].mxu0  ;;  %6168 = vmatpush3.bf16.msra.mxu0 %v6716_v49  ;;  %v6753_v37 = vld [vmem:[%s8251_s1 + $0xca8] sm:$0xff]   ;;  %v6754_v41 = vld [vmem:[%s8251_s1 + $0xc70] sm:$0xff]   ;;  %v194_v49 = vld [vmem:[%s6938_s27 + $0xc0] sm:$0xff] }
 0x17d   : > { %v5889_v45 = vadd.f32 %v5888_v42, %v5887_v39  ;;  %v5890_v48 = vpop.f32.mrb[18].mxu1  ;;  %v5869_v52 = vpop.f32.mrb[19].mxu0  ;;  %6190 = vmatpush3.bf16.msra.mxu1 %v6717_v51  ;;  %6169 = vmatprep.subr.bf16.mxu0 %v6718_v54  ;;  %v6755_v42 = vld [vmem:[%s8251_s1 + $0xcf0] sm:$0xff]   ;;  %v6760_v47 = vld [vmem:[%s8251_s1 + $0xc38] sm:$0xff]   ;;  %v5215_v51 = vcombine.low %v194_v49, %v194_v49  ;;  %v6766_v54 = vld [vmem:[%s8251_s1 + $0xd40] sm:$0xff]  }
 0x17e   : > { %v4340_v50 = vadd.f32 %v5867_v44, %v7917_v5  ;;  %v5891_v53 = vpop.f32.mrb[19].mxu1  ;;  %6191 = vmatprep.subr.bf16.mxu1 %v6719_v56  ;;  %v6730_v5 = vld [vmem:[%s8251_s1 + $0xc40] sm:$0xff]   ;;  %v6757_v44 = vld [vmem:[%s8251_s1 + $0xcb0] sm:$0xff]   ;;  %v6761_v48 = vld [vmem:[%s8251_s1 + $0xcb8] sm:$0xff]   ;;  %v5216_v52 = vcombine.high %v194_v49, %v194_v49 }
 0x17f   : > { %v6767_v56 = vld [vmem:[%s8251_s1 + $0xdc0] sm:$0xff]  }
 0x180   : > { %v8018_v55 = vadd.f32 %v5889_v45, %v4340_v50  ;;  %6170 = vmatpush3.bf16.msra.mxu0 %v6720_v57  ;;  %v6758_v45 = vld [vmem:[%s8251_s1 + $0xc78] sm:$0xff]   ;;  %v195_v50 = vld [vmem:[%s6938_s27 + $0xc8] sm:$0xff]  ;;  %v6768_v57 = vld [vmem:[%s8251_s1 + $0xd00] sm:$0xff]  }
 0x181   : > { %6192 = vmatpush3.bf16.msra.mxu1 %v6721_v58  ;;  %6171 = vmatprep.subr.bf16.mxu0 %v6722_v59  ;;  %v5217_v53 = vcombine.low %v195_v50, %v195_v50  ;;  %v6769_v58 = vld [vmem:[%s8251_s1 + $0xd80] sm:$0xff]   ;;  %v6770_v59 = vld [vmem:[%s8251_s1 + $0xd48] sm:$0xff]  }
 0x182   : > { %6193 = vmatprep.subr.bf16.mxu1 %v6723_v60  ;;  %v6771_v60 = vld [vmem:[%s8251_s1 + $0xdc8] sm:$0xff]  }
 0x184   : > { %6172 = vmatpush3.bf16.msra.mxu0 %v6724_v61  ;;  %v6772_v61 = vld [vmem:[%s8251_s1 + $0xd08] sm:$0xff]  }
 0x185   : > { %6194 = vmatpush3.bf16.msra.mxu1 %v6725_v62  ;;  %6201 = vmatprep.subr.bf16.mxu0 %v6730_v5  ;;  %v6773_v62 = vld [vmem:[%s8251_s1 + $0xd88] sm:$0xff]   ;;  %v6780_v5 = vld [vmem:[%s8251_s1 + $0xd18] sm:$0xff]  }
 0x186   : > { %6223 = vmatprep.subr.bf16.mxu1 %v6731_v6  ;;  %v6781_v6 = vld [vmem:[%s8251_s1 + $0xd98] sm:$0xff]  }
 0x187   : > { %4898 = vmatmul.mubr.bf16.vlgmr.msra.gmra.mrb[44].mxu0 %v5211_v1  ;;  %v6776_v1 = vld [vmem:[%s8251_s1 + $0xd10] sm:$0xff]  }
 0x188   : > { %4938 = vmatmul.mubr.bf16.vlgmr.msra.gmra.mrb[44].mxu1 %v5213_v3  ;;  %6202 = vmatpush3.bf16.msra.mxu0 %v6732_v7  ;;  %v6778_v3 = vld [vmem:[%s8251_s1 + $0xd58] sm:$0xff]   ;;  %v6782_v7 = vld [vmem:[%s8251_s1 + $0xd60] sm:$0xff]  }
 0x189   : > { %6224 = vmatpush3.bf16.msra.mxu1 %v6733_v8  ;;  %6203 = vmatprep.subr.bf16.mxu0 %v6734_v9  ;;  %v6783_v8 = vld [vmem:[%s8251_s1 + $0xde0] sm:$0xff]  }
 0x18a   : > { %6225 = vmatprep.subr.bf16.mxu1 %v6735_v10  ;;  %4977 = vmatprep.mubr.bf16.mxu0 %v5216_v52  ;;  %v6784_v10 = vld [vmem:[%s8251_s1 + $0xd20] sm:$0xff]  }
 0x18c   : > { %6204 = vmatpush3.bf16.msra.mxu0 %v6736_v11 }
 0x18d   : > { %6226 = vmatpush3.bf16.msra.mxu1 %v6737_v12  ;;  %6205 = vmatprep.subr.bf16.mxu0 %v6738_v13  ;;  %v6785_v12 = vld [vmem:[%s8251_s1 + $0xda0] sm:$0xff]  }
 0x18e   : > { %6227 = vmatprep.subr.bf16.mxu1 %v6739_v14 }
 0x190   : > { %6206 = vmatpush3.bf16.msra.mxu0 %v6740_v15  ;;  %v6786_v15 = vld [vmem:[%s8251_s1 + $0xd68] sm:$0xff]  }
 0x191   : > { %6228 = vmatpush3.bf16.msra.mxu1 %v6741_v16  ;;  %6207 = vmatprep.subr.bf16.mxu0 %v6742_v17 }
 0x192   : > { %6229 = vmatprep.subr.bf16.mxu1 %v6743_v18  ;;  %v6787_v18 = vld [vmem:[%s8251_s1 + $0xde8] sm:$0xff]  }
 0x194   : > { %6208 = vmatpush3.bf16.msra.mxu0 %v6744_v19 }
 0x195   : > { %6230 = vmatpush3.bf16.msra.mxu1 %v6745_v20  ;;  %6209 = vmatprep.subr.bf16.mxu0 %v6746_v21  ;;  %v6788_v21 = vld [vmem:[%s8251_s1 + $0xd28] sm:$0xff]  }
 0x196   : > { %6231 = vmatprep.subr.bf16.mxu1 %v6747_v22 }
 0x198   : > { %6210 = vmatpush3.bf16.msra.mxu0 %v6748_v24 }
 0x199   : > { %6232 = vmatpush3.bf16.msra.mxu1 %v6749_v26  ;;  %6211 = vmatprep.subr.bf16.mxu0 %v6750_v30  ;;  %v6790_v26 = vld [vmem:[%s8251_s1 + $0xd70] sm:$0xff]  }
 0x19a   : > { %v5909_v23 = vpop.f32.mrb[20].mxu0  ;;  %6233 = vmatprep.subr.bf16.mxu1 %v6751_v32  ;;  %v6793_v30 = vld [vmem:[%s8251_s1 + $0xdb0] sm:$0xff]   ;;  %v6795_v32 = vld [vmem:[%s8251_s1 + $0xdf8] sm:$0xff]  }
 0x19b   : > { %v5931_v25 = vpop.f32.mrb[20].mxu1  ;;  %v5910_v27 = vpop.f32.mrb[21].mxu0 }
 0x19c   : > { %v5911_v28 = vadd.f32 %v5910_v27, %v5909_v23  ;;  %v5932_v29 = vpop.f32.mrb[21].mxu1  ;;  %v5912_v33 = vpop.f32.mrb[22].mxu0  ;;  %6212 = vmatpush3.bf16.msra.mxu0 %v6752_v36  ;;  %v6789_v23 = vld [vmem:[%s8251_s1 + $0xda8] sm:$0xff]  }
 0x19d   : > { %v5933_v31 = vadd.f32 %v5932_v29, %v5931_v25  ;;  %v5934_v35 = vpop.f32.mrb[22].mxu1  ;;  %v5913_v38 = vpop.f32.mrb[23].mxu0  ;;  %6234 = vmatpush3.bf16.msra.mxu1 %v6753_v37  ;;  %6213 = vmatprep.subr.bf16.mxu0 %v6754_v41  ;;  %v6792_v29 = vld [vmem:[%s8251_s1 + $0xd30] sm:$0xff]   ;;  %v6796_v33 = vld [vmem:[%s8251_s1 + $0xd38] sm:$0xff]  }
 0x19e   : > { %v4420_v34 = vadd.f32 %v5911_v28, %v8018_v55  ;;  %v5935_v40 = vpop.f32.mrb[23].mxu1  ;;  %6235 = vmatprep.subr.bf16.mxu1 %v6755_v42  ;;  %v5218_v55 = vcombine.high %v195_v50, %v195_v50  ;;  %v6791_v28 = vld [vmem:[%s8251_s1 + $0xdf0] sm:$0xff]   ;;  %v197_v38 = vld [vmem:[%s6938_s27 + $0xd8] sm:$0xff] }
 0x19f   : > { %v196_v35 = vld [vmem:[%s6938_s27 + $0xd0] sm:$0xff]  ;;  %v5222_v40 = vcombine.high %v197_v38, %v197_v38  ;;  %s5165_s27 = sshll.u32 %s8255_s13, 3 }
 0x1a0   : > { %v8116_v39 = vadd.f32 %v5933_v31, %v4420_v34  ;;  %6214 = vmatpush3.bf16.msra.mxu0 %v6756_v43  ;;  %5017 = vmatprep.mubr.bf16.mxu1 %v5218_v55  ;;  %v6794_v31 = vld [vmem:[%s8251_s1 + $0xd78] sm:$0xff]   ;;  %v5219_v36 = vcombine.low %v196_v35, %v196_v35  ;;  %v5220_v37 = vcombine.high %v196_v35, %v196_v35  ;;  %s168_s28 = scalar_lea.vmem %s8253_s3, %s5165_s27 }
 0x1a1   : > { %6236 = vmatpush3.bf16.msra.mxu1 %v6757_v44  ;;  %6215 = vmatprep.subr.bf16.mxu0 %v6758_v45  ;;  %v6797_v34 = vld [vmem:[%s8251_s1 + $0xdb8] sm:$0xff]  }
 0x1a2   : > { %6237 = vmatprep.subr.bf16.mxu1 %v6759_v46 }
 0x1a4   : > { %6216 = vmatpush3.bf16.msra.mxu0 %v6760_v47 }
 0x1a5   : > { %6238 = vmatpush3.bf16.msra.mxu1 %v6761_v48  ;;  %6245 = vmatprep.subr.bf16.mxu0 %v6766_v54 }
 0x1a6   : > { %6267 = vmatprep.subr.bf16.mxu1 %v6767_v56 }
 0x1a7   : > { %4978 = vmatmul.mubr.bf16.vlgmr.msra.gmra.mrb[48].mxu0 %v5215_v51 }
 0x1a8   : > { %5018 = vmatmul.mubr.bf16.vlgmr.msra.gmra.mrb[48].mxu1 %v5217_v53  ;;  %6246 = vmatpush3.bf16.msra.mxu0 %v6768_v57 }
 0x1a9   : > { %6268 = vmatpush3.bf16.msra.mxu1 %v6769_v58  ;;  %6247 = vmatprep.subr.bf16.mxu0 %v6770_v59 }
 0x1aa   : > { %6269 = vmatprep.subr.bf16.mxu1 %v6771_v60  ;;  %5057 = vmatprep.mubr.bf16.mxu0 %v5220_v37 }
 0x1ab   : > { %5097 = vmatprep.mubr.bf16.mxu1 %v5222_v40 }
 0x1ac   : > { %6248 = vmatpush3.bf16.msra.mxu0 %v6772_v61 }
 0x1ad   : > { %6270 = vmatpush3.bf16.msra.mxu1 %v6773_v62  ;;  %6249 = vmatprep.subr.bf16.mxu0 %v6774_v63 }
 0x1ae   : > { %6271 = vmatprep.subr.bf16.mxu1 %v6775_v0 }
 0x1b0   : > { %6250 = vmatpush3.bf16.msra.mxu0 %v6776_v1 }
 0x1b1   : > { %6272 = vmatpush3.bf16.msra.mxu1 %v6777_v2  ;;  %6251 = vmatprep.subr.bf16.mxu0 %v6778_v3 }
 0x1b2   : > { %6273 = vmatprep.subr.bf16.mxu1 %v6779_v4 }
 0x1b4   : > { %6252 = vmatpush3.bf16.msra.mxu0 %v6780_v5 }
 0x1b5   : > { %6274 = vmatpush3.bf16.msra.mxu1 %v6781_v6  ;;  %6253 = vmatprep.subr.bf16.mxu0 %v6782_v7 }
 0x1b6   : > { %6275 = vmatprep.subr.bf16.mxu1 %v6783_v8 }
 0x1b8   : > { %6254 = vmatpush3.bf16.msra.mxu0 %v6784_v10 }
 0x1b9   : > { %6276 = vmatpush3.bf16.msra.mxu1 %v6785_v12  ;;  %6255 = vmatprep.subr.bf16.mxu0 %v6786_v15 }
 0x1ba   : > { %v5953_v9 = vpop.f32.mrb[24].mxu0  ;;  %6277 = vmatprep.subr.bf16.mxu1 %v6787_v18 }
 0x1bb   : > { %v5975_v11 = vpop.f32.mrb[24].mxu1  ;;  %v5954_v13 = vpop.f32.mrb[25].mxu0 }
 0x1bc   : > { %v5976_v14 = vpop.f32.mrb[25].mxu1  ;;  %v5955_v16 = vadd.f32 %v5954_v13, %v5953_v9  ;;  %v5956_v19 = vpop.f32.mrb[26].mxu0  ;;  %6256 = vmatpush3.bf16.msra.mxu0 %v6788_v21 }
 0x1bd   : > { %v5977_v17 = vadd.f32 %v5976_v14, %v5975_v11  ;;  %v5978_v20 = vpop.f32.mrb[26].mxu1  ;;  %v5957_v24 = vpop.f32.mrb[27].mxu0  ;;  %6278 = vmatpush3.bf16.msra.mxu1 %v6789_v23  ;;  %6257 = vmatprep.subr.bf16.mxu0 %v6790_v26 }
 0x1be   : > { %v4500_v22 = vadd.f32 %v5955_v16, %v8116_v39  ;;  %v5979_v25 = vpop.f32.mrb[27].mxu1  ;;  %6279 = vmatprep.subr.bf16.mxu1 %v6791_v28  ;;  %v5221_v39 = vcombine.low %v197_v38, %v197_v38 }
 0x1c0   : > { %v4540_v27 = vadd.f32 %v5977_v17, %v4500_v22  ;;  %6258 = vmatpush3.bf16.msra.mxu0 %v6792_v29 }
 0x1c1   : > { %6280 = vmatpush3.bf16.msra.mxu1 %v6793_v30  ;;  %6259 = vmatprep.subr.bf16.mxu0 %v6794_v31 }
 0x1c2   : > { %6281 = vmatprep.subr.bf16.mxu1 %v6795_v32 }
 0x1c4   : > { %6260 = vmatpush3.bf16.msra.mxu0 %v6796_v33 }
 0x1c5   : > { %6282 = vmatpush3.bf16.msra.mxu1 %v6797_v34 }
 0x1c7   : > { %5058 = vmatmul.mubr.bf16.vlgmr.msra.gmra.mrb[52].mxu0 %v5219_v36 }
 0x1c8   : > { %5098 = vmatmul.mubr.bf16.vlgmr.msra.gmra.mrb[52].mxu1 %v5221_v39 }
 0x1da   : > { %v5997_v41 = vpop.f32.mrb[28].mxu0 }
 0x1db   : > { %v6019_v42 = vpop.f32.mrb[28].mxu1  ;;  %v5998_v43 = vpop.f32.mrb[29].mxu0 }
 0x1dc   : > { %v5999_v44 = vadd.f32 %v5998_v43, %v5997_v41  ;;  %v6020_v45 = vpop.f32.mrb[29].mxu1  ;;  %v6000_v46 = vpop.f32.mrb[30].mxu0 }
 0x1dd   : > { %v6021_v47 = vadd.f32 %v6020_v45, %v6019_v42  ;;  %v6022_v48 = vpop.f32.mrb[30].mxu1  ;;  %v6001_v49 = vpop.f32.mrb[31].mxu0 }
 0x1de   : > { %v4580_v50 = vadd.f32 %v5999_v44, %v4540_v27  ;;  %v6023_v51 = vpop.f32.mrb[31].mxu1 }
 0x1e0   : > { %v4620_v52 = vadd.f32 %v6021_v47, %v4580_v50 }
 0x1fa   : > { %v6041_v53 = vpop.f32.mrb[32].mxu0 }
 0x1fb   : > { %v6063_v54 = vpop.f32.mrb[32].mxu1  ;;  %v6042_v55 = vpop.f32.mrb[33].mxu0 }
 0x1fc   : > { %v6043_v56 = vadd.f32 %v6042_v55, %v6041_v53  ;;  %v6064_v57 = vpop.f32.mrb[33].mxu1  ;;  %v6044_v58 = vpop.f32.mrb[34].mxu0 }
 0x1fd   : > { %v6065_v59 = vadd.f32 %v6064_v57, %v6063_v54  ;;  %v6066_v60 = vpop.f32.mrb[34].mxu1  ;;  %v6045_v61 = vpop.f32.mrb[35].mxu0 }
 0x1fe   : > { %v4660_v62 = vadd.f32 %v6043_v56, %v4620_v52  ;;  %v6067_v63 = vpop.f32.mrb[35].mxu1 }
 0x200   : > { %v4700_v0 = vadd.f32 %v6065_v59, %v4660_v62 }
 0x21a   : > { %v6085_v1 = vpop.f32.mrb[36].mxu0 }
 0x21b   : > { %v6107_v2 = vpop.f32.mrb[36].mxu1  ;;  %v6086_v3 = vpop.f32.mrb[37].mxu0 }
 0x21c   : > { %v6087_v4 = vadd.f32 %v6086_v3, %v6085_v1  ;;  %v6108_v5 = vpop.f32.mrb[37].mxu1  ;;  %v6088_v6 = vpop.f32.mrb[38].mxu0 }
 0x21d   : > { %v6109_v7 = vadd.f32 %v6108_v5, %v6107_v2  ;;  %v6110_v8 = vpop.f32.mrb[38].mxu1  ;;  %v6089_v9 = vpop.f32.mrb[39].mxu0 }
 0x21e   : > { %v4740_v10 = vadd.f32 %v6087_v4, %v4700_v0  ;;  %v6111_v11 = vpop.f32.mrb[39].mxu1 }
 0x220   : > { %v4780_v12 = vadd.f32 %v6109_v7, %v4740_v10 }
 0x23a   : > { %v6129_v13 = vpop.f32.mrb[40].mxu0 }
 0x23b   : > { %v6151_v14 = vpop.f32.mrb[40].mxu1  ;;  %v6130_v15 = vpop.f32.mrb[41].mxu0 }
 0x23c   : > { %v6152_v16 = vpop.f32.mrb[41].mxu1  ;;  %v6131_v17 = vadd.f32 %v6130_v15, %v6129_v13  ;;  %v6132_v19 = vpop.f32.mrb[42].mxu0 }
 0x23d   : > { %v6153_v18 = vadd.f32 %v6152_v16, %v6151_v14  ;;  %v6154_v20 = vpop.f32.mrb[42].mxu1  ;;  %v6133_v21 = vpop.f32.mrb[43].mxu0 }
 0x23e   : > { %v6155_v22 = vpop.f32.mrb[43].mxu1  ;;  %v4820_v23 = vadd.f32 %v6131_v17, %v4780_v12 }
 0x240   : > { %v4860_v24 = vadd.f32 %v6153_v18, %v4820_v23 }
 0x25a   : > { %v6173_v25 = vpop.f32.mrb[44].mxu0 }
 0x25b   : > { %v6195_v26 = vpop.f32.mrb[44].mxu1  ;;  %v6174_v27 = vpop.f32.mrb[45].mxu0 }
 0x25c   : > { %v6175_v28 = vadd.f32 %v6174_v27, %v6173_v25  ;;  %v6196_v29 = vpop.f32.mrb[45].mxu1  ;;  %v6176_v30 = vpop.f32.mrb[46].mxu0 }
 0x25d   : > { %v6197_v31 = vadd.f32 %v6196_v29, %v6195_v26  ;;  %v6198_v32 = vpop.f32.mrb[46].mxu1  ;;  %v6177_v33 = vpop.f32.mrb[47].mxu0 }
 0x25e   : > { %v4900_v34 = vadd.f32 %v6175_v28, %v4860_v24  ;;  %v6199_v35 = vpop.f32.mrb[47].mxu1 }
 0x260   : > { %v4940_v36 = vadd.f32 %v6197_v31, %v4900_v34 }
 0x27a   : > { %v6217_v37 = vpop.f32.mrb[48].mxu0 }
 0x27b   : > { %v6239_v38 = vpop.f32.mrb[48].mxu1  ;;  %v6218_v39 = vpop.f32.mrb[49].mxu0 }
 0x27c   : > { %v6219_v40 = vadd.f32 %v6218_v39, %v6217_v37  ;;  %v6240_v41 = vpop.f32.mrb[49].mxu1  ;;  %v6220_v42 = vpop.f32.mrb[50].mxu0 }
 0x27d   : > { %v6241_v43 = vadd.f32 %v6240_v41, %v6239_v38  ;;  %v6242_v44 = vpop.f32.mrb[50].mxu1  ;;  %v6221_v45 = vpop.f32.mrb[51].mxu0 }
 0x27e   : > { %v4980_v46 = vadd.f32 %v6219_v40, %v4940_v36  ;;  %v6243_v47 = vpop.f32.mrb[51].mxu1 }
 0x280   : > { %v5020_v48 = vadd.f32 %v6241_v43, %v4980_v46 }
 0x29a   : > { %v6261_v49 = vpop.f32.mrb[52].mxu0 }
 0x29b   : > { %v6283_v50 = vpop.f32.mrb[52].mxu1  ;;  %v6262_v51 = vpop.f32.mrb[53].mxu0 }
 0x29c   : > { %v6284_v52 = vpop.f32.mrb[53].mxu1  ;;  %v6263_v53 = vadd.f32 %v6262_v51, %v6261_v49  ;;  %v6264_v55 = vpop.f32.mrb[54].mxu0 }
 0x29d   : > { %v6285_v54 = vadd.f32 %v6284_v52, %v6283_v50  ;;  %v6286_v56 = vpop.f32.mrb[54].mxu1  ;;  %v6265_v57 = vpop.f32.mrb[55].mxu0 }
 0x29e   : > { %v6287_v58 = vpop.f32.mrb[55].mxu1  ;;  %v5060_v59 = vadd.f32 %v6263_v53, %v5020_v48 }
 0x2a0   : > { %v5100_v60 = vadd.f32 %v6285_v54, %v5060_v59 }
 0x2a2   : > { %5105 = vst [vmem:[%s168_s28] sm:$0xff] %v5100_v60 }
 0x2a3 PF: > { %s13_s12 = sadd.s32 1, %s6808_s12  }
 0x2a4   : > { %p10_p4 = scmp.ge.s32.totalorder %s13_s12, 4  }
 0x2a6   :  { %12 = sbr.rel (!%p10_p4) target bundleno = 1 (0x1), region = 62 }

</bundles_post_ra>
